<compile_context>
chip_gen: v7x
topology: tpu7x:2x2x1
jax: 0.10.0
libtpu: 0.0.40
codegen_flags: <defaults>
</compile_context>

<pallas_src>
import jax
import jax.numpy as jnp
import numpy as np
from jax import lax
from jax.experimental import pallas as pl
from jax.experimental.pallas import tpu as pltpu

BN_EPS = 1e-5
LANE = 128
MIN_CIN = 8  # pad the network-input channel dim up to this (avoids K=1 dots)


# ---------------------------------------------------------------------------
# Static geometry helpers (trace-time, numpy only)
# ---------------------------------------------------------------------------
def _round_up(v, m):
    return (v + m - 1) // m * m


def _stage_metas(n, h0, w0):
    """Per-stage geometry of the zero-padded, flattened (C, M) slabs."""
    metas = []
    h, w = h0, w0
    for _ in range(4):
        hp, wp = h + 2, w + 2
        metas.append(dict(H=h, W=w, Hp=hp, Wp=wp,
                          M=_round_up(n * hp * wp, LANE),
                          count=n * h * w))
        h, w = h // 2, w // 2
    return metas


def _interior_mask(n, meta):
    """(1, M) float mask: 1.0 at valid (non-border, non-tail) positions."""
    hp, wp, m = meta["Hp"], meta["Wp"], meta["M"]
    mask = np.zeros((1, m), np.float32)
    for b in range(n):
        for i in range(meta["H"]):
            p = b * hp * wp + (i + 1) * wp + 1
            mask[0, p:p + meta["W"]] = 1.0
    return mask


def _pool_select(n, meta, meta_next):
    """0/1 matrix S so that  pooled_slab = window_max_slab @ S  both
    downsamples 2x2/stride-2 and re-embeds into the next stage's zero-padded
    (C, M_next) layout (zeros everywhere else = the conv zero padding)."""
    hp, wp, m = meta["Hp"], meta["Wp"], meta["M"]
    hpn, wpn, mn = meta_next["Hp"], meta_next["Wp"], meta_next["M"]
    ho, wo = meta_next["H"], meta_next["W"]
    s = np.zeros((m, mn), np.float32)
    for b in range(n):
        for i in range(ho):
            for j in range(wo):
                p = b * hp * wp + (2 * i + 1) * wp + (2 * j + 1)  # window anchor
                q = b * hpn * wpn + (i + 1) * wpn + (j + 1)       # interior target
                s[p, q] = 1.0
    return s


# ---------------------------------------------------------------------------
# Kernel
# ---------------------------------------------------------------------------
def _conv_bn_relu(x, w_ref, gb_ref, mask, meta):
    """3x3 conv (shift-and-matmul) + train-mode BatchNorm + ReLU on (C, M)."""
    wp, m, count = meta["Wp"], meta["M"], meta["count"]
    cout = w_ref.shape[1]
    acc = jnp.zeros((cout, m), jnp.float32)
    for ky in range(3):
        for kx in range(3):
            off = (ky - 1) * wp + (kx - 1)          # flat-slab offset of this tap
            xs = x if off == 0 else pltpu.roll(x, (-off) % m, 1)
            acc = acc + jnp.dot(w_ref[ky * 3 + kx], xs,
                                preferred_element_type=jnp.float32)
    # BatchNorm2d, training mode: biased batch stats over the N*H*W valid
    # positions (mask excludes padding columns/rows and lane-tail garbage).
    inv_count = 1.0 / count
    mean = jnp.sum(acc * mask, axis=1, keepdims=True) * inv_count
    diff = acc - mean
    var = jnp.sum(diff * diff * mask, axis=1, keepdims=True) * inv_count
    y = gb_ref[0] * (diff * lax.rsqrt(var + BN_EPS)) + gb_ref[1]
    # ReLU, then re-zero non-valid positions so they act as zero padding for
    # the next conv.
    return jnp.maximum(y, 0.0) * mask


def _maxpool_to_next(y, sel_ref, meta):
    """2x2 / stride-2 max pool of a (C, M) slab, re-embedded into the next
    stage's zero-padded slab via one matmul with a 0/1 selection matrix."""
    wp, m = meta["Wp"], meta["M"]
    wmax = jnp.maximum(
        jnp.maximum(y, pltpu.roll(y, m - 1, 1)),
        jnp.maximum(pltpu.roll(y, m - wp, 1), pltpu.roll(y, m - wp - 1, 1)))
    return jnp.dot(wmax, sel_ref[...], preferred_element_type=jnp.float32)


def _make_encoder_kernel(metas):
    def kernel(*refs):
        x_ref = refs[0]
        w_refs = refs[1:9]        # 8 x (9, Cout, Cin)
        gb_refs = refs[9:17]      # 8 x (2, Cout, 1)   [gamma; beta]
        mask_refs = refs[17:21]   # 4 x (1, M_s)
        sel_refs = refs[21:24]    # 3 x (M_s, M_{s+1})
        out_refs = refs[24:28]    # 4 x (C_s, M_s)

        cur = x_ref[...]
        blk = 0
        for s in range(4):
            meta = metas[s]
            mask = mask_refs[s][...]
            for _ in range(2):                      # conv{s}_1, conv{s}_2
                cur = _conv_bn_relu(cur, w_refs[blk], gb_refs[blk], mask, meta)
                blk += 1
            out_refs[s][...] = cur                  # conv{s}_2 feature map
            if s < 3:
                cur = _maxpool_to_next(cur, sel_refs[s], meta)
    return kernel


# ---------------------------------------------------------------------------
# Wrapper
# ---------------------------------------------------------------------------
def _full_spec(shape):
    rank = len(shape)

    def index_map(i):
        return (0,) * rank

    return pl.BlockSpec(shape, index_map)


@jax.jit
def encoder_forward(x_nchw, params):
    """Forward of the PyTorch Encoder.  Returns (conv1_2, conv2_2, conv3_2,
    conv4_2) in NCHW, using training-mode BatchNorm batch statistics."""
    n, cin0, h0, w0 = x_nchw.shape
    metas = _stage_metas(n, h0, w0)

    # ---- pack parameters into the kernel's channels-first layout -----------
    ws, gbs = [], []
    for blk, (w_oihw, gamma, beta) in enumerate(params):
        cout, cin = w_oihw.shape[0], w_oihw.shape[1]
        # (Cout, Cin, 3, 3) -> (9, Cout, Cin), tap index t = ky*3 + kx
        w9 = jnp.transpose(w_oihw, (2, 3, 0, 1)).reshape(9, cout, cin)
        if blk == 0 and cin < MIN_CIN:
            w9 = jnp.pad(w9, ((0, 0), (0, 0), (0, MIN_CIN - cin)))
        ws.append(w9.astype(jnp.float32))
        gbs.append(jnp.stack([gamma, beta]).reshape(2, cout, 1).astype(jnp.float32))
    channels = [params[2 * s][0].shape[0] for s in range(4)]

    # ---- network input -> zero-padded, lane-dense (Cin, M1) slab -----------
    m0 = metas[0]
    xp = jnp.pad(x_nchw, ((0, 0), (0, 0), (1, 1), (1, 1)))        # (N,C,Hp,Wp)
    flat = n * m0["Hp"] * m0["Wp"]
    slab = jnp.transpose(xp, (1, 0, 2, 3)).reshape(cin0, flat).astype(jnp.float32)
    slab = jnp.pad(slab, ((0, max(MIN_CIN, cin0) - cin0), (0, m0["M"] - flat)))

    # ---- static masks / pool-selection matrices (trace-time constants) -----
    masks = [jnp.asarray(_interior_mask(n, metas[s])) for s in range(4)]
    sels = [jnp.asarray(_pool_select(n, metas[s], metas[s + 1])) for s in range(3)]

    inputs = [slab] + ws + gbs + masks + sels
    out_shapes = tuple(
        jax.ShapeDtypeStruct((channels[s], metas[s]["M"]), jnp.float32)
        for s in range(4))

    outs = pl.pallas_call(
        _make_encoder_kernel(metas),
        out_shape=out_shapes,
        grid=(1,),
        in_specs=[_full_spec(a.shape) for a in inputs],
        out_specs=tuple(_full_spec(o.shape) for o in out_shapes),
        compiler_params=pltpu.CompilerParams(
            dimension_semantics=("arbitrary",),
            vmem_limit_bytes=32 * 1024 * 1024,
        ),
    )(*inputs)

    # ---- unpack (C, M) slabs back to NCHW (tiny layout-only glue) ----------
    feats = []
    for s in range(4):
        meta, c = metas[s], channels[s]
        f = outs[s][:, :n * meta["Hp"] * meta["Wp"]]
        f = f.reshape(c, n, meta["Hp"], meta["Wp"])[:, :, 1:meta["H"] + 1,
                                                    1:meta["W"] + 1]
        feats.append(jnp.transpose(f, (1, 0, 2, 3)))
    return tuple(feats)


# ---------------------------------------------------------------------------
# Parameters & pure-JAX reference (for validation)
# ---------------------------------------------------------------------------
def make_params(key, n0, in_ch=1):
    """Deterministic parameters for the 8 conv/BN blocks.

    Conv biases are intentionally omitted: with training-mode BatchNorm right
    after each conv, a per-channel bias is cancelled by the batch-mean
    subtraction and does not affect the forward output."""
    n1, n2, n3, n4 = n0, 2 * n0, 4 * n0, 8 * n0
    chans = [(in_ch, n1), (n1, n1), (n1, n2), (n2, n2),
             (n2, n3), (n3, n3), (n3, n4), (n4, n4)]
    keys = jax.random.split(key, len(chans))
    params = []
    for k, (cin, cout) in zip(keys, chans):
        kw, kg, kb = jax.random.split(k, 3)
        w = 0.1 * jax.random.normal(kw, (cout, cin, 3, 3), jnp.float32)
        gamma = 1.0 + 0.1 * jax.random.normal(kg, (cout,), jnp.float32)
        beta = 0.05 * jax.random.normal(kb, (cout,), jnp.float32)
        params.append((w, gamma, beta))
    return params


def reference_forward(x, params):
    """Pure-JAX/XLA reference with identical semantics (for validation)."""
    cur = x
    feats = []
    for s in range(4):
        for j in range(2):
            w, gamma, beta = params[2 * s + j]
            y = lax.conv_general_dilated(
                cur, w, window_strides=(1, 1), padding=((1, 1), (1, 1)),
                dimension_numbers=("NCHW", "OIHW", "NCHW"),
                precision=lax.Precision.HIGHEST)
            mean = jnp.mean(y, axis=(0, 2, 3), keepdims=True)
            var = jnp.mean(jnp.square(y - mean), axis=(0, 2, 3), keepdims=True)
            y = (y - mean) * lax.rsqrt(var + BN_EPS)
            cur = jnp.maximum(gamma.reshape(1, -1, 1, 1) * y
                              + beta.reshape(1, -1, 1, 1), 0.0)
        feats.append(cur)
        if s < 3:
            cur = lax.reduce_window(cur, -jnp.inf, lax.max,
                                    (1, 1, 2, 2), (1, 1, 2, 2), "VALID")
    return tuple(feats)


if __name__ == "__main__":
    key = jax.random.PRNGKey(0)
    kx, kp = jax.random.split(key)

    n0 = 4                                                   # n1..n4 = 4, 8, 16, 32
    x = jax.random.normal(kx, (2, 1, 16, 16), jnp.float32)   # NCHW, 1 input channel
    params = make_params(kp, n0)

    outs = jax.block_until_ready(encoder_forward(x, params))

    assert outs[0].shape == (2, 4, 16, 16)
    assert outs[1].shape == (2, 8, 8, 8)
    assert outs[2].shape == (2, 16, 4, 4)
    assert outs[3].shape == (2, 32, 2, 2)
    assert all(o.dtype == jnp.float32 for o in outs)

    # Numerical parity with the pure-JAX reference.  Tolerance is loose enough
    # for MXU f32-emulation rounding, tight enough to catch any structural /
    # indexing error (those produce O(0.1+) differences).
    refs = reference_forward(x, params)
    for o, r in zip(outs, refs):
        err = float(jnp.max(jnp.abs(o - r)))
        assert err < 1e-2, f"mismatch vs reference: max abs err = {err}"

    print("KERNEL_OK")
</pallas_src>

<mosaic_0001>
module attributes {stable_mosaic.version = 11 : i64} {
  func.func @kernel(%arg0: i32, %arg1: memref<8x768xf32, #tpu.memory_space<vmem>>, %arg2: memref<9x4x8xf32, #tpu.memory_space<vmem>>, %arg3: memref<9x4x4xf32, #tpu.memory_space<vmem>>, %arg4: memref<9x8x4xf32, #tpu.memory_space<vmem>>, %arg5: memref<9x8x8xf32, #tpu.memory_space<vmem>>, %arg6: memref<9x16x8xf32, #tpu.memory_space<vmem>>, %arg7: memref<9x16x16xf32, #tpu.memory_space<vmem>>, %arg8: memref<9x32x16xf32, #tpu.memory_space<vmem>>, %arg9: memref<9x32x32xf32, #tpu.memory_space<vmem>>, %arg10: memref<2x4x1xf32, #tpu.memory_space<vmem>>, %arg11: memref<2x4x1xf32, #tpu.memory_space<vmem>>, %arg12: memref<2x8x1xf32, #tpu.memory_space<vmem>>, %arg13: memref<2x8x1xf32, #tpu.memory_space<vmem>>, %arg14: memref<2x16x1xf32, #tpu.memory_space<vmem>>, %arg15: memref<2x16x1xf32, #tpu.memory_space<vmem>>, %arg16: memref<2x32x1xf32, #tpu.memory_space<vmem>>, %arg17: memref<2x32x1xf32, #tpu.memory_space<vmem>>, %arg18: memref<1x768xf32, #tpu.memory_space<vmem>>, %arg19: memref<1x256xf32, #tpu.memory_space<vmem>>, %arg20: memref<1x128xf32, #tpu.memory_space<vmem>>, %arg21: memref<1x128xf32, #tpu.memory_space<vmem>>, %arg22: memref<768x256xf32, #tpu.memory_space<vmem>>, %arg23: memref<256x128xf32, #tpu.memory_space<vmem>>, %arg24: memref<128x128xf32, #tpu.memory_space<vmem>>, %arg25: memref<4x768xf32, #tpu.memory_space<vmem>>, %arg26: memref<8x256xf32, #tpu.memory_space<vmem>>, %arg27: memref<16x128xf32, #tpu.memory_space<vmem>>, %arg28: memref<32x128xf32, #tpu.memory_space<vmem>>) attributes {dimension_semantics = [#tpu.dimension_semantics<arbitrary>], iteration_bounds = array<i64: 1>, scalar_prefetch = 0 : i64, scratch_operands = 0 : i64, tpu.core_type = #tpu.core_type<tc>, window_params = [{pipeline_mode = #tpu.pipeline_mode<synchronous>, transform_indices = @transform_0, window_bounds = array<i64: 8, 768>}, {pipeline_mode = #tpu.pipeline_mode<synchronous>, transform_indices = @transform_1, window_bounds = array<i64: 9, 4, 8>}, {pipeline_mode = #tpu.pipeline_mode<synchronous>, transform_indices = @transform_2, window_bounds = array<i64: 9, 4, 4>}, {pipeline_mode = #tpu.pipeline_mode<synchronous>, transform_indices = @transform_3, window_bounds = array<i64: 9, 8, 4>}, {pipeline_mode = #tpu.pipeline_mode<synchronous>, transform_indices = @transform_4, window_bounds = array<i64: 9, 8, 8>}, {pipeline_mode = #tpu.pipeline_mode<synchronous>, transform_indices = @transform_5, window_bounds = array<i64: 9, 16, 8>}, {pipeline_mode = #tpu.pipeline_mode<synchronous>, transform_indices = @transform_6, window_bounds = array<i64: 9, 16, 16>}, {pipeline_mode = #tpu.pipeline_mode<synchronous>, transform_indices = @transform_7, window_bounds = array<i64: 9, 32, 16>}, {pipeline_mode = #tpu.pipeline_mode<synchronous>, transform_indices = @transform_8, window_bounds = array<i64: 9, 32, 32>}, {pipeline_mode = #tpu.pipeline_mode<synchronous>, transform_indices = @transform_9, window_bounds = array<i64: 2, 4, 1>}, {pipeline_mode = #tpu.pipeline_mode<synchronous>, transform_indices = @transform_10, window_bounds = array<i64: 2, 4, 1>}, {pipeline_mode = #tpu.pipeline_mode<synchronous>, transform_indices = @transform_11, window_bounds = array<i64: 2, 8, 1>}, {pipeline_mode = #tpu.pipeline_mode<synchronous>, transform_indices = @transform_12, window_bounds = array<i64: 2, 8, 1>}, {pipeline_mode = #tpu.pipeline_mode<synchronous>, transform_indices = @transform_13, window_bounds = array<i64: 2, 16, 1>}, {pipeline_mode = #tpu.pipeline_mode<synchronous>, transform_indices = @transform_14, window_bounds = array<i64: 2, 16, 1>}, {pipeline_mode = #tpu.pipeline_mode<synchronous>, transform_indices = @transform_15, window_bounds = array<i64: 2, 32, 1>}, {pipeline_mode = #tpu.pipeline_mode<synchronous>, transform_indices = @transform_16, window_bounds = array<i64: 2, 32, 1>}, {pipeline_mode = #tpu.pipeline_mode<synchronous>, transform_indices = @transform_17, window_bounds = array<i64: 1, 768>}, {pipeline_mode = #tpu.pipeline_mode<synchronous>, transform_indices = @transform_18, window_bounds = array<i64: 1, 256>}, {pipeline_mode = #tpu.pipeline_mode<synchronous>, transform_indices = @transform_19, window_bounds = array<i64: 1, 128>}, {pipeline_mode = #tpu.pipeline_mode<synchronous>, transform_indices = @transform_20, window_bounds = array<i64: 1, 128>}, {pipeline_mode = #tpu.pipeline_mode<synchronous>, transform_indices = @transform_21, window_bounds = array<i64: 768, 256>}, {pipeline_mode = #tpu.pipeline_mode<synchronous>, transform_indices = @transform_22, window_bounds = array<i64: 256, 128>}, {pipeline_mode = #tpu.pipeline_mode<synchronous>, transform_indices = @transform_23, window_bounds = array<i64: 128, 128>}, {pipeline_mode = #tpu.pipeline_mode<synchronous>, transform_indices = @transform_24, window_bounds = array<i64: 4, 768>}, {pipeline_mode = #tpu.pipeline_mode<synchronous>, transform_indices = @transform_25, window_bounds = array<i64: 8, 256>}, {pipeline_mode = #tpu.pipeline_mode<synchronous>, transform_indices = @transform_26, window_bounds = array<i64: 16, 128>}, {pipeline_mode = #tpu.pipeline_mode<synchronous>, transform_indices = @transform_27, window_bounds = array<i64: 32, 128>}]} {
    %c0 = arith.constant 0 : index
    %c0_0 = arith.constant 0 : index
    %0 = vector.load %arg1[%c0, %c0_0] : memref<8x768xf32, #tpu.memory_space<vmem>>, vector<8x768xf32>
    %c0_1 = arith.constant 0 : index
    %c0_2 = arith.constant 0 : index
    %1 = vector.load %arg18[%c0_1, %c0_2] : memref<1x768xf32, #tpu.memory_space<vmem>>, vector<1x768xf32>
    %cst = arith.constant 0.000000e+00 : f32
    %2 = vector.broadcast %cst : f32 to vector<4x768xf32>
    %c19_i32 = arith.constant 19 : i32
    %3 = tpu.dynamic_rotate %0 by %c19_i32 dim 1 : vector<8x768xf32>, i32 -> vector<8x768xf32>
    %c0_3 = arith.constant 0 : index
    %c0_4 = arith.constant 0 : index
    %c0_5 = arith.constant 0 : index
    %4 = vector.load %arg2[%c0_3, %c0_4, %c0_5] : memref<9x4x8xf32, #tpu.memory_space<vmem>>, vector<1x4x8xf32>
    %5 = vector.shape_cast %4 : vector<1x4x8xf32> to vector<4x8xf32>
    %cst_6 = arith.constant dense<0.000000e+00> : vector<4x768xf32>
    %6 = tpu.matmul %5, %3, %cst_6 {dimension_numbers = #tpu.dot_dimension_numbers<[1], [0], [0], [1], [0, 0, 1, 1], [], []>} : vector<4x8xf32>, vector<8x768xf32>, vector<4x768xf32> -> vector<4x768xf32>
    %7 = arith.addf %2, %6 : vector<4x768xf32>
    %c18_i32 = arith.constant 18 : i32
    %8 = tpu.dynamic_rotate %0 by %c18_i32 dim 1 : vector<8x768xf32>, i32 -> vector<8x768xf32>
    %c1 = arith.constant 1 : index
    %c0_7 = arith.constant 0 : index
    %c0_8 = arith.constant 0 : index
    %9 = vector.load %arg2[%c1, %c0_7, %c0_8] : memref<9x4x8xf32, #tpu.memory_space<vmem>>, vector<1x4x8xf32>
    %10 = vector.shape_cast %9 : vector<1x4x8xf32> to vector<4x8xf32>
    %cst_9 = arith.constant dense<0.000000e+00> : vector<4x768xf32>
    %11 = tpu.matmul %10, %8, %cst_9 {dimension_numbers = #tpu.dot_dimension_numbers<[1], [0], [0], [1], [0, 0, 1, 1], [], []>} : vector<4x8xf32>, vector<8x768xf32>, vector<4x768xf32> -> vector<4x768xf32>
    %12 = arith.addf %7, %11 : vector<4x768xf32>
    %c17_i32 = arith.constant 17 : i32
    %13 = tpu.dynamic_rotate %0 by %c17_i32 dim 1 : vector<8x768xf32>, i32 -> vector<8x768xf32>
    %c2 = arith.constant 2 : index
    %c0_10 = arith.constant 0 : index
    %c0_11 = arith.constant 0 : index
    %14 = vector.load %arg2[%c2, %c0_10, %c0_11] : memref<9x4x8xf32, #tpu.memory_space<vmem>>, vector<1x4x8xf32>
    %15 = vector.shape_cast %14 : vector<1x4x8xf32> to vector<4x8xf32>
    %cst_12 = arith.constant dense<0.000000e+00> : vector<4x768xf32>
    %16 = tpu.matmul %15, %13, %cst_12 {dimension_numbers = #tpu.dot_dimension_numbers<[1], [0], [0], [1], [0, 0, 1, 1], [], []>} : vector<4x8xf32>, vector<8x768xf32>, vector<4x768xf32> -> vector<4x768xf32>
    %17 = arith.addf %12, %16 : vector<4x768xf32>
    %c1_i32 = arith.constant 1 : i32
    %18 = tpu.dynamic_rotate %0 by %c1_i32 dim 1 : vector<8x768xf32>, i32 -> vector<8x768xf32>
    %c3 = arith.constant 3 : index
    %c0_13 = arith.constant 0 : index
    %c0_14 = arith.constant 0 : index
    %19 = vector.load %arg2[%c3, %c0_13, %c0_14] : memref<9x4x8xf32, #tpu.memory_space<vmem>>, vector<1x4x8xf32>
    %20 = vector.shape_cast %19 : vector<1x4x8xf32> to vector<4x8xf32>
    %cst_15 = arith.constant dense<0.000000e+00> : vector<4x768xf32>
    %21 = tpu.matmul %20, %18, %cst_15 {dimension_numbers = #tpu.dot_dimension_numbers<[1], [0], [0], [1], [0, 0, 1, 1], [], []>} : vector<4x8xf32>, vector<8x768xf32>, vector<4x768xf32> -> vector<4x768xf32>
    %22 = arith.addf %17, %21 : vector<4x768xf32>
    %c4 = arith.constant 4 : index
    %c0_16 = arith.constant 0 : index
    %c0_17 = arith.constant 0 : index
    %23 = vector.load %arg2[%c4, %c0_16, %c0_17] : memref<9x4x8xf32, #tpu.memory_space<vmem>>, vector<1x4x8xf32>
    %24 = vector.shape_cast %23 : vector<1x4x8xf32> to vector<4x8xf32>
    %cst_18 = arith.constant dense<0.000000e+00> : vector<4x768xf32>
    %25 = tpu.matmul %24, %0, %cst_18 {dimension_numbers = #tpu.dot_dimension_numbers<[1], [0], [0], [1], [0, 0, 1, 1], [], []>} : vector<4x8xf32>, vector<8x768xf32>, vector<4x768xf32> -> vector<4x768xf32>
    %26 = arith.addf %22, %25 : vector<4x768xf32>
    %c767_i32 = arith.constant 767 : i32
    %27 = tpu.dynamic_rotate %0 by %c767_i32 dim 1 : vector<8x768xf32>, i32 -> vector<8x768xf32>
    %c5 = arith.constant 5 : index
    %c0_19 = arith.constant 0 : index
    %c0_20 = arith.constant 0 : index
    %28 = vector.load %arg2[%c5, %c0_19, %c0_20] : memref<9x4x8xf32, #tpu.memory_space<vmem>>, vector<1x4x8xf32>
    %29 = vector.shape_cast %28 : vector<1x4x8xf32> to vector<4x8xf32>
    %cst_21 = arith.constant dense<0.000000e+00> : vector<4x768xf32>
    %30 = tpu.matmul %29, %27, %cst_21 {dimension_numbers = #tpu.dot_dimension_numbers<[1], [0], [0], [1], [0, 0, 1, 1], [], []>} : vector<4x8xf32>, vector<8x768xf32>, vector<4x768xf32> -> vector<4x768xf32>
    %31 = arith.addf %26, %30 : vector<4x768xf32>
    %c751_i32 = arith.constant 751 : i32
    %32 = tpu.dynamic_rotate %0 by %c751_i32 dim 1 : vector<8x768xf32>, i32 -> vector<8x768xf32>
    %c6 = arith.constant 6 : index
    %c0_22 = arith.constant 0 : index
    %c0_23 = arith.constant 0 : index
    %33 = vector.load %arg2[%c6, %c0_22, %c0_23] : memref<9x4x8xf32, #tpu.memory_space<vmem>>, vector<1x4x8xf32>
    %34 = vector.shape_cast %33 : vector<1x4x8xf32> to vector<4x8xf32>
    %cst_24 = arith.constant dense<0.000000e+00> : vector<4x768xf32>
    %35 = tpu.matmul %34, %32, %cst_24 {dimension_numbers = #tpu.dot_dimension_numbers<[1], [0], [0], [1], [0, 0, 1, 1], [], []>} : vector<4x8xf32>, vector<8x768xf32>, vector<4x768xf32> -> vector<4x768xf32>
    %36 = arith.addf %31, %35 : vector<4x768xf32>
    %c750_i32 = arith.constant 750 : i32
    %37 = tpu.dynamic_rotate %0 by %c750_i32 dim 1 : vector<8x768xf32>, i32 -> vector<8x768xf32>
    %c7 = arith.constant 7 : index
    %c0_25 = arith.constant 0 : index
    %c0_26 = arith.constant 0 : index
    %38 = vector.load %arg2[%c7, %c0_25, %c0_26] : memref<9x4x8xf32, #tpu.memory_space<vmem>>, vector<1x4x8xf32>
    %39 = vector.shape_cast %38 : vector<1x4x8xf32> to vector<4x8xf32>
    %cst_27 = arith.constant dense<0.000000e+00> : vector<4x768xf32>
    %40 = tpu.matmul %39, %37, %cst_27 {dimension_numbers = #tpu.dot_dimension_numbers<[1], [0], [0], [1], [0, 0, 1, 1], [], []>} : vector<4x8xf32>, vector<8x768xf32>, vector<4x768xf32> -> vector<4x768xf32>
    %41 = arith.addf %36, %40 : vector<4x768xf32>
    %c749_i32 = arith.constant 749 : i32
    %42 = tpu.dynamic_rotate %0 by %c749_i32 dim 1 : vector<8x768xf32>, i32 -> vector<8x768xf32>
    %c8 = arith.constant 8 : index
    %c0_28 = arith.constant 0 : index
    %c0_29 = arith.constant 0 : index
    %43 = vector.load %arg2[%c8, %c0_28, %c0_29] : memref<9x4x8xf32, #tpu.memory_space<vmem>>, vector<1x4x8xf32>
    %44 = vector.shape_cast %43 : vector<1x4x8xf32> to vector<4x8xf32>
    %cst_30 = arith.constant dense<0.000000e+00> : vector<4x768xf32>
    %45 = tpu.matmul %44, %42, %cst_30 {dimension_numbers = #tpu.dot_dimension_numbers<[1], [0], [0], [1], [0, 0, 1, 1], [], []>} : vector<4x8xf32>, vector<8x768xf32>, vector<4x768xf32> -> vector<4x768xf32>
    %46 = arith.addf %41, %45 : vector<4x768xf32>
    %47 = vector.broadcast %1 : vector<1x768xf32> to vector<4x768xf32>
    %48 = arith.mulf %46, %47 : vector<4x768xf32>
    %cst_31 = arith.constant dense<0.000000e+00> : vector<4xf32>
    %49 = vector.multi_reduction <add>, %48, %cst_31 [1] : vector<4x768xf32> to vector<4xf32>
    %50 = vector.shape_cast %49 : vector<4xf32> to vector<4x1xf32>
    %cst_32 = arith.constant 0.001953125 : f32
    %51 = vector.broadcast %cst_32 : f32 to vector<4x1xf32>
    %52 = arith.mulf %50, %51 : vector<4x1xf32>
    %53 = vector.broadcast %52 : vector<4x1xf32> to vector<4x768xf32>
    %54 = arith.subf %46, %53 : vector<4x768xf32>
    %55 = arith.mulf %54, %54 : vector<4x768xf32>
    %56 = vector.broadcast %1 : vector<1x768xf32> to vector<4x768xf32>
    %57 = arith.mulf %55, %56 : vector<4x768xf32>
    %cst_33 = arith.constant dense<0.000000e+00> : vector<4xf32>
    %58 = vector.multi_reduction <add>, %57, %cst_33 [1] : vector<4x768xf32> to vector<4xf32>
    %59 = vector.shape_cast %58 : vector<4xf32> to vector<4x1xf32>
    %cst_34 = arith.constant 0.001953125 : f32
    %60 = vector.broadcast %cst_34 : f32 to vector<4x1xf32>
    %61 = arith.mulf %59, %60 : vector<4x1xf32>
    %c0_35 = arith.constant 0 : index
    %c0_36 = arith.constant 0 : index
    %c0_37 = arith.constant 0 : index
    %62 = vector.load %arg10[%c0_35, %c0_36, %c0_37] : memref<2x4x1xf32, #tpu.memory_space<vmem>>, vector<1x4x1xf32>
    %63 = vector.shape_cast %62 : vector<1x4x1xf32> to vector<4x1xf32>
    %cst_38 = arith.constant 9.99999974E-6 : f32
    %64 = vector.broadcast %cst_38 : f32 to vector<4x1xf32>
    %65 = arith.addf %61, %64 : vector<4x1xf32>
    %66 = math.rsqrt %65 : vector<4x1xf32>
    %67 = vector.broadcast %66 : vector<4x1xf32> to vector<4x768xf32>
    %68 = arith.mulf %54, %67 : vector<4x768xf32>
    %69 = vector.broadcast %63 : vector<4x1xf32> to vector<4x768xf32>
    %70 = arith.mulf %69, %68 : vector<4x768xf32>
    %c1_39 = arith.constant 1 : index
    %c0_40 = arith.constant 0 : index
    %c0_41 = arith.constant 0 : index
    %71 = vector.load %arg10[%c1_39, %c0_40, %c0_41] : memref<2x4x1xf32, #tpu.memory_space<vmem>>, vector<1x4x1xf32>
    %72 = vector.shape_cast %71 : vector<1x4x1xf32> to vector<4x1xf32>
    %73 = vector.broadcast %72 : vector<4x1xf32> to vector<4x768xf32>
    %74 = arith.addf %70, %73 : vector<4x768xf32>
    %cst_42 = arith.constant 0.000000e+00 : f32
    %75 = vector.broadcast %cst_42 : f32 to vector<4x768xf32>
    %76 = arith.maximumf %74, %75 : vector<4x768xf32>
    %77 = vector.broadcast %1 : vector<1x768xf32> to vector<4x768xf32>
    %78 = arith.mulf %76, %77 : vector<4x768xf32>
    %cst_43 = arith.constant 0.000000e+00 : f32
    %79 = vector.broadcast %cst_43 : f32 to vector<4x768xf32>
    %c19_i32_44 = arith.constant 19 : i32
    %80 = tpu.dynamic_rotate %78 by %c19_i32_44 dim 1 : vector<4x768xf32>, i32 -> vector<4x768xf32>
    %c0_45 = arith.constant 0 : index
    %c0_46 = arith.constant 0 : index
    %c0_47 = arith.constant 0 : index
    %81 = vector.load %arg3[%c0_45, %c0_46, %c0_47] : memref<9x4x4xf32, #tpu.memory_space<vmem>>, vector<1x4x4xf32>
    %82 = vector.shape_cast %81 : vector<1x4x4xf32> to vector<4x4xf32>
    %cst_48 = arith.constant dense<0.000000e+00> : vector<4x768xf32>
    %83 = tpu.matmul %82, %80, %cst_48 {dimension_numbers = #tpu.dot_dimension_numbers<[1], [0], [0], [1], [0, 0, 1, 1], [], []>} : vector<4x4xf32>, vector<4x768xf32>, vector<4x768xf32> -> vector<4x768xf32>
    %84 = arith.addf %79, %83 : vector<4x768xf32>
    %c18_i32_49 = arith.constant 18 : i32
    %85 = tpu.dynamic_rotate %78 by %c18_i32_49 dim 1 : vector<4x768xf32>, i32 -> vector<4x768xf32>
    %c1_50 = arith.constant 1 : index
    %c0_51 = arith.constant 0 : index
    %c0_52 = arith.constant 0 : index
    %86 = vector.load %arg3[%c1_50, %c0_51, %c0_52] : memref<9x4x4xf32, #tpu.memory_space<vmem>>, vector<1x4x4xf32>
    %87 = vector.shape_cast %86 : vector<1x4x4xf32> to vector<4x4xf32>
    %cst_53 = arith.constant dense<0.000000e+00> : vector<4x768xf32>
    %88 = tpu.matmul %87, %85, %cst_53 {dimension_numbers = #tpu.dot_dimension_numbers<[1], [0], [0], [1], [0, 0, 1, 1], [], []>} : vector<4x4xf32>, vector<4x768xf32>, vector<4x768xf32> -> vector<4x768xf32>
    %89 = arith.addf %84, %88 : vector<4x768xf32>
    %c17_i32_54 = arith.constant 17 : i32
    %90 = tpu.dynamic_rotate %78 by %c17_i32_54 dim 1 : vector<4x768xf32>, i32 -> vector<4x768xf32>
    %c2_55 = arith.constant 2 : index
    %c0_56 = arith.constant 0 : index
    %c0_57 = arith.constant 0 : index
    %91 = vector.load %arg3[%c2_55, %c0_56, %c0_57] : memref<9x4x4xf32, #tpu.memory_space<vmem>>, vector<1x4x4xf32>
    %92 = vector.shape_cast %91 : vector<1x4x4xf32> to vector<4x4xf32>
    %cst_58 = arith.constant dense<0.000000e+00> : vector<4x768xf32>
    %93 = tpu.matmul %92, %90, %cst_58 {dimension_numbers = #tpu.dot_dimension_numbers<[1], [0], [0], [1], [0, 0, 1, 1], [], []>} : vector<4x4xf32>, vector<4x768xf32>, vector<4x768xf32> -> vector<4x768xf32>
    %94 = arith.addf %89, %93 : vector<4x768xf32>
    %c1_i32_59 = arith.constant 1 : i32
    %95 = tpu.dynamic_rotate %78 by %c1_i32_59 dim 1 : vector<4x768xf32>, i32 -> vector<4x768xf32>
    %c3_60 = arith.constant 3 : index
    %c0_61 = arith.constant 0 : index
    %c0_62 = arith.constant 0 : index
    %96 = vector.load %arg3[%c3_60, %c0_61, %c0_62] : memref<9x4x4xf32, #tpu.memory_space<vmem>>, vector<1x4x4xf32>
    %97 = vector.shape_cast %96 : vector<1x4x4xf32> to vector<4x4xf32>
    %cst_63 = arith.constant dense<0.000000e+00> : vector<4x768xf32>
    %98 = tpu.matmul %97, %95, %cst_63 {dimension_numbers = #tpu.dot_dimension_numbers<[1], [0], [0], [1], [0, 0, 1, 1], [], []>} : vector<4x4xf32>, vector<4x768xf32>, vector<4x768xf32> -> vector<4x768xf32>
    %99 = arith.addf %94, %98 : vector<4x768xf32>
    %c4_64 = arith.constant 4 : index
    %c0_65 = arith.constant 0 : index
    %c0_66 = arith.constant 0 : index
    %100 = vector.load %arg3[%c4_64, %c0_65, %c0_66] : memref<9x4x4xf32, #tpu.memory_space<vmem>>, vector<1x4x4xf32>
    %101 = vector.shape_cast %100 : vector<1x4x4xf32> to vector<4x4xf32>
    %cst_67 = arith.constant dense<0.000000e+00> : vector<4x768xf32>
    %102 = tpu.matmul %101, %78, %cst_67 {dimension_numbers = #tpu.dot_dimension_numbers<[1], [0], [0], [1], [0, 0, 1, 1], [], []>} : vector<4x4xf32>, vector<4x768xf32>, vector<4x768xf32> -> vector<4x768xf32>
    %103 = arith.addf %99, %102 : vector<4x768xf32>
    %c767_i32_68 = arith.constant 767 : i32
    %104 = tpu.dynamic_rotate %78 by %c767_i32_68 dim 1 : vector<4x768xf32>, i32 -> vector<4x768xf32>
    %c5_69 = arith.constant 5 : index
    %c0_70 = arith.constant 0 : index
    %c0_71 = arith.constant 0 : index
    %105 = vector.load %arg3[%c5_69, %c0_70, %c0_71] : memref<9x4x4xf32, #tpu.memory_space<vmem>>, vector<1x4x4xf32>
    %106 = vector.shape_cast %105 : vector<1x4x4xf32> to vector<4x4xf32>
    %cst_72 = arith.constant dense<0.000000e+00> : vector<4x768xf32>
    %107 = tpu.matmul %106, %104, %cst_72 {dimension_numbers = #tpu.dot_dimension_numbers<[1], [0], [0], [1], [0, 0, 1, 1], [], []>} : vector<4x4xf32>, vector<4x768xf32>, vector<4x768xf32> -> vector<4x768xf32>
    %108 = arith.addf %103, %107 : vector<4x768xf32>
    %c751_i32_73 = arith.constant 751 : i32
    %109 = tpu.dynamic_rotate %78 by %c751_i32_73 dim 1 : vector<4x768xf32>, i32 -> vector<4x768xf32>
    %c6_74 = arith.constant 6 : index
    %c0_75 = arith.constant 0 : index
    %c0_76 = arith.constant 0 : index
    %110 = vector.load %arg3[%c6_74, %c0_75, %c0_76] : memref<9x4x4xf32, #tpu.memory_space<vmem>>, vector<1x4x4xf32>
    %111 = vector.shape_cast %110 : vector<1x4x4xf32> to vector<4x4xf32>
    %cst_77 = arith.constant dense<0.000000e+00> : vector<4x768xf32>
    %112 = tpu.matmul %111, %109, %cst_77 {dimension_numbers = #tpu.dot_dimension_numbers<[1], [0], [0], [1], [0, 0, 1, 1], [], []>} : vector<4x4xf32>, vector<4x768xf32>, vector<4x768xf32> -> vector<4x768xf32>
    %113 = arith.addf %108, %112 : vector<4x768xf32>
    %c750_i32_78 = arith.constant 750 : i32
    %114 = tpu.dynamic_rotate %78 by %c750_i32_78 dim 1 : vector<4x768xf32>, i32 -> vector<4x768xf32>
    %c7_79 = arith.constant 7 : index
    %c0_80 = arith.constant 0 : index
    %c0_81 = arith.constant 0 : index
    %115 = vector.load %arg3[%c7_79, %c0_80, %c0_81] : memref<9x4x4xf32, #tpu.memory_space<vmem>>, vector<1x4x4xf32>
    %116 = vector.shape_cast %115 : vector<1x4x4xf32> to vector<4x4xf32>
    %cst_82 = arith.constant dense<0.000000e+00> : vector<4x768xf32>
    %117 = tpu.matmul %116, %114, %cst_82 {dimension_numbers = #tpu.dot_dimension_numbers<[1], [0], [0], [1], [0, 0, 1, 1], [], []>} : vector<4x4xf32>, vector<4x768xf32>, vector<4x768xf32> -> vector<4x768xf32>
    %118 = arith.addf %113, %117 : vector<4x768xf32>
    %c749_i32_83 = arith.constant 749 : i32
    %119 = tpu.dynamic_rotate %78 by %c749_i32_83 dim 1 : vector<4x768xf32>, i32 -> vector<4x768xf32>
    %c8_84 = arith.constant 8 : index
    %c0_85 = arith.constant 0 : index
    %c0_86 = arith.constant 0 : index
    %120 = vector.load %arg3[%c8_84, %c0_85, %c0_86] : memref<9x4x4xf32, #tpu.memory_space<vmem>>, vector<1x4x4xf32>
    %121 = vector.shape_cast %120 : vector<1x4x4xf32> to vector<4x4xf32>
    %cst_87 = arith.constant dense<0.000000e+00> : vector<4x768xf32>
    %122 = tpu.matmul %121, %119, %cst_87 {dimension_numbers = #tpu.dot_dimension_numbers<[1], [0], [0], [1], [0, 0, 1, 1], [], []>} : vector<4x4xf32>, vector<4x768xf32>, vector<4x768xf32> -> vector<4x768xf32>
    %123 = arith.addf %118, %122 : vector<4x768xf32>
    %124 = vector.broadcast %1 : vector<1x768xf32> to vector<4x768xf32>
    %125 = arith.mulf %123, %124 : vector<4x768xf32>
    %cst_88 = arith.constant dense<0.000000e+00> : vector<4xf32>
    %126 = vector.multi_reduction <add>, %125, %cst_88 [1] : vector<4x768xf32> to vector<4xf32>
    %127 = vector.shape_cast %126 : vector<4xf32> to vector<4x1xf32>
    %cst_89 = arith.constant 0.001953125 : f32
    %128 = vector.broadcast %cst_89 : f32 to vector<4x1xf32>
    %129 = arith.mulf %127, %128 : vector<4x1xf32>
    %130 = vector.broadcast %129 : vector<4x1xf32> to vector<4x768xf32>
    %131 = arith.subf %123, %130 : vector<4x768xf32>
    %132 = arith.mulf %131, %131 : vector<4x768xf32>
    %133 = vector.broadcast %1 : vector<1x768xf32> to vector<4x768xf32>
    %134 = arith.mulf %132, %133 : vector<4x768xf32>
    %cst_90 = arith.constant dense<0.000000e+00> : vector<4xf32>
    %135 = vector.multi_reduction <add>, %134, %cst_90 [1] : vector<4x768xf32> to vector<4xf32>
    %136 = vector.shape_cast %135 : vector<4xf32> to vector<4x1xf32>
    %cst_91 = arith.constant 0.001953125 : f32
    %137 = vector.broadcast %cst_91 : f32 to vector<4x1xf32>
    %138 = arith.mulf %136, %137 : vector<4x1xf32>
    %c0_92 = arith.constant 0 : index
    %c0_93 = arith.constant 0 : index
    %c0_94 = arith.constant 0 : index
    %139 = vector.load %arg11[%c0_92, %c0_93, %c0_94] : memref<2x4x1xf32, #tpu.memory_space<vmem>>, vector<1x4x1xf32>
    %140 = vector.shape_cast %139 : vector<1x4x1xf32> to vector<4x1xf32>
    %cst_95 = arith.constant 9.99999974E-6 : f32
    %141 = vector.broadcast %cst_95 : f32 to vector<4x1xf32>
    %142 = arith.addf %138, %141 : vector<4x1xf32>
    %143 = math.rsqrt %142 : vector<4x1xf32>
    %144 = vector.broadcast %143 : vector<4x1xf32> to vector<4x768xf32>
    %145 = arith.mulf %131, %144 : vector<4x768xf32>
    %146 = vector.broadcast %140 : vector<4x1xf32> to vector<4x768xf32>
    %147 = arith.mulf %146, %145 : vector<4x768xf32>
    %c1_96 = arith.constant 1 : index
    %c0_97 = arith.constant 0 : index
    %c0_98 = arith.constant 0 : index
    %148 = vector.load %arg11[%c1_96, %c0_97, %c0_98] : memref<2x4x1xf32, #tpu.memory_space<vmem>>, vector<1x4x1xf32>
    %149 = vector.shape_cast %148 : vector<1x4x1xf32> to vector<4x1xf32>
    %150 = vector.broadcast %149 : vector<4x1xf32> to vector<4x768xf32>
    %151 = arith.addf %147, %150 : vector<4x768xf32>
    %cst_99 = arith.constant 0.000000e+00 : f32
    %152 = vector.broadcast %cst_99 : f32 to vector<4x768xf32>
    %153 = arith.maximumf %151, %152 : vector<4x768xf32>
    %154 = vector.broadcast %1 : vector<1x768xf32> to vector<4x768xf32>
    %155 = arith.mulf %153, %154 : vector<4x768xf32>
    %c0_100 = arith.constant 0 : index
    %c0_101 = arith.constant 0 : index
    %156 = vector.load %arg25[%c0_100, %c0_101] : memref<4x768xf32, #tpu.memory_space<vmem>>, vector<4x768xf32>
    tpu.vector_store %arg25[%c0_100, %c0_101], %155 {strides = array<i32>} : memref<4x768xf32, #tpu.memory_space<vmem>>, vector<4x768xf32>,
    %c767_i32_102 = arith.constant 767 : i32
    %157 = tpu.dynamic_rotate %155 by %c767_i32_102 dim 1 : vector<4x768xf32>, i32 -> vector<4x768xf32>
    %158 = arith.maximumf %155, %157 : vector<4x768xf32>
    %c750_i32_103 = arith.constant 750 : i32
    %159 = tpu.dynamic_rotate %155 by %c750_i32_103 dim 1 : vector<4x768xf32>, i32 -> vector<4x768xf32>
    %c749_i32_104 = arith.constant 749 : i32
    %160 = tpu.dynamic_rotate %155 by %c749_i32_104 dim 1 : vector<4x768xf32>, i32 -> vector<4x768xf32>
    %161 = arith.maximumf %159, %160 : vector<4x768xf32>
    %162 = arith.maximumf %158, %161 : vector<4x768xf32>
    %c0_105 = arith.constant 0 : index
    %c0_106 = arith.constant 0 : index
    %163 = vector.load %arg22[%c0_105, %c0_106] : memref<768x256xf32, #tpu.memory_space<vmem>>, vector<768x256xf32>
    %cst_107 = arith.constant dense<0.000000e+00> : vector<4x256xf32>
    %164 = tpu.matmul %162, %163, %cst_107 {dimension_numbers = #tpu.dot_dimension_numbers<[1], [0], [0], [1], [0, 0, 1, 1], [], []>} : vector<4x768xf32>, vector<768x256xf32>, vector<4x256xf32> -> vector<4x256xf32>
    %c0_108 = arith.constant 0 : index
    %c0_109 = arith.constant 0 : index
    %165 = vector.load %arg19[%c0_108, %c0_109] : memref<1x256xf32, #tpu.memory_space<vmem>>, vector<1x256xf32>
    %cst_110 = arith.constant 0.000000e+00 : f32
    %166 = vector.broadcast %cst_110 : f32 to vector<8x256xf32>
    %c11_i32 = arith.constant 11 : i32
    %167 = tpu.dynamic_rotate %164 by %c11_i32 dim 1 : vector<4x256xf32>, i32 -> vector<4x256xf32>
    %c0_111 = arith.constant 0 : index
    %c0_112 = arith.constant 0 : index
    %c0_113 = arith.constant 0 : index
    %168 = vector.load %arg4[%c0_111, %c0_112, %c0_113] : memref<9x8x4xf32, #tpu.memory_space<vmem>>, vector<1x8x4xf32>
    %169 = vector.shape_cast %168 : vector<1x8x4xf32> to vector<8x4xf32>
    %cst_114 = arith.constant dense<0.000000e+00> : vector<8x256xf32>
    %170 = tpu.matmul %169, %167, %cst_114 {dimension_numbers = #tpu.dot_dimension_numbers<[1], [0], [0], [1], [0, 0, 1, 1], [], []>} : vector<8x4xf32>, vector<4x256xf32>, vector<8x256xf32> -> vector<8x256xf32>
    %171 = arith.addf %166, %170 : vector<8x256xf32>
    %c10_i32 = arith.constant 10 : i32
    %172 = tpu.dynamic_rotate %164 by %c10_i32 dim 1 : vector<4x256xf32>, i32 -> vector<4x256xf32>
    %c1_115 = arith.constant 1 : index
    %c0_116 = arith.constant 0 : index
    %c0_117 = arith.constant 0 : index
    %173 = vector.load %arg4[%c1_115, %c0_116, %c0_117] : memref<9x8x4xf32, #tpu.memory_space<vmem>>, vector<1x8x4xf32>
    %174 = vector.shape_cast %173 : vector<1x8x4xf32> to vector<8x4xf32>
    %cst_118 = arith.constant dense<0.000000e+00> : vector<8x256xf32>
    %175 = tpu.matmul %174, %172, %cst_118 {dimension_numbers = #tpu.dot_dimension_numbers<[1], [0], [0], [1], [0, 0, 1, 1], [], []>} : vector<8x4xf32>, vector<4x256xf32>, vector<8x256xf32> -> vector<8x256xf32>
    %176 = arith.addf %171, %175 : vector<8x256xf32>
    %c9_i32 = arith.constant 9 : i32
    %177 = tpu.dynamic_rotate %164 by %c9_i32 dim 1 : vector<4x256xf32>, i32 -> vector<4x256xf32>
    %c2_119 = arith.constant 2 : index
    %c0_120 = arith.constant 0 : index
    %c0_121 = arith.constant 0 : index
    %178 = vector.load %arg4[%c2_119, %c0_120, %c0_121] : memref<9x8x4xf32, #tpu.memory_space<vmem>>, vector<1x8x4xf32>
    %179 = vector.shape_cast %178 : vector<1x8x4xf32> to vector<8x4xf32>
    %cst_122 = arith.constant dense<0.000000e+00> : vector<8x256xf32>
    %180 = tpu.matmul %179, %177, %cst_122 {dimension_numbers = #tpu.dot_dimension_numbers<[1], [0], [0], [1], [0, 0, 1, 1], [], []>} : vector<8x4xf32>, vector<4x256xf32>, vector<8x256xf32> -> vector<8x256xf32>
    %181 = arith.addf %176, %180 : vector<8x256xf32>
    %c1_i32_123 = arith.constant 1 : i32
    %182 = tpu.dynamic_rotate %164 by %c1_i32_123 dim 1 : vector<4x256xf32>, i32 -> vector<4x256xf32>
    %c3_124 = arith.constant 3 : index
    %c0_125 = arith.constant 0 : index
    %c0_126 = arith.constant 0 : index
    %183 = vector.load %arg4[%c3_124, %c0_125, %c0_126] : memref<9x8x4xf32, #tpu.memory_space<vmem>>, vector<1x8x4xf32>
    %184 = vector.shape_cast %183 : vector<1x8x4xf32> to vector<8x4xf32>
    %cst_127 = arith.constant dense<0.000000e+00> : vector<8x256xf32>
    %185 = tpu.matmul %184, %182, %cst_127 {dimension_numbers = #tpu.dot_dimension_numbers<[1], [0], [0], [1], [0, 0, 1, 1], [], []>} : vector<8x4xf32>, vector<4x256xf32>, vector<8x256xf32> -> vector<8x256xf32>
    %186 = arith.addf %181, %185 : vector<8x256xf32>
    %c4_128 = arith.constant 4 : index
    %c0_129 = arith.constant 0 : index
    %c0_130 = arith.constant 0 : index
    %187 = vector.load %arg4[%c4_128, %c0_129, %c0_130] : memref<9x8x4xf32, #tpu.memory_space<vmem>>, vector<1x8x4xf32>
    %188 = vector.shape_cast %187 : vector<1x8x4xf32> to vector<8x4xf32>
    %cst_131 = arith.constant dense<0.000000e+00> : vector<8x256xf32>
    %189 = tpu.matmul %188, %164, %cst_131 {dimension_numbers = #tpu.dot_dimension_numbers<[1], [0], [0], [1], [0, 0, 1, 1], [], []>} : vector<8x4xf32>, vector<4x256xf32>, vector<8x256xf32> -> vector<8x256xf32>
    %190 = arith.addf %186, %189 : vector<8x256xf32>
    %c255_i32 = arith.constant 255 : i32
    %191 = tpu.dynamic_rotate %164 by %c255_i32 dim 1 : vector<4x256xf32>, i32 -> vector<4x256xf32>
    %c5_132 = arith.constant 5 : index
    %c0_133 = arith.constant 0 : index
    %c0_134 = arith.constant 0 : index
    %192 = vector.load %arg4[%c5_132, %c0_133, %c0_134] : memref<9x8x4xf32, #tpu.memory_space<vmem>>, vector<1x8x4xf32>
    %193 = vector.shape_cast %192 : vector<1x8x4xf32> to vector<8x4xf32>
    %cst_135 = arith.constant dense<0.000000e+00> : vector<8x256xf32>
    %194 = tpu.matmul %193, %191, %cst_135 {dimension_numbers = #tpu.dot_dimension_numbers<[1], [0], [0], [1], [0, 0, 1, 1], [], []>} : vector<8x4xf32>, vector<4x256xf32>, vector<8x256xf32> -> vector<8x256xf32>
    %195 = arith.addf %190, %194 : vector<8x256xf32>
    %c247_i32 = arith.constant 247 : i32
    %196 = tpu.dynamic_rotate %164 by %c247_i32 dim 1 : vector<4x256xf32>, i32 -> vector<4x256xf32>
    %c6_136 = arith.constant 6 : index
    %c0_137 = arith.constant 0 : index
    %c0_138 = arith.constant 0 : index
    %197 = vector.load %arg4[%c6_136, %c0_137, %c0_138] : memref<9x8x4xf32, #tpu.memory_space<vmem>>, vector<1x8x4xf32>
    %198 = vector.shape_cast %197 : vector<1x8x4xf32> to vector<8x4xf32>
    %cst_139 = arith.constant dense<0.000000e+00> : vector<8x256xf32>
    %199 = tpu.matmul %198, %196, %cst_139 {dimension_numbers = #tpu.dot_dimension_numbers<[1], [0], [0], [1], [0, 0, 1, 1], [], []>} : vector<8x4xf32>, vector<4x256xf32>, vector<8x256xf32> -> vector<8x256xf32>
    %200 = arith.addf %195, %199 : vector<8x256xf32>
    %c246_i32 = arith.constant 246 : i32
    %201 = tpu.dynamic_rotate %164 by %c246_i32 dim 1 : vector<4x256xf32>, i32 -> vector<4x256xf32>
    %c7_140 = arith.constant 7 : index
    %c0_141 = arith.constant 0 : index
    %c0_142 = arith.constant 0 : index
    %202 = vector.load %arg4[%c7_140, %c0_141, %c0_142] : memref<9x8x4xf32, #tpu.memory_space<vmem>>, vector<1x8x4xf32>
    %203 = vector.shape_cast %202 : vector<1x8x4xf32> to vector<8x4xf32>
    %cst_143 = arith.constant dense<0.000000e+00> : vector<8x256xf32>
    %204 = tpu.matmul %203, %201, %cst_143 {dimension_numbers = #tpu.dot_dimension_numbers<[1], [0], [0], [1], [0, 0, 1, 1], [], []>} : vector<8x4xf32>, vector<4x256xf32>, vector<8x256xf32> -> vector<8x256xf32>
    %205 = arith.addf %200, %204 : vector<8x256xf32>
    %c245_i32 = arith.constant 245 : i32
    %206 = tpu.dynamic_rotate %164 by %c245_i32 dim 1 : vector<4x256xf32>, i32 -> vector<4x256xf32>
    %c8_144 = arith.constant 8 : index
    %c0_145 = arith.constant 0 : index
    %c0_146 = arith.constant 0 : index
    %207 = vector.load %arg4[%c8_144, %c0_145, %c0_146] : memref<9x8x4xf32, #tpu.memory_space<vmem>>, vector<1x8x4xf32>
    %208 = vector.shape_cast %207 : vector<1x8x4xf32> to vector<8x4xf32>
    %cst_147 = arith.constant dense<0.000000e+00> : vector<8x256xf32>
    %209 = tpu.matmul %208, %206, %cst_147 {dimension_numbers = #tpu.dot_dimension_numbers<[1], [0], [0], [1], [0, 0, 1, 1], [], []>} : vector<8x4xf32>, vector<4x256xf32>, vector<8x256xf32> -> vector<8x256xf32>
    %210 = arith.addf %205, %209 : vector<8x256xf32>
    %211 = vector.broadcast %165 : vector<1x256xf32> to vector<8x256xf32>
    %212 = arith.mulf %210, %211 : vector<8x256xf32>
    %cst_148 = arith.constant dense<0.000000e+00> : vector<8xf32>
    %213 = vector.multi_reduction <add>, %212, %cst_148 [1] : vector<8x256xf32> to vector<8xf32>
    %214 = vector.shape_cast %213 : vector<8xf32> to vector<8x1xf32>
    %cst_149 = arith.constant 7.812500e-03 : f32
    %215 = vector.broadcast %cst_149 : f32 to vector<8x1xf32>
    %216 = arith.mulf %214, %215 : vector<8x1xf32>
    %217 = vector.broadcast %216 : vector<8x1xf32> to vector<8x256xf32>
    %218 = arith.subf %210, %217 : vector<8x256xf32>
    %219 = arith.mulf %218, %218 : vector<8x256xf32>
    %220 = vector.broadcast %165 : vector<1x256xf32> to vector<8x256xf32>
    %221 = arith.mulf %219, %220 : vector<8x256xf32>
    %cst_150 = arith.constant dense<0.000000e+00> : vector<8xf32>
    %222 = vector.multi_reduction <add>, %221, %cst_150 [1] : vector<8x256xf32> to vector<8xf32>
    %223 = vector.shape_cast %222 : vector<8xf32> to vector<8x1xf32>
    %cst_151 = arith.constant 7.812500e-03 : f32
    %224 = vector.broadcast %cst_151 : f32 to vector<8x1xf32>
    %225 = arith.mulf %223, %224 : vector<8x1xf32>
    %c0_152 = arith.constant 0 : index
    %c0_153 = arith.constant 0 : index
    %c0_154 = arith.constant 0 : index
    %226 = vector.load %arg12[%c0_152, %c0_153, %c0_154] : memref<2x8x1xf32, #tpu.memory_space<vmem>>, vector<1x8x1xf32>
    %227 = vector.shape_cast %226 : vector<1x8x1xf32> to vector<8x1xf32>
    %cst_155 = arith.constant 9.99999974E-6 : f32
    %228 = vector.broadcast %cst_155 : f32 to vector<8x1xf32>
    %229 = arith.addf %225, %228 : vector<8x1xf32>
    %230 = math.rsqrt %229 : vector<8x1xf32>
    %231 = vector.broadcast %230 : vector<8x1xf32> to vector<8x256xf32>
    %232 = arith.mulf %218, %231 : vector<8x256xf32>
    %233 = vector.broadcast %227 : vector<8x1xf32> to vector<8x256xf32>
    %234 = arith.mulf %233, %232 : vector<8x256xf32>
    %c1_156 = arith.constant 1 : index
    %c0_157 = arith.constant 0 : index
    %c0_158 = arith.constant 0 : index
    %235 = vector.load %arg12[%c1_156, %c0_157, %c0_158] : memref<2x8x1xf32, #tpu.memory_space<vmem>>, vector<1x8x1xf32>
    %236 = vector.shape_cast %235 : vector<1x8x1xf32> to vector<8x1xf32>
    %237 = vector.broadcast %236 : vector<8x1xf32> to vector<8x256xf32>
    %238 = arith.addf %234, %237 : vector<8x256xf32>
    %cst_159 = arith.constant 0.000000e+00 : f32
    %239 = vector.broadcast %cst_159 : f32 to vector<8x256xf32>
    %240 = arith.maximumf %238, %239 : vector<8x256xf32>
    %241 = vector.broadcast %165 : vector<1x256xf32> to vector<8x256xf32>
    %242 = arith.mulf %240, %241 : vector<8x256xf32>
    %cst_160 = arith.constant 0.000000e+00 : f32
    %243 = vector.broadcast %cst_160 : f32 to vector<8x256xf32>
    %c11_i32_161 = arith.constant 11 : i32
    %244 = tpu.dynamic_rotate %242 by %c11_i32_161 dim 1 : vector<8x256xf32>, i32 -> vector<8x256xf32>
    %c0_162 = arith.constant 0 : index
    %c0_163 = arith.constant 0 : index
    %c0_164 = arith.constant 0 : index
    %245 = vector.load %arg5[%c0_162, %c0_163, %c0_164] : memref<9x8x8xf32, #tpu.memory_space<vmem>>, vector<1x8x8xf32>
    %246 = vector.shape_cast %245 : vector<1x8x8xf32> to vector<8x8xf32>
    %cst_165 = arith.constant dense<0.000000e+00> : vector<8x256xf32>
    %247 = tpu.matmul %246, %244, %cst_165 {dimension_numbers = #tpu.dot_dimension_numbers<[1], [0], [0], [1], [0, 0, 1, 1], [], []>} : vector<8x8xf32>, vector<8x256xf32>, vector<8x256xf32> -> vector<8x256xf32>
    %248 = arith.addf %243, %247 : vector<8x256xf32>
    %c10_i32_166 = arith.constant 10 : i32
    %249 = tpu.dynamic_rotate %242 by %c10_i32_166 dim 1 : vector<8x256xf32>, i32 -> vector<8x256xf32>
    %c1_167 = arith.constant 1 : index
    %c0_168 = arith.constant 0 : index
    %c0_169 = arith.constant 0 : index
    %250 = vector.load %arg5[%c1_167, %c0_168, %c0_169] : memref<9x8x8xf32, #tpu.memory_space<vmem>>, vector<1x8x8xf32>
    %251 = vector.shape_cast %250 : vector<1x8x8xf32> to vector<8x8xf32>
    %cst_170 = arith.constant dense<0.000000e+00> : vector<8x256xf32>
    %252 = tpu.matmul %251, %249, %cst_170 {dimension_numbers = #tpu.dot_dimension_numbers<[1], [0], [0], [1], [0, 0, 1, 1], [], []>} : vector<8x8xf32>, vector<8x256xf32>, vector<8x256xf32> -> vector<8x256xf32>
    %253 = arith.addf %248, %252 : vector<8x256xf32>
    %c9_i32_171 = arith.constant 9 : i32
    %254 = tpu.dynamic_rotate %242 by %c9_i32_171 dim 1 : vector<8x256xf32>, i32 -> vector<8x256xf32>
    %c2_172 = arith.constant 2 : index
    %c0_173 = arith.constant 0 : index
    %c0_174 = arith.constant 0 : index
    %255 = vector.load %arg5[%c2_172, %c0_173, %c0_174] : memref<9x8x8xf32, #tpu.memory_space<vmem>>, vector<1x8x8xf32>
    %256 = vector.shape_cast %255 : vector<1x8x8xf32> to vector<8x8xf32>
    %cst_175 = arith.constant dense<0.000000e+00> : vector<8x256xf32>
    %257 = tpu.matmul %256, %254, %cst_175 {dimension_numbers = #tpu.dot_dimension_numbers<[1], [0], [0], [1], [0, 0, 1, 1], [], []>} : vector<8x8xf32>, vector<8x256xf32>, vector<8x256xf32> -> vector<8x256xf32>
    %258 = arith.addf %253, %257 : vector<8x256xf32>
    %c1_i32_176 = arith.constant 1 : i32
    %259 = tpu.dynamic_rotate %242 by %c1_i32_176 dim 1 : vector<8x256xf32>, i32 -> vector<8x256xf32>
    %c3_177 = arith.constant 3 : index
    %c0_178 = arith.constant 0 : index
    %c0_179 = arith.constant 0 : index
    %260 = vector.load %arg5[%c3_177, %c0_178, %c0_179] : memref<9x8x8xf32, #tpu.memory_space<vmem>>, vector<1x8x8xf32>
    %261 = vector.shape_cast %260 : vector<1x8x8xf32> to vector<8x8xf32>
    %cst_180 = arith.constant dense<0.000000e+00> : vector<8x256xf32>
    %262 = tpu.matmul %261, %259, %cst_180 {dimension_numbers = #tpu.dot_dimension_numbers<[1], [0], [0], [1], [0, 0, 1, 1], [], []>} : vector<8x8xf32>, vector<8x256xf32>, vector<8x256xf32> -> vector<8x256xf32>
    %263 = arith.addf %258, %262 : vector<8x256xf32>
    %c4_181 = arith.constant 4 : index
    %c0_182 = arith.constant 0 : index
    %c0_183 = arith.constant 0 : index
    %264 = vector.load %arg5[%c4_181, %c0_182, %c0_183] : memref<9x8x8xf32, #tpu.memory_space<vmem>>, vector<1x8x8xf32>
    %265 = vector.shape_cast %264 : vector<1x8x8xf32> to vector<8x8xf32>
    %cst_184 = arith.constant dense<0.000000e+00> : vector<8x256xf32>
    %266 = tpu.matmul %265, %242, %cst_184 {dimension_numbers = #tpu.dot_dimension_numbers<[1], [0], [0], [1], [0, 0, 1, 1], [], []>} : vector<8x8xf32>, vector<8x256xf32>, vector<8x256xf32> -> vector<8x256xf32>
    %267 = arith.addf %263, %266 : vector<8x256xf32>
    %c255_i32_185 = arith.constant 255 : i32
    %268 = tpu.dynamic_rotate %242 by %c255_i32_185 dim 1 : vector<8x256xf32>, i32 -> vector<8x256xf32>
    %c5_186 = arith.constant 5 : index
    %c0_187 = arith.constant 0 : index
    %c0_188 = arith.constant 0 : index
    %269 = vector.load %arg5[%c5_186, %c0_187, %c0_188] : memref<9x8x8xf32, #tpu.memory_space<vmem>>, vector<1x8x8xf32>
    %270 = vector.shape_cast %269 : vector<1x8x8xf32> to vector<8x8xf32>
    %cst_189 = arith.constant dense<0.000000e+00> : vector<8x256xf32>
    %271 = tpu.matmul %270, %268, %cst_189 {dimension_numbers = #tpu.dot_dimension_numbers<[1], [0], [0], [1], [0, 0, 1, 1], [], []>} : vector<8x8xf32>, vector<8x256xf32>, vector<8x256xf32> -> vector<8x256xf32>
    %272 = arith.addf %267, %271 : vector<8x256xf32>
    %c247_i32_190 = arith.constant 247 : i32
    %273 = tpu.dynamic_rotate %242 by %c247_i32_190 dim 1 : vector<8x256xf32>, i32 -> vector<8x256xf32>
    %c6_191 = arith.constant 6 : index
    %c0_192 = arith.constant 0 : index
    %c0_193 = arith.constant 0 : index
    %274 = vector.load %arg5[%c6_191, %c0_192, %c0_193] : memref<9x8x8xf32, #tpu.memory_space<vmem>>, vector<1x8x8xf32>
    %275 = vector.shape_cast %274 : vector<1x8x8xf32> to vector<8x8xf32>
    %cst_194 = arith.constant dense<0.000000e+00> : vector<8x256xf32>
    %276 = tpu.matmul %275, %273, %cst_194 {dimension_numbers = #tpu.dot_dimension_numbers<[1], [0], [0], [1], [0, 0, 1, 1], [], []>} : vector<8x8xf32>, vector<8x256xf32>, vector<8x256xf32> -> vector<8x256xf32>
    %277 = arith.addf %272, %276 : vector<8x256xf32>
    %c246_i32_195 = arith.constant 246 : i32
    %278 = tpu.dynamic_rotate %242 by %c246_i32_195 dim 1 : vector<8x256xf32>, i32 -> vector<8x256xf32>
    %c7_196 = arith.constant 7 : index
    %c0_197 = arith.constant 0 : index
    %c0_198 = arith.constant 0 : index
    %279 = vector.load %arg5[%c7_196, %c0_197, %c0_198] : memref<9x8x8xf32, #tpu.memory_space<vmem>>, vector<1x8x8xf32>
    %280 = vector.shape_cast %279 : vector<1x8x8xf32> to vector<8x8xf32>
    %cst_199 = arith.constant dense<0.000000e+00> : vector<8x256xf32>
    %281 = tpu.matmul %280, %278, %cst_199 {dimension_numbers = #tpu.dot_dimension_numbers<[1], [0], [0], [1], [0, 0, 1, 1], [], []>} : vector<8x8xf32>, vector<8x256xf32>, vector<8x256xf32> -> vector<8x256xf32>
    %282 = arith.addf %277, %281 : vector<8x256xf32>
    %c245_i32_200 = arith.constant 245 : i32
    %283 = tpu.dynamic_rotate %242 by %c245_i32_200 dim 1 : vector<8x256xf32>, i32 -> vector<8x256xf32>
    %c8_201 = arith.constant 8 : index
    %c0_202 = arith.constant 0 : index
    %c0_203 = arith.constant 0 : index
    %284 = vector.load %arg5[%c8_201, %c0_202, %c0_203] : memref<9x8x8xf32, #tpu.memory_space<vmem>>, vector<1x8x8xf32>
    %285 = vector.shape_cast %284 : vector<1x8x8xf32> to vector<8x8xf32>
    %cst_204 = arith.constant dense<0.000000e+00> : vector<8x256xf32>
    %286 = tpu.matmul %285, %283, %cst_204 {dimension_numbers = #tpu.dot_dimension_numbers<[1], [0], [0], [1], [0, 0, 1, 1], [], []>} : vector<8x8xf32>, vector<8x256xf32>, vector<8x256xf32> -> vector<8x256xf32>
    %287 = arith.addf %282, %286 : vector<8x256xf32>
    %288 = vector.broadcast %165 : vector<1x256xf32> to vector<8x256xf32>
    %289 = arith.mulf %287, %288 : vector<8x256xf32>
    %cst_205 = arith.constant dense<0.000000e+00> : vector<8xf32>
    %290 = vector.multi_reduction <add>, %289, %cst_205 [1] : vector<8x256xf32> to vector<8xf32>
    %291 = vector.shape_cast %290 : vector<8xf32> to vector<8x1xf32>
    %cst_206 = arith.constant 7.812500e-03 : f32
    %292 = vector.broadcast %cst_206 : f32 to vector<8x1xf32>
    %293 = arith.mulf %291, %292 : vector<8x1xf32>
    %294 = vector.broadcast %293 : vector<8x1xf32> to vector<8x256xf32>
    %295 = arith.subf %287, %294 : vector<8x256xf32>
    %296 = arith.mulf %295, %295 : vector<8x256xf32>
    %297 = vector.broadcast %165 : vector<1x256xf32> to vector<8x256xf32>
    %298 = arith.mulf %296, %297 : vector<8x256xf32>
    %cst_207 = arith.constant dense<0.000000e+00> : vector<8xf32>
    %299 = vector.multi_reduction <add>, %298, %cst_207 [1] : vector<8x256xf32> to vector<8xf32>
    %300 = vector.shape_cast %299 : vector<8xf32> to vector<8x1xf32>
    %cst_208 = arith.constant 7.812500e-03 : f32
    %301 = vector.broadcast %cst_208 : f32 to vector<8x1xf32>
    %302 = arith.mulf %300, %301 : vector<8x1xf32>
    %c0_209 = arith.constant 0 : index
    %c0_210 = arith.constant 0 : index
    %c0_211 = arith.constant 0 : index
    %303 = vector.load %arg13[%c0_209, %c0_210, %c0_211] : memref<2x8x1xf32, #tpu.memory_space<vmem>>, vector<1x8x1xf32>
    %304 = vector.shape_cast %303 : vector<1x8x1xf32> to vector<8x1xf32>
    %cst_212 = arith.constant 9.99999974E-6 : f32
    %305 = vector.broadcast %cst_212 : f32 to vector<8x1xf32>
    %306 = arith.addf %302, %305 : vector<8x1xf32>
    %307 = math.rsqrt %306 : vector<8x1xf32>
    %308 = vector.broadcast %307 : vector<8x1xf32> to vector<8x256xf32>
    %309 = arith.mulf %295, %308 : vector<8x256xf32>
    %310 = vector.broadcast %304 : vector<8x1xf32> to vector<8x256xf32>
    %311 = arith.mulf %310, %309 : vector<8x256xf32>
    %c1_213 = arith.constant 1 : index
    %c0_214 = arith.constant 0 : index
    %c0_215 = arith.constant 0 : index
    %312 = vector.load %arg13[%c1_213, %c0_214, %c0_215] : memref<2x8x1xf32, #tpu.memory_space<vmem>>, vector<1x8x1xf32>
    %313 = vector.shape_cast %312 : vector<1x8x1xf32> to vector<8x1xf32>
    %314 = vector.broadcast %313 : vector<8x1xf32> to vector<8x256xf32>
    %315 = arith.addf %311, %314 : vector<8x256xf32>
    %cst_216 = arith.constant 0.000000e+00 : f32
    %316 = vector.broadcast %cst_216 : f32 to vector<8x256xf32>
    %317 = arith.maximumf %315, %316 : vector<8x256xf32>
    %318 = vector.broadcast %165 : vector<1x256xf32> to vector<8x256xf32>
    %319 = arith.mulf %317, %318 : vector<8x256xf32>
    %c0_217 = arith.constant 0 : index
    %c0_218 = arith.constant 0 : index
    %320 = vector.load %arg26[%c0_217, %c0_218] : memref<8x256xf32, #tpu.memory_space<vmem>>, vector<8x256xf32>
    tpu.vector_store %arg26[%c0_217, %c0_218], %319 {strides = array<i32>} : memref<8x256xf32, #tpu.memory_space<vmem>>, vector<8x256xf32>,
    %c255_i32_219 = arith.constant 255 : i32
    %321 = tpu.dynamic_rotate %319 by %c255_i32_219 dim 1 : vector<8x256xf32>, i32 -> vector<8x256xf32>
    %322 = arith.maximumf %319, %321 : vector<8x256xf32>
    %c246_i32_220 = arith.constant 246 : i32
    %323 = tpu.dynamic_rotate %319 by %c246_i32_220 dim 1 : vector<8x256xf32>, i32 -> vector<8x256xf32>
    %c245_i32_221 = arith.constant 245 : i32
    %324 = tpu.dynamic_rotate %319 by %c245_i32_221 dim 1 : vector<8x256xf32>, i32 -> vector<8x256xf32>
    %325 = arith.maximumf %323, %324 : vector<8x256xf32>
    %326 = arith.maximumf %322, %325 : vector<8x256xf32>
    %c0_222 = arith.constant 0 : index
    %c0_223 = arith.constant 0 : index
    %327 = vector.load %arg23[%c0_222, %c0_223] : memref<256x128xf32, #tpu.memory_space<vmem>>, vector<256x128xf32>
    %cst_224 = arith.constant dense<0.000000e+00> : vector<8x128xf32>
    %328 = tpu.matmul %326, %327, %cst_224 {dimension_numbers = #tpu.dot_dimension_numbers<[1], [0], [0], [1], [0, 0, 1, 1], [], []>} : vector<8x256xf32>, vector<256x128xf32>, vector<8x128xf32> -> vector<8x128xf32>
    %c0_225 = arith.constant 0 : index
    %c0_226 = arith.constant 0 : index
    %329 = vector.load %arg20[%c0_225, %c0_226] : memref<1x128xf32, #tpu.memory_space<vmem>>, vector<1x128xf32>
    %cst_227 = arith.constant 0.000000e+00 : f32
    %330 = vector.broadcast %cst_227 : f32 to vector<16x128xf32>
    %c7_i32 = arith.constant 7 : i32
    %331 = tpu.dynamic_rotate %328 by %c7_i32 dim 1 : vector<8x128xf32>, i32 -> vector<8x128xf32>
    %c0_228 = arith.constant 0 : index
    %c0_229 = arith.constant 0 : index
    %c0_230 = arith.constant 0 : index
    %332 = vector.load %arg6[%c0_228, %c0_229, %c0_230] : memref<9x16x8xf32, #tpu.memory_space<vmem>>, vector<1x16x8xf32>
    %333 = vector.shape_cast %332 : vector<1x16x8xf32> to vector<16x8xf32>
    %cst_231 = arith.constant dense<0.000000e+00> : vector<16x128xf32>
    %334 = tpu.matmul %333, %331, %cst_231 {dimension_numbers = #tpu.dot_dimension_numbers<[1], [0], [0], [1], [0, 0, 1, 1], [], []>} : vector<16x8xf32>, vector<8x128xf32>, vector<16x128xf32> -> vector<16x128xf32>
    %335 = arith.addf %330, %334 : vector<16x128xf32>
    %c6_i32 = arith.constant 6 : i32
    %336 = tpu.dynamic_rotate %328 by %c6_i32 dim 1 : vector<8x128xf32>, i32 -> vector<8x128xf32>
    %c1_232 = arith.constant 1 : index
    %c0_233 = arith.constant 0 : index
    %c0_234 = arith.constant 0 : index
    %337 = vector.load %arg6[%c1_232, %c0_233, %c0_234] : memref<9x16x8xf32, #tpu.memory_space<vmem>>, vector<1x16x8xf32>
    %338 = vector.shape_cast %337 : vector<1x16x8xf32> to vector<16x8xf32>
    %cst_235 = arith.constant dense<0.000000e+00> : vector<16x128xf32>
    %339 = tpu.matmul %338, %336, %cst_235 {dimension_numbers = #tpu.dot_dimension_numbers<[1], [0], [0], [1], [0, 0, 1, 1], [], []>} : vector<16x8xf32>, vector<8x128xf32>, vector<16x128xf32> -> vector<16x128xf32>
    %340 = arith.addf %335, %339 : vector<16x128xf32>
    %c5_i32 = arith.constant 5 : i32
    %341 = tpu.dynamic_rotate %328 by %c5_i32 dim 1 : vector<8x128xf32>, i32 -> vector<8x128xf32>
    %c2_236 = arith.constant 2 : index
    %c0_237 = arith.constant 0 : index
    %c0_238 = arith.constant 0 : index
    %342 = vector.load %arg6[%c2_236, %c0_237, %c0_238] : memref<9x16x8xf32, #tpu.memory_space<vmem>>, vector<1x16x8xf32>
    %343 = vector.shape_cast %342 : vector<1x16x8xf32> to vector<16x8xf32>
    %cst_239 = arith.constant dense<0.000000e+00> : vector<16x128xf32>
    %344 = tpu.matmul %343, %341, %cst_239 {dimension_numbers = #tpu.dot_dimension_numbers<[1], [0], [0], [1], [0, 0, 1, 1], [], []>} : vector<16x8xf32>, vector<8x128xf32>, vector<16x128xf32> -> vector<16x128xf32>
    %345 = arith.addf %340, %344 : vector<16x128xf32>
    %c1_i32_240 = arith.constant 1 : i32
    %346 = tpu.dynamic_rotate %328 by %c1_i32_240 dim 1 : vector<8x128xf32>, i32 -> vector<8x128xf32>
    %c3_241 = arith.constant 3 : index
    %c0_242 = arith.constant 0 : index
    %c0_243 = arith.constant 0 : index
    %347 = vector.load %arg6[%c3_241, %c0_242, %c0_243] : memref<9x16x8xf32, #tpu.memory_space<vmem>>, vector<1x16x8xf32>
    %348 = vector.shape_cast %347 : vector<1x16x8xf32> to vector<16x8xf32>
    %cst_244 = arith.constant dense<0.000000e+00> : vector<16x128xf32>
    %349 = tpu.matmul %348, %346, %cst_244 {dimension_numbers = #tpu.dot_dimension_numbers<[1], [0], [0], [1], [0, 0, 1, 1], [], []>} : vector<16x8xf32>, vector<8x128xf32>, vector<16x128xf32> -> vector<16x128xf32>
    %350 = arith.addf %345, %349 : vector<16x128xf32>
    %c4_245 = arith.constant 4 : index
    %c0_246 = arith.constant 0 : index
    %c0_247 = arith.constant 0 : index
    %351 = vector.load %arg6[%c4_245, %c0_246, %c0_247] : memref<9x16x8xf32, #tpu.memory_space<vmem>>, vector<1x16x8xf32>
    %352 = vector.shape_cast %351 : vector<1x16x8xf32> to vector<16x8xf32>
    %cst_248 = arith.constant dense<0.000000e+00> : vector<16x128xf32>
    %353 = tpu.matmul %352, %328, %cst_248 {dimension_numbers = #tpu.dot_dimension_numbers<[1], [0], [0], [1], [0, 0, 1, 1], [], []>} : vector<16x8xf32>, vector<8x128xf32>, vector<16x128xf32> -> vector<16x128xf32>
    %354 = arith.addf %350, %353 : vector<16x128xf32>
    %c127_i32 = arith.constant 127 : i32
    %355 = tpu.dynamic_rotate %328 by %c127_i32 dim 1 : vector<8x128xf32>, i32 -> vector<8x128xf32>
    %c5_249 = arith.constant 5 : index
    %c0_250 = arith.constant 0 : index
    %c0_251 = arith.constant 0 : index
    %356 = vector.load %arg6[%c5_249, %c0_250, %c0_251] : memref<9x16x8xf32, #tpu.memory_space<vmem>>, vector<1x16x8xf32>
    %357 = vector.shape_cast %356 : vector<1x16x8xf32> to vector<16x8xf32>
    %cst_252 = arith.constant dense<0.000000e+00> : vector<16x128xf32>
    %358 = tpu.matmul %357, %355, %cst_252 {dimension_numbers = #tpu.dot_dimension_numbers<[1], [0], [0], [1], [0, 0, 1, 1], [], []>} : vector<16x8xf32>, vector<8x128xf32>, vector<16x128xf32> -> vector<16x128xf32>
    %359 = arith.addf %354, %358 : vector<16x128xf32>
    %c123_i32 = arith.constant 123 : i32
    %360 = tpu.dynamic_rotate %328 by %c123_i32 dim 1 : vector<8x128xf32>, i32 -> vector<8x128xf32>
    %c6_253 = arith.constant 6 : index
    %c0_254 = arith.constant 0 : index
    %c0_255 = arith.constant 0 : index
    %361 = vector.load %arg6[%c6_253, %c0_254, %c0_255] : memref<9x16x8xf32, #tpu.memory_space<vmem>>, vector<1x16x8xf32>
    %362 = vector.shape_cast %361 : vector<1x16x8xf32> to vector<16x8xf32>
    %cst_256 = arith.constant dense<0.000000e+00> : vector<16x128xf32>
    %363 = tpu.matmul %362, %360, %cst_256 {dimension_numbers = #tpu.dot_dimension_numbers<[1], [0], [0], [1], [0, 0, 1, 1], [], []>} : vector<16x8xf32>, vector<8x128xf32>, vector<16x128xf32> -> vector<16x128xf32>
    %364 = arith.addf %359, %363 : vector<16x128xf32>
    %c122_i32 = arith.constant 122 : i32
    %365 = tpu.dynamic_rotate %328 by %c122_i32 dim 1 : vector<8x128xf32>, i32 -> vector<8x128xf32>
    %c7_257 = arith.constant 7 : index
    %c0_258 = arith.constant 0 : index
    %c0_259 = arith.constant 0 : index
    %366 = vector.load %arg6[%c7_257, %c0_258, %c0_259] : memref<9x16x8xf32, #tpu.memory_space<vmem>>, vector<1x16x8xf32>
    %367 = vector.shape_cast %366 : vector<1x16x8xf32> to vector<16x8xf32>
    %cst_260 = arith.constant dense<0.000000e+00> : vector<16x128xf32>
    %368 = tpu.matmul %367, %365, %cst_260 {dimension_numbers = #tpu.dot_dimension_numbers<[1], [0], [0], [1], [0, 0, 1, 1], [], []>} : vector<16x8xf32>, vector<8x128xf32>, vector<16x128xf32> -> vector<16x128xf32>
    %369 = arith.addf %364, %368 : vector<16x128xf32>
    %c121_i32 = arith.constant 121 : i32
    %370 = tpu.dynamic_rotate %328 by %c121_i32 dim 1 : vector<8x128xf32>, i32 -> vector<8x128xf32>
    %c8_261 = arith.constant 8 : index
    %c0_262 = arith.constant 0 : index
    %c0_263 = arith.constant 0 : index
    %371 = vector.load %arg6[%c8_261, %c0_262, %c0_263] : memref<9x16x8xf32, #tpu.memory_space<vmem>>, vector<1x16x8xf32>
    %372 = vector.shape_cast %371 : vector<1x16x8xf32> to vector<16x8xf32>
    %cst_264 = arith.constant dense<0.000000e+00> : vector<16x128xf32>
    %373 = tpu.matmul %372, %370, %cst_264 {dimension_numbers = #tpu.dot_dimension_numbers<[1], [0], [0], [1], [0, 0, 1, 1], [], []>} : vector<16x8xf32>, vector<8x128xf32>, vector<16x128xf32> -> vector<16x128xf32>
    %374 = arith.addf %369, %373 : vector<16x128xf32>
    %375 = vector.broadcast %329 : vector<1x128xf32> to vector<16x128xf32>
    %376 = arith.mulf %374, %375 : vector<16x128xf32>
    %cst_265 = arith.constant dense<0.000000e+00> : vector<16xf32>
    %377 = vector.multi_reduction <add>, %376, %cst_265 [1] : vector<16x128xf32> to vector<16xf32>
    %378 = vector.shape_cast %377 : vector<16xf32> to vector<16x1xf32>
    %cst_266 = arith.constant 3.125000e-02 : f32
    %379 = vector.broadcast %cst_266 : f32 to vector<16x1xf32>
    %380 = arith.mulf %378, %379 : vector<16x1xf32>
    %381 = vector.broadcast %380 : vector<16x1xf32> to vector<16x128xf32>
    %382 = arith.subf %374, %381 : vector<16x128xf32>
    %383 = arith.mulf %382, %382 : vector<16x128xf32>
    %384 = vector.broadcast %329 : vector<1x128xf32> to vector<16x128xf32>
    %385 = arith.mulf %383, %384 : vector<16x128xf32>
    %cst_267 = arith.constant dense<0.000000e+00> : vector<16xf32>
    %386 = vector.multi_reduction <add>, %385, %cst_267 [1] : vector<16x128xf32> to vector<16xf32>
    %387 = vector.shape_cast %386 : vector<16xf32> to vector<16x1xf32>
    %cst_268 = arith.constant 3.125000e-02 : f32
    %388 = vector.broadcast %cst_268 : f32 to vector<16x1xf32>
    %389 = arith.mulf %387, %388 : vector<16x1xf32>
    %c0_269 = arith.constant 0 : index
    %c0_270 = arith.constant 0 : index
    %c0_271 = arith.constant 0 : index
    %390 = vector.load %arg14[%c0_269, %c0_270, %c0_271] : memref<2x16x1xf32, #tpu.memory_space<vmem>>, vector<1x16x1xf32>
    %391 = vector.shape_cast %390 : vector<1x16x1xf32> to vector<16x1xf32>
    %cst_272 = arith.constant 9.99999974E-6 : f32
    %392 = vector.broadcast %cst_272 : f32 to vector<16x1xf32>
    %393 = arith.addf %389, %392 : vector<16x1xf32>
    %394 = math.rsqrt %393 : vector<16x1xf32>
    %395 = vector.broadcast %394 : vector<16x1xf32> to vector<16x128xf32>
    %396 = arith.mulf %382, %395 : vector<16x128xf32>
    %397 = vector.broadcast %391 : vector<16x1xf32> to vector<16x128xf32>
    %398 = arith.mulf %397, %396 : vector<16x128xf32>
    %c1_273 = arith.constant 1 : index
    %c0_274 = arith.constant 0 : index
    %c0_275 = arith.constant 0 : index
    %399 = vector.load %arg14[%c1_273, %c0_274, %c0_275] : memref<2x16x1xf32, #tpu.memory_space<vmem>>, vector<1x16x1xf32>
    %400 = vector.shape_cast %399 : vector<1x16x1xf32> to vector<16x1xf32>
    %401 = vector.broadcast %400 : vector<16x1xf32> to vector<16x128xf32>
    %402 = arith.addf %398, %401 : vector<16x128xf32>
    %cst_276 = arith.constant 0.000000e+00 : f32
    %403 = vector.broadcast %cst_276 : f32 to vector<16x128xf32>
    %404 = arith.maximumf %402, %403 : vector<16x128xf32>
    %405 = vector.broadcast %329 : vector<1x128xf32> to vector<16x128xf32>
    %406 = arith.mulf %404, %405 : vector<16x128xf32>
    %cst_277 = arith.constant 0.000000e+00 : f32
    %407 = vector.broadcast %cst_277 : f32 to vector<16x128xf32>
    %c7_i32_278 = arith.constant 7 : i32
    %408 = tpu.dynamic_rotate %406 by %c7_i32_278 dim 1 : vector<16x128xf32>, i32 -> vector<16x128xf32>
    %c0_279 = arith.constant 0 : index
    %c0_280 = arith.constant 0 : index
    %c0_281 = arith.constant 0 : index
    %409 = vector.load %arg7[%c0_279, %c0_280, %c0_281] : memref<9x16x16xf32, #tpu.memory_space<vmem>>, vector<1x16x16xf32>
    %410 = vector.shape_cast %409 : vector<1x16x16xf32> to vector<16x16xf32>
    %cst_282 = arith.constant dense<0.000000e+00> : vector<16x128xf32>
    %411 = tpu.matmul %410, %408, %cst_282 {dimension_numbers = #tpu.dot_dimension_numbers<[1], [0], [0], [1], [0, 0, 1, 1], [], []>} : vector<16x16xf32>, vector<16x128xf32>, vector<16x128xf32> -> vector<16x128xf32>
    %412 = arith.addf %407, %411 : vector<16x128xf32>
    %c6_i32_283 = arith.constant 6 : i32
    %413 = tpu.dynamic_rotate %406 by %c6_i32_283 dim 1 : vector<16x128xf32>, i32 -> vector<16x128xf32>
    %c1_284 = arith.constant 1 : index
    %c0_285 = arith.constant 0 : index
    %c0_286 = arith.constant 0 : index
    %414 = vector.load %arg7[%c1_284, %c0_285, %c0_286] : memref<9x16x16xf32, #tpu.memory_space<vmem>>, vector<1x16x16xf32>
    %415 = vector.shape_cast %414 : vector<1x16x16xf32> to vector<16x16xf32>
    %cst_287 = arith.constant dense<0.000000e+00> : vector<16x128xf32>
    %416 = tpu.matmul %415, %413, %cst_287 {dimension_numbers = #tpu.dot_dimension_numbers<[1], [0], [0], [1], [0, 0, 1, 1], [], []>} : vector<16x16xf32>, vector<16x128xf32>, vector<16x128xf32> -> vector<16x128xf32>
    %417 = arith.addf %412, %416 : vector<16x128xf32>
    %c5_i32_288 = arith.constant 5 : i32
    %418 = tpu.dynamic_rotate %406 by %c5_i32_288 dim 1 : vector<16x128xf32>, i32 -> vector<16x128xf32>
    %c2_289 = arith.constant 2 : index
    %c0_290 = arith.constant 0 : index
    %c0_291 = arith.constant 0 : index
    %419 = vector.load %arg7[%c2_289, %c0_290, %c0_291] : memref<9x16x16xf32, #tpu.memory_space<vmem>>, vector<1x16x16xf32>
    %420 = vector.shape_cast %419 : vector<1x16x16xf32> to vector<16x16xf32>
    %cst_292 = arith.constant dense<0.000000e+00> : vector<16x128xf32>
    %421 = tpu.matmul %420, %418, %cst_292 {dimension_numbers = #tpu.dot_dimension_numbers<[1], [0], [0], [1], [0, 0, 1, 1], [], []>} : vector<16x16xf32>, vector<16x128xf32>, vector<16x128xf32> -> vector<16x128xf32>
    %422 = arith.addf %417, %421 : vector<16x128xf32>
    %c1_i32_293 = arith.constant 1 : i32
    %423 = tpu.dynamic_rotate %406 by %c1_i32_293 dim 1 : vector<16x128xf32>, i32 -> vector<16x128xf32>
    %c3_294 = arith.constant 3 : index
    %c0_295 = arith.constant 0 : index
    %c0_296 = arith.constant 0 : index
    %424 = vector.load %arg7[%c3_294, %c0_295, %c0_296] : memref<9x16x16xf32, #tpu.memory_space<vmem>>, vector<1x16x16xf32>
    %425 = vector.shape_cast %424 : vector<1x16x16xf32> to vector<16x16xf32>
    %cst_297 = arith.constant dense<0.000000e+00> : vector<16x128xf32>
    %426 = tpu.matmul %425, %423, %cst_297 {dimension_numbers = #tpu.dot_dimension_numbers<[1], [0], [0], [1], [0, 0, 1, 1], [], []>} : vector<16x16xf32>, vector<16x128xf32>, vector<16x128xf32> -> vector<16x128xf32>
    %427 = arith.addf %422, %426 : vector<16x128xf32>
    %c4_298 = arith.constant 4 : index
    %c0_299 = arith.constant 0 : index
    %c0_300 = arith.constant 0 : index
    %428 = vector.load %arg7[%c4_298, %c0_299, %c0_300] : memref<9x16x16xf32, #tpu.memory_space<vmem>>, vector<1x16x16xf32>
    %429 = vector.shape_cast %428 : vector<1x16x16xf32> to vector<16x16xf32>
    %cst_301 = arith.constant dense<0.000000e+00> : vector<16x128xf32>
    %430 = tpu.matmul %429, %406, %cst_301 {dimension_numbers = #tpu.dot_dimension_numbers<[1], [0], [0], [1], [0, 0, 1, 1], [], []>} : vector<16x16xf32>, vector<16x128xf32>, vector<16x128xf32> -> vector<16x128xf32>
    %431 = arith.addf %427, %430 : vector<16x128xf32>
    %c127_i32_302 = arith.constant 127 : i32
    %432 = tpu.dynamic_rotate %406 by %c127_i32_302 dim 1 : vector<16x128xf32>, i32 -> vector<16x128xf32>
    %c5_303 = arith.constant 5 : index
    %c0_304 = arith.constant 0 : index
    %c0_305 = arith.constant 0 : index
    %433 = vector.load %arg7[%c5_303, %c0_304, %c0_305] : memref<9x16x16xf32, #tpu.memory_space<vmem>>, vector<1x16x16xf32>
    %434 = vector.shape_cast %433 : vector<1x16x16xf32> to vector<16x16xf32>
    %cst_306 = arith.constant dense<0.000000e+00> : vector<16x128xf32>
    %435 = tpu.matmul %434, %432, %cst_306 {dimension_numbers = #tpu.dot_dimension_numbers<[1], [0], [0], [1], [0, 0, 1, 1], [], []>} : vector<16x16xf32>, vector<16x128xf32>, vector<16x128xf32> -> vector<16x128xf32>
    %436 = arith.addf %431, %435 : vector<16x128xf32>
    %c123_i32_307 = arith.constant 123 : i32
    %437 = tpu.dynamic_rotate %406 by %c123_i32_307 dim 1 : vector<16x128xf32>, i32 -> vector<16x128xf32>
    %c6_308 = arith.constant 6 : index
    %c0_309 = arith.constant 0 : index
    %c0_310 = arith.constant 0 : index
    %438 = vector.load %arg7[%c6_308, %c0_309, %c0_310] : memref<9x16x16xf32, #tpu.memory_space<vmem>>, vector<1x16x16xf32>
    %439 = vector.shape_cast %438 : vector<1x16x16xf32> to vector<16x16xf32>
    %cst_311 = arith.constant dense<0.000000e+00> : vector<16x128xf32>
    %440 = tpu.matmul %439, %437, %cst_311 {dimension_numbers = #tpu.dot_dimension_numbers<[1], [0], [0], [1], [0, 0, 1, 1], [], []>} : vector<16x16xf32>, vector<16x128xf32>, vector<16x128xf32> -> vector<16x128xf32>
    %441 = arith.addf %436, %440 : vector<16x128xf32>
    %c122_i32_312 = arith.constant 122 : i32
    %442 = tpu.dynamic_rotate %406 by %c122_i32_312 dim 1 : vector<16x128xf32>, i32 -> vector<16x128xf32>
    %c7_313 = arith.constant 7 : index
    %c0_314 = arith.constant 0 : index
    %c0_315 = arith.constant 0 : index
    %443 = vector.load %arg7[%c7_313, %c0_314, %c0_315] : memref<9x16x16xf32, #tpu.memory_space<vmem>>, vector<1x16x16xf32>
    %444 = vector.shape_cast %443 : vector<1x16x16xf32> to vector<16x16xf32>
    %cst_316 = arith.constant dense<0.000000e+00> : vector<16x128xf32>
    %445 = tpu.matmul %444, %442, %cst_316 {dimension_numbers = #tpu.dot_dimension_numbers<[1], [0], [0], [1], [0, 0, 1, 1], [], []>} : vector<16x16xf32>, vector<16x128xf32>, vector<16x128xf32> -> vector<16x128xf32>
    %446 = arith.addf %441, %445 : vector<16x128xf32>
    %c121_i32_317 = arith.constant 121 : i32
    %447 = tpu.dynamic_rotate %406 by %c121_i32_317 dim 1 : vector<16x128xf32>, i32 -> vector<16x128xf32>
    %c8_318 = arith.constant 8 : index
    %c0_319 = arith.constant 0 : index
    %c0_320 = arith.constant 0 : index
    %448 = vector.load %arg7[%c8_318, %c0_319, %c0_320] : memref<9x16x16xf32, #tpu.memory_space<vmem>>, vector<1x16x16xf32>
    %449 = vector.shape_cast %448 : vector<1x16x16xf32> to vector<16x16xf32>
    %cst_321 = arith.constant dense<0.000000e+00> : vector<16x128xf32>
    %450 = tpu.matmul %449, %447, %cst_321 {dimension_numbers = #tpu.dot_dimension_numbers<[1], [0], [0], [1], [0, 0, 1, 1], [], []>} : vector<16x16xf32>, vector<16x128xf32>, vector<16x128xf32> -> vector<16x128xf32>
    %451 = arith.addf %446, %450 : vector<16x128xf32>
    %452 = vector.broadcast %329 : vector<1x128xf32> to vector<16x128xf32>
    %453 = arith.mulf %451, %452 : vector<16x128xf32>
    %cst_322 = arith.constant dense<0.000000e+00> : vector<16xf32>
    %454 = vector.multi_reduction <add>, %453, %cst_322 [1] : vector<16x128xf32> to vector<16xf32>
    %455 = vector.shape_cast %454 : vector<16xf32> to vector<16x1xf32>
    %cst_323 = arith.constant 3.125000e-02 : f32
    %456 = vector.broadcast %cst_323 : f32 to vector<16x1xf32>
    %457 = arith.mulf %455, %456 : vector<16x1xf32>
    %458 = vector.broadcast %457 : vector<16x1xf32> to vector<16x128xf32>
    %459 = arith.subf %451, %458 : vector<16x128xf32>
    %460 = arith.mulf %459, %459 : vector<16x128xf32>
    %461 = vector.broadcast %329 : vector<1x128xf32> to vector<16x128xf32>
    %462 = arith.mulf %460, %461 : vector<16x128xf32>
    %cst_324 = arith.constant dense<0.000000e+00> : vector<16xf32>
    %463 = vector.multi_reduction <add>, %462, %cst_324 [1] : vector<16x128xf32> to vector<16xf32>
    %464 = vector.shape_cast %463 : vector<16xf32> to vector<16x1xf32>
    %cst_325 = arith.constant 3.125000e-02 : f32
    %465 = vector.broadcast %cst_325 : f32 to vector<16x1xf32>
    %466 = arith.mulf %464, %465 : vector<16x1xf32>
    %c0_326 = arith.constant 0 : index
    %c0_327 = arith.constant 0 : index
    %c0_328 = arith.constant 0 : index
    %467 = vector.load %arg15[%c0_326, %c0_327, %c0_328] : memref<2x16x1xf32, #tpu.memory_space<vmem>>, vector<1x16x1xf32>
    %468 = vector.shape_cast %467 : vector<1x16x1xf32> to vector<16x1xf32>
    %cst_329 = arith.constant 9.99999974E-6 : f32
    %469 = vector.broadcast %cst_329 : f32 to vector<16x1xf32>
    %470 = arith.addf %466, %469 : vector<16x1xf32>
    %471 = math.rsqrt %470 : vector<16x1xf32>
    %472 = vector.broadcast %471 : vector<16x1xf32> to vector<16x128xf32>
    %473 = arith.mulf %459, %472 : vector<16x128xf32>
    %474 = vector.broadcast %468 : vector<16x1xf32> to vector<16x128xf32>
    %475 = arith.mulf %474, %473 : vector<16x128xf32>
    %c1_330 = arith.constant 1 : index
    %c0_331 = arith.constant 0 : index
    %c0_332 = arith.constant 0 : index
    %476 = vector.load %arg15[%c1_330, %c0_331, %c0_332] : memref<2x16x1xf32, #tpu.memory_space<vmem>>, vector<1x16x1xf32>
    %477 = vector.shape_cast %476 : vector<1x16x1xf32> to vector<16x1xf32>
    %478 = vector.broadcast %477 : vector<16x1xf32> to vector<16x128xf32>
    %479 = arith.addf %475, %478 : vector<16x128xf32>
    %cst_333 = arith.constant 0.000000e+00 : f32
    %480 = vector.broadcast %cst_333 : f32 to vector<16x128xf32>
    %481 = arith.maximumf %479, %480 : vector<16x128xf32>
    %482 = vector.broadcast %329 : vector<1x128xf32> to vector<16x128xf32>
    %483 = arith.mulf %481, %482 : vector<16x128xf32>
    %c0_334 = arith.constant 0 : index
    %c0_335 = arith.constant 0 : index
    %484 = vector.load %arg27[%c0_334, %c0_335] : memref<16x128xf32, #tpu.memory_space<vmem>>, vector<16x128xf32>
    tpu.vector_store %arg27[%c0_334, %c0_335], %483 {strides = array<i32>} : memref<16x128xf32, #tpu.memory_space<vmem>>, vector<16x128xf32>,
    %c127_i32_336 = arith.constant 127 : i32
    %485 = tpu.dynamic_rotate %483 by %c127_i32_336 dim 1 : vector<16x128xf32>, i32 -> vector<16x128xf32>
    %486 = arith.maximumf %483, %485 : vector<16x128xf32>
    %c122_i32_337 = arith.constant 122 : i32
    %487 = tpu.dynamic_rotate %483 by %c122_i32_337 dim 1 : vector<16x128xf32>, i32 -> vector<16x128xf32>
    %c121_i32_338 = arith.constant 121 : i32
    %488 = tpu.dynamic_rotate %483 by %c121_i32_338 dim 1 : vector<16x128xf32>, i32 -> vector<16x128xf32>
    %489 = arith.maximumf %487, %488 : vector<16x128xf32>
    %490 = arith.maximumf %486, %489 : vector<16x128xf32>
    %c0_339 = arith.constant 0 : index
    %c0_340 = arith.constant 0 : index
    %491 = vector.load %arg24[%c0_339, %c0_340] : memref<128x128xf32, #tpu.memory_space<vmem>>, vector<128x128xf32>
    %cst_341 = arith.constant dense<0.000000e+00> : vector<16x128xf32>
    %492 = tpu.matmul %490, %491, %cst_341 {dimension_numbers = #tpu.dot_dimension_numbers<[1], [0], [0], [1], [0, 0, 1, 1], [], []>} : vector<16x128xf32>, vector<128x128xf32>, vector<16x128xf32> -> vector<16x128xf32>
    %c0_342 = arith.constant 0 : index
    %c0_343 = arith.constant 0 : index
    %493 = vector.load %arg21[%c0_342, %c0_343] : memref<1x128xf32, #tpu.memory_space<vmem>>, vector<1x128xf32>
    %cst_344 = arith.constant 0.000000e+00 : f32
    %494 = vector.broadcast %cst_344 : f32 to vector<32x128xf32>
    %c5_i32_345 = arith.constant 5 : i32
    %495 = tpu.dynamic_rotate %492 by %c5_i32_345 dim 1 : vector<16x128xf32>, i32 -> vector<16x128xf32>
    %c0_346 = arith.constant 0 : index
    %c0_347 = arith.constant 0 : index
    %c0_348 = arith.constant 0 : index
    %496 = vector.load %arg8[%c0_346, %c0_347, %c0_348] : memref<9x32x16xf32, #tpu.memory_space<vmem>>, vector<1x32x16xf32>
    %497 = vector.shape_cast %496 : vector<1x32x16xf32> to vector<32x16xf32>
    %cst_349 = arith.constant dense<0.000000e+00> : vector<32x128xf32>
    %498 = tpu.matmul %497, %495, %cst_349 {dimension_numbers = #tpu.dot_dimension_numbers<[1], [0], [0], [1], [0, 0, 1, 1], [], []>} : vector<32x16xf32>, vector<16x128xf32>, vector<32x128xf32> -> vector<32x128xf32>
    %499 = arith.addf %494, %498 : vector<32x128xf32>
    %c4_i32 = arith.constant 4 : i32
    %500 = tpu.dynamic_rotate %492 by %c4_i32 dim 1 : vector<16x128xf32>, i32 -> vector<16x128xf32>
    %c1_350 = arith.constant 1 : index
    %c0_351 = arith.constant 0 : index
    %c0_352 = arith.constant 0 : index
    %501 = vector.load %arg8[%c1_350, %c0_351, %c0_352] : memref<9x32x16xf32, #tpu.memory_space<vmem>>, vector<1x32x16xf32>
    %502 = vector.shape_cast %501 : vector<1x32x16xf32> to vector<32x16xf32>
    %cst_353 = arith.constant dense<0.000000e+00> : vector<32x128xf32>
    %503 = tpu.matmul %502, %500, %cst_353 {dimension_numbers = #tpu.dot_dimension_numbers<[1], [0], [0], [1], [0, 0, 1, 1], [], []>} : vector<32x16xf32>, vector<16x128xf32>, vector<32x128xf32> -> vector<32x128xf32>
    %504 = arith.addf %499, %503 : vector<32x128xf32>
    %c3_i32 = arith.constant 3 : i32
    %505 = tpu.dynamic_rotate %492 by %c3_i32 dim 1 : vector<16x128xf32>, i32 -> vector<16x128xf32>
    %c2_354 = arith.constant 2 : index
    %c0_355 = arith.constant 0 : index
    %c0_356 = arith.constant 0 : index
    %506 = vector.load %arg8[%c2_354, %c0_355, %c0_356] : memref<9x32x16xf32, #tpu.memory_space<vmem>>, vector<1x32x16xf32>
    %507 = vector.shape_cast %506 : vector<1x32x16xf32> to vector<32x16xf32>
    %cst_357 = arith.constant dense<0.000000e+00> : vector<32x128xf32>
    %508 = tpu.matmul %507, %505, %cst_357 {dimension_numbers = #tpu.dot_dimension_numbers<[1], [0], [0], [1], [0, 0, 1, 1], [], []>} : vector<32x16xf32>, vector<16x128xf32>, vector<32x128xf32> -> vector<32x128xf32>
    %509 = arith.addf %504, %508 : vector<32x128xf32>
    %c1_i32_358 = arith.constant 1 : i32
    %510 = tpu.dynamic_rotate %492 by %c1_i32_358 dim 1 : vector<16x128xf32>, i32 -> vector<16x128xf32>
    %c3_359 = arith.constant 3 : index
    %c0_360 = arith.constant 0 : index
    %c0_361 = arith.constant 0 : index
    %511 = vector.load %arg8[%c3_359, %c0_360, %c0_361] : memref<9x32x16xf32, #tpu.memory_space<vmem>>, vector<1x32x16xf32>
    %512 = vector.shape_cast %511 : vector<1x32x16xf32> to vector<32x16xf32>
    %cst_362 = arith.constant dense<0.000000e+00> : vector<32x128xf32>
    %513 = tpu.matmul %512, %510, %cst_362 {dimension_numbers = #tpu.dot_dimension_numbers<[1], [0], [0], [1], [0, 0, 1, 1], [], []>} : vector<32x16xf32>, vector<16x128xf32>, vector<32x128xf32> -> vector<32x128xf32>
    %514 = arith.addf %509, %513 : vector<32x128xf32>
    %c4_363 = arith.constant 4 : index
    %c0_364 = arith.constant 0 : index
    %c0_365 = arith.constant 0 : index
    %515 = vector.load %arg8[%c4_363, %c0_364, %c0_365] : memref<9x32x16xf32, #tpu.memory_space<vmem>>, vector<1x32x16xf32>
    %516 = vector.shape_cast %515 : vector<1x32x16xf32> to vector<32x16xf32>
    %cst_366 = arith.constant dense<0.000000e+00> : vector<32x128xf32>
    %517 = tpu.matmul %516, %492, %cst_366 {dimension_numbers = #tpu.dot_dimension_numbers<[1], [0], [0], [1], [0, 0, 1, 1], [], []>} : vector<32x16xf32>, vector<16x128xf32>, vector<32x128xf32> -> vector<32x128xf32>
    %518 = arith.addf %514, %517 : vector<32x128xf32>
    %c127_i32_367 = arith.constant 127 : i32
    %519 = tpu.dynamic_rotate %492 by %c127_i32_367 dim 1 : vector<16x128xf32>, i32 -> vector<16x128xf32>
    %c5_368 = arith.constant 5 : index
    %c0_369 = arith.constant 0 : index
    %c0_370 = arith.constant 0 : index
    %520 = vector.load %arg8[%c5_368, %c0_369, %c0_370] : memref<9x32x16xf32, #tpu.memory_space<vmem>>, vector<1x32x16xf32>
    %521 = vector.shape_cast %520 : vector<1x32x16xf32> to vector<32x16xf32>
    %cst_371 = arith.constant dense<0.000000e+00> : vector<32x128xf32>
    %522 = tpu.matmul %521, %519, %cst_371 {dimension_numbers = #tpu.dot_dimension_numbers<[1], [0], [0], [1], [0, 0, 1, 1], [], []>} : vector<32x16xf32>, vector<16x128xf32>, vector<32x128xf32> -> vector<32x128xf32>
    %523 = arith.addf %518, %522 : vector<32x128xf32>
    %c125_i32 = arith.constant 125 : i32
    %524 = tpu.dynamic_rotate %492 by %c125_i32 dim 1 : vector<16x128xf32>, i32 -> vector<16x128xf32>
    %c6_372 = arith.constant 6 : index
    %c0_373 = arith.constant 0 : index
    %c0_374 = arith.constant 0 : index
    %525 = vector.load %arg8[%c6_372, %c0_373, %c0_374] : memref<9x32x16xf32, #tpu.memory_space<vmem>>, vector<1x32x16xf32>
    %526 = vector.shape_cast %525 : vector<1x32x16xf32> to vector<32x16xf32>
    %cst_375 = arith.constant dense<0.000000e+00> : vector<32x128xf32>
    %527 = tpu.matmul %526, %524, %cst_375 {dimension_numbers = #tpu.dot_dimension_numbers<[1], [0], [0], [1], [0, 0, 1, 1], [], []>} : vector<32x16xf32>, vector<16x128xf32>, vector<32x128xf32> -> vector<32x128xf32>
    %528 = arith.addf %523, %527 : vector<32x128xf32>
    %c124_i32 = arith.constant 124 : i32
    %529 = tpu.dynamic_rotate %492 by %c124_i32 dim 1 : vector<16x128xf32>, i32 -> vector<16x128xf32>
    %c7_376 = arith.constant 7 : index
    %c0_377 = arith.constant 0 : index
    %c0_378 = arith.constant 0 : index
    %530 = vector.load %arg8[%c7_376, %c0_377, %c0_378] : memref<9x32x16xf32, #tpu.memory_space<vmem>>, vector<1x32x16xf32>
    %531 = vector.shape_cast %530 : vector<1x32x16xf32> to vector<32x16xf32>
    %cst_379 = arith.constant dense<0.000000e+00> : vector<32x128xf32>
    %532 = tpu.matmul %531, %529, %cst_379 {dimension_numbers = #tpu.dot_dimension_numbers<[1], [0], [0], [1], [0, 0, 1, 1], [], []>} : vector<32x16xf32>, vector<16x128xf32>, vector<32x128xf32> -> vector<32x128xf32>
    %533 = arith.addf %528, %532 : vector<32x128xf32>
    %c123_i32_380 = arith.constant 123 : i32
    %534 = tpu.dynamic_rotate %492 by %c123_i32_380 dim 1 : vector<16x128xf32>, i32 -> vector<16x128xf32>
    %c8_381 = arith.constant 8 : index
    %c0_382 = arith.constant 0 : index
    %c0_383 = arith.constant 0 : index
    %535 = vector.load %arg8[%c8_381, %c0_382, %c0_383] : memref<9x32x16xf32, #tpu.memory_space<vmem>>, vector<1x32x16xf32>
    %536 = vector.shape_cast %535 : vector<1x32x16xf32> to vector<32x16xf32>
    %cst_384 = arith.constant dense<0.000000e+00> : vector<32x128xf32>
    %537 = tpu.matmul %536, %534, %cst_384 {dimension_numbers = #tpu.dot_dimension_numbers<[1], [0], [0], [1], [0, 0, 1, 1], [], []>} : vector<32x16xf32>, vector<16x128xf32>, vector<32x128xf32> -> vector<32x128xf32>
    %538 = arith.addf %533, %537 : vector<32x128xf32>
    %539 = vector.broadcast %493 : vector<1x128xf32> to vector<32x128xf32>
    %540 = arith.mulf %538, %539 : vector<32x128xf32>
    %cst_385 = arith.constant dense<0.000000e+00> : vector<32xf32>
    %541 = vector.multi_reduction <add>, %540, %cst_385 [1] : vector<32x128xf32> to vector<32xf32>
    %542 = vector.shape_cast %541 : vector<32xf32> to vector<32x1xf32>
    %cst_386 = arith.constant 1.250000e-01 : f32
    %543 = vector.broadcast %cst_386 : f32 to vector<32x1xf32>
    %544 = arith.mulf %542, %543 : vector<32x1xf32>
    %545 = vector.broadcast %544 : vector<32x1xf32> to vector<32x128xf32>
    %546 = arith.subf %538, %545 : vector<32x128xf32>
    %547 = arith.mulf %546, %546 : vector<32x128xf32>
    %548 = vector.broadcast %493 : vector<1x128xf32> to vector<32x128xf32>
    %549 = arith.mulf %547, %548 : vector<32x128xf32>
    %cst_387 = arith.constant dense<0.000000e+00> : vector<32xf32>
    %550 = vector.multi_reduction <add>, %549, %cst_387 [1] : vector<32x128xf32> to vector<32xf32>
    %551 = vector.shape_cast %550 : vector<32xf32> to vector<32x1xf32>
    %cst_388 = arith.constant 1.250000e-01 : f32
    %552 = vector.broadcast %cst_388 : f32 to vector<32x1xf32>
    %553 = arith.mulf %551, %552 : vector<32x1xf32>
    %c0_389 = arith.constant 0 : index
    %c0_390 = arith.constant 0 : index
    %c0_391 = arith.constant 0 : index
    %554 = vector.load %arg16[%c0_389, %c0_390, %c0_391] : memref<2x32x1xf32, #tpu.memory_space<vmem>>, vector<1x32x1xf32>
    %555 = vector.shape_cast %554 : vector<1x32x1xf32> to vector<32x1xf32>
    %cst_392 = arith.constant 9.99999974E-6 : f32
    %556 = vector.broadcast %cst_392 : f32 to vector<32x1xf32>
    %557 = arith.addf %553, %556 : vector<32x1xf32>
    %558 = math.rsqrt %557 : vector<32x1xf32>
    %559 = vector.broadcast %558 : vector<32x1xf32> to vector<32x128xf32>
    %560 = arith.mulf %546, %559 : vector<32x128xf32>
    %561 = vector.broadcast %555 : vector<32x1xf32> to vector<32x128xf32>
    %562 = arith.mulf %561, %560 : vector<32x128xf32>
    %c1_393 = arith.constant 1 : index
    %c0_394 = arith.constant 0 : index
    %c0_395 = arith.constant 0 : index
    %563 = vector.load %arg16[%c1_393, %c0_394, %c0_395] : memref<2x32x1xf32, #tpu.memory_space<vmem>>, vector<1x32x1xf32>
    %564 = vector.shape_cast %563 : vector<1x32x1xf32> to vector<32x1xf32>
    %565 = vector.broadcast %564 : vector<32x1xf32> to vector<32x128xf32>
    %566 = arith.addf %562, %565 : vector<32x128xf32>
    %cst_396 = arith.constant 0.000000e+00 : f32
    %567 = vector.broadcast %cst_396 : f32 to vector<32x128xf32>
    %568 = arith.maximumf %566, %567 : vector<32x128xf32>
    %569 = vector.broadcast %493 : vector<1x128xf32> to vector<32x128xf32>
    %570 = arith.mulf %568, %569 : vector<32x128xf32>
    %cst_397 = arith.constant 0.000000e+00 : f32
    %571 = vector.broadcast %cst_397 : f32 to vector<32x128xf32>
    %c5_i32_398 = arith.constant 5 : i32
    %572 = tpu.dynamic_rotate %570 by %c5_i32_398 dim 1 : vector<32x128xf32>, i32 -> vector<32x128xf32>
    %c0_399 = arith.constant 0 : index
    %c0_400 = arith.constant 0 : index
    %c0_401 = arith.constant 0 : index
    %573 = vector.load %arg9[%c0_399, %c0_400, %c0_401] : memref<9x32x32xf32, #tpu.memory_space<vmem>>, vector<1x32x32xf32>
    %574 = vector.shape_cast %573 : vector<1x32x32xf32> to vector<32x32xf32>
    %cst_402 = arith.constant dense<0.000000e+00> : vector<32x128xf32>
    %575 = tpu.matmul %574, %572, %cst_402 {dimension_numbers = #tpu.dot_dimension_numbers<[1], [0], [0], [1], [0, 0, 1, 1], [], []>} : vector<32x32xf32>, vector<32x128xf32>, vector<32x128xf32> -> vector<32x128xf32>
    %576 = arith.addf %571, %575 : vector<32x128xf32>
    %c4_i32_403 = arith.constant 4 : i32
    %577 = tpu.dynamic_rotate %570 by %c4_i32_403 dim 1 : vector<32x128xf32>, i32 -> vector<32x128xf32>
    %c1_404 = arith.constant 1 : index
    %c0_405 = arith.constant 0 : index
    %c0_406 = arith.constant 0 : index
    %578 = vector.load %arg9[%c1_404, %c0_405, %c0_406] : memref<9x32x32xf32, #tpu.memory_space<vmem>>, vector<1x32x32xf32>
    %579 = vector.shape_cast %578 : vector<1x32x32xf32> to vector<32x32xf32>
    %cst_407 = arith.constant dense<0.000000e+00> : vector<32x128xf32>
    %580 = tpu.matmul %579, %577, %cst_407 {dimension_numbers = #tpu.dot_dimension_numbers<[1], [0], [0], [1], [0, 0, 1, 1], [], []>} : vector<32x32xf32>, vector<32x128xf32>, vector<32x128xf32> -> vector<32x128xf32>
    %581 = arith.addf %576, %580 : vector<32x128xf32>
    %c3_i32_408 = arith.constant 3 : i32
    %582 = tpu.dynamic_rotate %570 by %c3_i32_408 dim 1 : vector<32x128xf32>, i32 -> vector<32x128xf32>
    %c2_409 = arith.constant 2 : index
    %c0_410 = arith.constant 0 : index
    %c0_411 = arith.constant 0 : index
    %583 = vector.load %arg9[%c2_409, %c0_410, %c0_411] : memref<9x32x32xf32, #tpu.memory_space<vmem>>, vector<1x32x32xf32>
    %584 = vector.shape_cast %583 : vector<1x32x32xf32> to vector<32x32xf32>
    %cst_412 = arith.constant dense<0.000000e+00> : vector<32x128xf32>
    %585 = tpu.matmul %584, %582, %cst_412 {dimension_numbers = #tpu.dot_dimension_numbers<[1], [0], [0], [1], [0, 0, 1, 1], [], []>} : vector<32x32xf32>, vector<32x128xf32>, vector<32x128xf32> -> vector<32x128xf32>
    %586 = arith.addf %581, %585 : vector<32x128xf32>
    %c1_i32_413 = arith.constant 1 : i32
    %587 = tpu.dynamic_rotate %570 by %c1_i32_413 dim 1 : vector<32x128xf32>, i32 -> vector<32x128xf32>
    %c3_414 = arith.constant 3 : index
    %c0_415 = arith.constant 0 : index
    %c0_416 = arith.constant 0 : index
    %588 = vector.load %arg9[%c3_414, %c0_415, %c0_416] : memref<9x32x32xf32, #tpu.memory_space<vmem>>, vector<1x32x32xf32>
    %589 = vector.shape_cast %588 : vector<1x32x32xf32> to vector<32x32xf32>
    %cst_417 = arith.constant dense<0.000000e+00> : vector<32x128xf32>
    %590 = tpu.matmul %589, %587, %cst_417 {dimension_numbers = #tpu.dot_dimension_numbers<[1], [0], [0], [1], [0, 0, 1, 1], [], []>} : vector<32x32xf32>, vector<32x128xf32>, vector<32x128xf32> -> vector<32x128xf32>
    %591 = arith.addf %586, %590 : vector<32x128xf32>
    %c4_418 = arith.constant 4 : index
    %c0_419 = arith.constant 0 : index
    %c0_420 = arith.constant 0 : index
    %592 = vector.load %arg9[%c4_418, %c0_419, %c0_420] : memref<9x32x32xf32, #tpu.memory_space<vmem>>, vector<1x32x32xf32>
    %593 = vector.shape_cast %592 : vector<1x32x32xf32> to vector<32x32xf32>
    %cst_421 = arith.constant dense<0.000000e+00> : vector<32x128xf32>
    %594 = tpu.matmul %593, %570, %cst_421 {dimension_numbers = #tpu.dot_dimension_numbers<[1], [0], [0], [1], [0, 0, 1, 1], [], []>} : vector<32x32xf32>, vector<32x128xf32>, vector<32x128xf32> -> vector<32x128xf32>
    %595 = arith.addf %591, %594 : vector<32x128xf32>
    %c127_i32_422 = arith.constant 127 : i32
    %596 = tpu.dynamic_rotate %570 by %c127_i32_422 dim 1 : vector<32x128xf32>, i32 -> vector<32x128xf32>
    %c5_423 = arith.constant 5 : index
    %c0_424 = arith.constant 0 : index
    %c0_425 = arith.constant 0 : index
    %597 = vector.load %arg9[%c5_423, %c0_424, %c0_425] : memref<9x32x32xf32, #tpu.memory_space<vmem>>, vector<1x32x32xf32>
    %598 = vector.shape_cast %597 : vector<1x32x32xf32> to vector<32x32xf32>
    %cst_426 = arith.constant dense<0.000000e+00> : vector<32x128xf32>
    %599 = tpu.matmul %598, %596, %cst_426 {dimension_numbers = #tpu.dot_dimension_numbers<[1], [0], [0], [1], [0, 0, 1, 1], [], []>} : vector<32x32xf32>, vector<32x128xf32>, vector<32x128xf32> -> vector<32x128xf32>
    %600 = arith.addf %595, %599 : vector<32x128xf32>
    %c125_i32_427 = arith.constant 125 : i32
    %601 = tpu.dynamic_rotate %570 by %c125_i32_427 dim 1 : vector<32x128xf32>, i32 -> vector<32x128xf32>
    %c6_428 = arith.constant 6 : index
    %c0_429 = arith.constant 0 : index
    %c0_430 = arith.constant 0 : index
    %602 = vector.load %arg9[%c6_428, %c0_429, %c0_430] : memref<9x32x32xf32, #tpu.memory_space<vmem>>, vector<1x32x32xf32>
    %603 = vector.shape_cast %602 : vector<1x32x32xf32> to vector<32x32xf32>
    %cst_431 = arith.constant dense<0.000000e+00> : vector<32x128xf32>
    %604 = tpu.matmul %603, %601, %cst_431 {dimension_numbers = #tpu.dot_dimension_numbers<[1], [0], [0], [1], [0, 0, 1, 1], [], []>} : vector<32x32xf32>, vector<32x128xf32>, vector<32x128xf32> -> vector<32x128xf32>
    %605 = arith.addf %600, %604 : vector<32x128xf32>
    %c124_i32_432 = arith.constant 124 : i32
    %606 = tpu.dynamic_rotate %570 by %c124_i32_432 dim 1 : vector<32x128xf32>, i32 -> vector<32x128xf32>
    %c7_433 = arith.constant 7 : index
    %c0_434 = arith.constant 0 : index
    %c0_435 = arith.constant 0 : index
    %607 = vector.load %arg9[%c7_433, %c0_434, %c0_435] : memref<9x32x32xf32, #tpu.memory_space<vmem>>, vector<1x32x32xf32>
    %608 = vector.shape_cast %607 : vector<1x32x32xf32> to vector<32x32xf32>
    %cst_436 = arith.constant dense<0.000000e+00> : vector<32x128xf32>
    %609 = tpu.matmul %608, %606, %cst_436 {dimension_numbers = #tpu.dot_dimension_numbers<[1], [0], [0], [1], [0, 0, 1, 1], [], []>} : vector<32x32xf32>, vector<32x128xf32>, vector<32x128xf32> -> vector<32x128xf32>
    %610 = arith.addf %605, %609 : vector<32x128xf32>
    %c123_i32_437 = arith.constant 123 : i32
    %611 = tpu.dynamic_rotate %570 by %c123_i32_437 dim 1 : vector<32x128xf32>, i32 -> vector<32x128xf32>
    %c8_438 = arith.constant 8 : index
    %c0_439 = arith.constant 0 : index
    %c0_440 = arith.constant 0 : index
    %612 = vector.load %arg9[%c8_438, %c0_439, %c0_440] : memref<9x32x32xf32, #tpu.memory_space<vmem>>, vector<1x32x32xf32>
    %613 = vector.shape_cast %612 : vector<1x32x32xf32> to vector<32x32xf32>
    %cst_441 = arith.constant dense<0.000000e+00> : vector<32x128xf32>
    %614 = tpu.matmul %613, %611, %cst_441 {dimension_numbers = #tpu.dot_dimension_numbers<[1], [0], [0], [1], [0, 0, 1, 1], [], []>} : vector<32x32xf32>, vector<32x128xf32>, vector<32x128xf32> -> vector<32x128xf32>
    %615 = arith.addf %610, %614 : vector<32x128xf32>
    %616 = vector.broadcast %493 : vector<1x128xf32> to vector<32x128xf32>
    %617 = arith.mulf %615, %616 : vector<32x128xf32>
    %cst_442 = arith.constant dense<0.000000e+00> : vector<32xf32>
    %618 = vector.multi_reduction <add>, %617, %cst_442 [1] : vector<32x128xf32> to vector<32xf32>
    %619 = vector.shape_cast %618 : vector<32xf32> to vector<32x1xf32>
    %cst_443 = arith.constant 1.250000e-01 : f32
    %620 = vector.broadcast %cst_443 : f32 to vector<32x1xf32>
    %621 = arith.mulf %619, %620 : vector<32x1xf32>
    %622 = vector.broadcast %621 : vector<32x1xf32> to vector<32x128xf32>
    %623 = arith.subf %615, %622 : vector<32x128xf32>
    %624 = arith.mulf %623, %623 : vector<32x128xf32>
    %625 = vector.broadcast %493 : vector<1x128xf32> to vector<32x128xf32>
    %626 = arith.mulf %624, %625 : vector<32x128xf32>
    %cst_444 = arith.constant dense<0.000000e+00> : vector<32xf32>
    %627 = vector.multi_reduction <add>, %626, %cst_444 [1] : vector<32x128xf32> to vector<32xf32>
    %628 = vector.shape_cast %627 : vector<32xf32> to vector<32x1xf32>
    %cst_445 = arith.constant 1.250000e-01 : f32
    %629 = vector.broadcast %cst_445 : f32 to vector<32x1xf32>
    %630 = arith.mulf %628, %629 : vector<32x1xf32>
    %c0_446 = arith.constant 0 : index
    %c0_447 = arith.constant 0 : index
    %c0_448 = arith.constant 0 : index
    %631 = vector.load %arg17[%c0_446, %c0_447, %c0_448] : memref<2x32x1xf32, #tpu.memory_space<vmem>>, vector<1x32x1xf32>
    %632 = vector.shape_cast %631 : vector<1x32x1xf32> to vector<32x1xf32>
    %cst_449 = arith.constant 9.99999974E-6 : f32
    %633 = vector.broadcast %cst_449 : f32 to vector<32x1xf32>
    %634 = arith.addf %630, %633 : vector<32x1xf32>
    %635 = math.rsqrt %634 : vector<32x1xf32>
    %636 = vector.broadcast %635 : vector<32x1xf32> to vector<32x128xf32>
    %637 = arith.mulf %623, %636 : vector<32x128xf32>
    %638 = vector.broadcast %632 : vector<32x1xf32> to vector<32x128xf32>
    %639 = arith.mulf %638, %637 : vector<32x128xf32>
    %c1_450 = arith.constant 1 : index
    %c0_451 = arith.constant 0 : index
    %c0_452 = arith.constant 0 : index
    %640 = vector.load %arg17[%c1_450, %c0_451, %c0_452] : memref<2x32x1xf32, #tpu.memory_space<vmem>>, vector<1x32x1xf32>
    %641 = vector.shape_cast %640 : vector<1x32x1xf32> to vector<32x1xf32>
    %642 = vector.broadcast %641 : vector<32x1xf32> to vector<32x128xf32>
    %643 = arith.addf %639, %642 : vector<32x128xf32>
    %cst_453 = arith.constant 0.000000e+00 : f32
    %644 = vector.broadcast %cst_453 : f32 to vector<32x128xf32>
    %645 = arith.maximumf %643, %644 : vector<32x128xf32>
    %646 = vector.broadcast %493 : vector<1x128xf32> to vector<32x128xf32>
    %647 = arith.mulf %645, %646 : vector<32x128xf32>
    %c0_454 = arith.constant 0 : index
    %c0_455 = arith.constant 0 : index
    %648 = vector.load %arg28[%c0_454, %c0_455] : memref<32x128xf32, #tpu.memory_space<vmem>>, vector<32x128xf32>
    tpu.vector_store %arg28[%c0_454, %c0_455], %647 {strides = array<i32>} : memref<32x128xf32, #tpu.memory_space<vmem>>, vector<32x128xf32>,
    return
  }
  func.func @transform_0(%arg0: i32) -> (i32, i32) {
    %c0_i32 = arith.constant 0 : i32
    %c0_i32_0 = arith.constant 0 : i32
    %c0_i32_1 = arith.constant 0 : i32
    return %c0_i32, %c0_i32_0 : i32, i32
  }
  func.func @transform_1(%arg0: i32) -> (i32, i32, i32) {
    %c0_i32 = arith.constant 0 : i32
    %c0_i32_0 = arith.constant 0 : i32
    %c0_i32_1 = arith.constant 0 : i32
    %c0_i32_2 = arith.constant 0 : i32
    return %c0_i32, %c0_i32_0, %c0_i32_1 : i32, i32, i32
  }
  func.func @transform_2(%arg0: i32) -> (i32, i32, i32) {
    %c0_i32 = arith.constant 0 : i32
    %c0_i32_0 = arith.constant 0 : i32
    %c0_i32_1 = arith.constant 0 : i32
    %c0_i32_2 = arith.constant 0 : i32
    return %c0_i32, %c0_i32_0, %c0_i32_1 : i32, i32, i32
  }
  func.func @transform_3(%arg0: i32) -> (i32, i32, i32) {
    %c0_i32 = arith.constant 0 : i32
    %c0_i32_0 = arith.constant 0 : i32
    %c0_i32_1 = arith.constant 0 : i32
    %c0_i32_2 = arith.constant 0 : i32
    return %c0_i32, %c0_i32_0, %c0_i32_1 : i32, i32, i32
  }
  func.func @transform_4(%arg0: i32) -> (i32, i32, i32) {
    %c0_i32 = arith.constant 0 : i32
    %c0_i32_0 = arith.constant 0 : i32
    %c0_i32_1 = arith.constant 0 : i32
    %c0_i32_2 = arith.constant 0 : i32
    return %c0_i32, %c0_i32_0, %c0_i32_1 : i32, i32, i32
  }
  func.func @transform_5(%arg0: i32) -> (i32, i32, i32) {
    %c0_i32 = arith.constant 0 : i32
    %c0_i32_0 = arith.constant 0 : i32
    %c0_i32_1 = arith.constant 0 : i32
    %c0_i32_2 = arith.constant 0 : i32
    return %c0_i32, %c0_i32_0, %c0_i32_1 : i32, i32, i32
  }
  func.func @transform_6(%arg0: i32) -> (i32, i32, i32) {
    %c0_i32 = arith.constant 0 : i32
    %c0_i32_0 = arith.constant 0 : i32
    %c0_i32_1 = arith.constant 0 : i32
    %c0_i32_2 = arith.constant 0 : i32
    return %c0_i32, %c0_i32_0, %c0_i32_1 : i32, i32, i32
  }
  func.func @transform_7(%arg0: i32) -> (i32, i32, i32) {
    %c0_i32 = arith.constant 0 : i32
    %c0_i32_0 = arith.constant 0 : i32
    %c0_i32_1 = arith.constant 0 : i32
    %c0_i32_2 = arith.constant 0 : i32
    return %c0_i32, %c0_i32_0, %c0_i32_1 : i32, i32, i32
  }
  func.func @transform_8(%arg0: i32) -> (i32, i32, i32) {
    %c0_i32 = arith.constant 0 : i32
    %c0_i32_0 = arith.constant 0 : i32
    %c0_i32_1 = arith.constant 0 : i32
    %c0_i32_2 = arith.constant 0 : i32
    return %c0_i32, %c0_i32_0, %c0_i32_1 : i32, i32, i32
  }
  func.func @transform_9(%arg0: i32) -> (i32, i32, i32) {
    %c0_i32 = arith.constant 0 : i32
    %c0_i32_0 = arith.constant 0 : i32
    %c0_i32_1 = arith.constant 0 : i32
    %c0_i32_2 = arith.constant 0 : i32
    return %c0_i32, %c0_i32_0, %c0_i32_1 : i32, i32, i32
  }
  func.func @transform_10(%arg0: i32) -> (i32, i32, i32) {
    %c0_i32 = arith.constant 0 : i32
    %c0_i32_0 = arith.constant 0 : i32
    %c0_i32_1 = arith.constant 0 : i32
    %c0_i32_2 = arith.constant 0 : i32
    return %c0_i32, %c0_i32_0, %c0_i32_1 : i32, i32, i32
  }
  func.func @transform_11(%arg0: i32) -> (i32, i32, i32) {
    %c0_i32 = arith.constant 0 : i32
    %c0_i32_0 = arith.constant 0 : i32
    %c0_i32_1 = arith.constant 0 : i32
    %c0_i32_2 = arith.constant 0 : i32
    return %c0_i32, %c0_i32_0, %c0_i32_1 : i32, i32, i32
  }
  func.func @transform_12(%arg0: i32) -> (i32, i32, i32) {
    %c0_i32 = arith.constant 0 : i32
    %c0_i32_0 = arith.constant 0 : i32
    %c0_i32_1 = arith.constant 0 : i32
    %c0_i32_2 = arith.constant 0 : i32
    return %c0_i32, %c0_i32_0, %c0_i32_1 : i32, i32, i32
  }
  func.func @transform_13(%arg0: i32) -> (i32, i32, i32) {
    %c0_i32 = arith.constant 0 : i32
    %c0_i32_0 = arith.constant 0 : i32
    %c0_i32_1 = arith.constant 0 : i32
    %c0_i32_2 = arith.constant 0 : i32
    return %c0_i32, %c0_i32_0, %c0_i32_1 : i32, i32, i32
  }
  func.func @transform_14(%arg0: i32) -> (i32, i32, i32) {
    %c0_i32 = arith.constant 0 : i32
    %c0_i32_0 = arith.constant 0 : i32
    %c0_i32_1 = arith.constant 0 : i32
    %c0_i32_2 = arith.constant 0 : i32
    return %c0_i32, %c0_i32_0, %c0_i32_1 : i32, i32, i32
  }
  func.func @transform_15(%arg0: i32) -> (i32, i32, i32) {
    %c0_i32 = arith.constant 0 : i32
    %c0_i32_0 = arith.constant 0 : i32
    %c0_i32_1 = arith.constant 0 : i32
    %c0_i32_2 = arith.constant 0 : i32
    return %c0_i32, %c0_i32_0, %c0_i32_1 : i32, i32, i32
  }
  func.func @transform_16(%arg0: i32) -> (i32, i32, i32) {
    %c0_i32 = arith.constant 0 : i32
    %c0_i32_0 = arith.constant 0 : i32
    %c0_i32_1 = arith.constant 0 : i32
    %c0_i32_2 = arith.constant 0 : i32
    return %c0_i32, %c0_i32_0, %c0_i32_1 : i32, i32, i32
  }
  func.func @transform_17(%arg0: i32) -> (i32, i32) {
    %c0_i32 = arith.constant 0 : i32
    %c0_i32_0 = arith.constant 0 : i32
    %c0_i32_1 = arith.constant 0 : i32
    return %c0_i32, %c0_i32_0 : i32, i32
  }
  func.func @transform_18(%arg0: i32) -> (i32, i32) {
    %c0_i32 = arith.constant 0 : i32
    %c0_i32_0 = arith.constant 0 : i32
    %c0_i32_1 = arith.constant 0 : i32
    return %c0_i32, %c0_i32_0 : i32, i32
  }
  func.func @transform_19(%arg0: i32) -> (i32, i32) {
    %c0_i32 = arith.constant 0 : i32
    %c0_i32_0 = arith.constant 0 : i32
    %c0_i32_1 = arith.constant 0 : i32
    return %c0_i32, %c0_i32_0 : i32, i32
  }
  func.func @transform_20(%arg0: i32) -> (i32, i32) {
    %c0_i32 = arith.constant 0 : i32
    %c0_i32_0 = arith.constant 0 : i32
    %c0_i32_1 = arith.constant 0 : i32
    return %c0_i32, %c0_i32_0 : i32, i32
  }
  func.func @transform_21(%arg0: i32) -> (i32, i32) {
    %c0_i32 = arith.constant 0 : i32
    %c0_i32_0 = arith.constant 0 : i32
    %c0_i32_1 = arith.constant 0 : i32
    return %c0_i32, %c0_i32_0 : i32, i32
  }
  func.func @transform_22(%arg0: i32) -> (i32, i32) {
    %c0_i32 = arith.constant 0 : i32
    %c0_i32_0 = arith.constant 0 : i32
    %c0_i32_1 = arith.constant 0 : i32
    return %c0_i32, %c0_i32_0 : i32, i32
  }
  func.func @transform_23(%arg0: i32) -> (i32, i32) {
    %c0_i32 = arith.constant 0 : i32
    %c0_i32_0 = arith.constant 0 : i32
    %c0_i32_1 = arith.constant 0 : i32
    return %c0_i32, %c0_i32_0 : i32, i32
  }
  func.func @transform_24(%arg0: i32) -> (i32, i32) {
    %c0_i32 = arith.constant 0 : i32
    %c0_i32_0 = arith.constant 0 : i32
    %c0_i32_1 = arith.constant 0 : i32
    return %c0_i32, %c0_i32_0 : i32, i32
  }
  func.func @transform_25(%arg0: i32) -> (i32, i32) {
    %c0_i32 = arith.constant 0 : i32
    %c0_i32_0 = arith.constant 0 : i32
    %c0_i32_1 = arith.constant 0 : i32
    return %c0_i32, %c0_i32_0 : i32, i32
  }
  func.func @transform_26(%arg0: i32) -> (i32, i32) {
    %c0_i32 = arith.constant 0 : i32
    %c0_i32_0 = arith.constant 0 : i32
    %c0_i32_1 = arith.constant 0 : i32
    return %c0_i32, %c0_i32_0 : i32, i32
  }
  func.func @transform_27(%arg0: i32) -> (i32, i32) {
    %c0_i32 = arith.constant 0 : i32
    %c0_i32_0 = arith.constant 0 : i32
    %c0_i32_1 = arith.constant 0 : i32
    return %c0_i32, %c0_i32_0 : i32, i32
  }
}

</mosaic_0001>

<bundles_post_ra>
// kernel: encoder_forward.1
= control target key start
LH: loop header
LB: loop body
LE: loop exit
PB: predicated region body
PF: predicated region fallthrough
CT: control target
= control target key end

     0   :  { %s15634_s0 = inlined_call_operand.vmem [shape: f32[8,768], index: 0, kind: input, shape index: {}]   ;;  %s15635_s1 = inlined_call_operand.vmem [shape: f32[9,4,8], index: 1, kind: input, shape index: {}]   ;;  %s15636_s2 = inlined_call_operand.hbm [shape: f32[9,4,4], index: 2, kind: input, shape index: {}]   ;;  %s15637_s3 = inlined_call_operand.vmem [shape: f32[9,8,4], index: 3, kind: input, shape index: {}]   ;;  %s15638_s4 = inlined_call_operand.hbm [shape: f32[9,8,8], index: 4, kind: input, shape index: {}]   ;;  %s15639_s5 = inlined_call_operand.vmem [shape: f32[9,16,8], index: 5, kind: input, shape index: {}]   ;;  %s15640_s6 = inlined_call_operand.hbm [shape: f32[9,16,16], index: 6, kind: input, shape index: {}]   ;;  %s15641_s7 = inlined_call_operand.vmem [shape: f32[9,32,16], index: 7, kind: input, shape index: {}]   ;;  %s15642_s8 = inlined_call_operand.hbm [shape: f32[9,32,32], index: 8, kind: input, shape index: {}]   ;;  %s15643_s9 = inlined_call_operand.vmem [shape: f32[2,4,1], index: 9, kind: input, shape index: {}]   ;;  %s15644_s10 = inlined_call_operand.vmem [shape: f32[2,4,1], index: 10, kind: input, shape index: {}]   ;;  %s15645_s11 = inlined_call_operand.vmem [shape: f32[2,8,1], index: 11, kind: input, shape index: {}]   ;;  %s15646_s12 = inlined_call_operand.vmem [shape: f32[2,8,1], index: 12, kind: input, shape index: {}]   ;;  %s15647_s13 = inlined_call_operand.vmem [shape: f32[2,16,1], index: 13, kind: input, shape index: {}]   ;;  %s15648_s14 = inlined_call_operand.vmem [shape: f32[2,16,1], index: 14, kind: input, shape index: {}]   ;;  %s15649_s15 = inlined_call_operand.vmem [shape: f32[2,32,1], index: 15, kind: input, shape index: {}]   ;;  %s15650_s16 = inlined_call_operand.vmem [shape: f32[2,32,1], index: 16, kind: input, shape index: {}]   ;;  %s15651_s17 = inlined_call_operand.vmem [shape: f32[1,768], index: 17, kind: input, shape index: {}]   ;;  %s15652_s18 = inlined_call_operand.vmem [shape: f32[1,256], index: 18, kind: input, shape index: {}]   ;;  %s15653_s19 = inlined_call_operand.vmem [shape: f32[1,128], index: 19, kind: input, shape index: {}]   ;;  %s15654_s20 = inlined_call_operand.vmem [shape: f32[1,128], index: 20, kind: input, shape index: {}]   ;;  %s15655_s21 = inlined_call_operand.vmem [shape: f32[768,256], index: 21, kind: input, shape index: {}]   ;;  %s15656_s22 = inlined_call_operand.hbm [shape: f32[256,128], index: 22, kind: input, shape index: {}]   ;;  %s15657_s23 = inlined_call_operand.hbm [shape: f32[128,128], index: 23, kind: input, shape index: {}]   ;;  %s15658_s24 = inlined_call_operand.vmem [shape: f32[4,768], index: 24, kind: output, shape index: {0}]   ;;  %s15659_s25 = inlined_call_operand.vmem [shape: f32[8,256], index: 25, kind: output, shape index: {1}]   ;;  %s15660_s26 = inlined_call_operand.vmem [shape: f32[16,128], index: 26, kind: output, shape index: {2}]   ;;  %s15661_s27 = inlined_call_operand.vmem [shape: f32[32,128], index: 27, kind: output, shape index: {3}]  }
   0x1   :  { %15681 = sst [smem:[#allocation16_spill]] %s15634_s0 }
   0x2   :  { %15682 = sst [smem:[#allocation17_spill]] %s15635_s1 }
   0x3   :  { %15683 = sst [smem:[#allocation18_spill]] %s15636_s2 }
   0x4   :  { %15684 = sst [smem:[#allocation19_spill]] %s15637_s3 }
   0x5   :  { %15685 = sst [smem:[#allocation20_spill]] %s15638_s4 }
   0x6   :  { %15686 = sst [smem:[#allocation21_spill]] %s15639_s5 }
   0x7   :  { %15687 = sst [smem:[#allocation22_spill]] %s15640_s6 }
   0x8   :  { %15688 = sst [smem:[#allocation23_spill]] %s15641_s7 }
   0x9   :  { %15689 = sst [smem:[#allocation24_spill]] %s15642_s8 }
   0xa   :  { %15690 = sst [smem:[#allocation25_spill]] %s15643_s9 }
   0xb   :  { %15691 = sst [smem:[#allocation26_spill]] %s15644_s10 }
   0xc   :  { %15692 = sst [smem:[#allocation27_spill]] %s15645_s11 }
   0xd   :  { %15693 = sst [smem:[#allocation28_spill]] %s15649_s15 }
   0xe   :  { %15694 = sst [smem:[#allocation29_spill]] %s15650_s16 }
   0xf   :  { %15695 = sst [smem:[#allocation30_spill]] %s15661_s27 }
  0x10   :  { %33 = vsyncpa [#allocation3], 0 }
  0x11   :  { %34 = vsyncpa [#allocation5], 0 }
  0x12   :  { %35 = vsyncpa [#allocation8], 0 }
  0x13   :  { %36 = vsyncpa [#allocation11], 0  ;;  %s13195_s7 = smov [#allocation4]   ;;  %s15696_s9 = sld [smem:[#allocation20_spill]] }
  0x14   :  { %s60_s4 = sshll.u32 %s13195_s7, 4  ;;  %s61_s4 = int_to_ptr.vmem [resolvable:$true] %s60_s4 }
  0x19   :  { %s13055_s5 = scalar_lea.hbm %s15696_s9, 1152 }
  0x1a   :  { %p13056_p0 = scmp.ne.s32.totalorder %s15696_s9, %s13055_s5  ;;  %p13059_p1 = scmp.lt.u32.totalorder %s13055_s5, %s15696_s9 }
  0x1c   :  { %p13061_p2 = pnand %p13059_p1, %p13056_p0 }
  0x1e   :  { %13064 = shalt.err (!%p13061_p2)
}
  0x1f   :  { %s13065_s1 = scalar_lea.vmem %s61_s4, 1152  ;;  %p13070_p4 = scmp.lt.s32.totalorder %s61_s4, %s61_s4 }
  0x20   :  { %p13066_p3 = scmp.ne.s32.totalorder %s61_s4, %s13065_s1  ;;  %p13071_p5 = scmp.lt.s32.totalorder %s13065_s1, %s13065_s1 }
  0x22   :  { %p13072_p6 = por %p13071_p5, %p13070_p4 }
  0x24   :  { %p13073_p7 = pnand %p13072_p6, %p13066_p3 }
  0x26   :  { %13076 = shalt.err (!%p13073_p7)
}
  0x27   :  { %s15677_s6 = smov 128   ;;  %s15679_s11 = smov 8  }
  0x28   :  { %66 = dma.hbm_to_vmem [thread:$0]  %s15696_s9, 1152, %s61_s4, [#allocation5], %s15677_s6, %s15677_s6, %s15679_s11  }
  0x29   :  { %s13198_s7 = smov [#allocation7]   ;;  %s13199_s30 = smov [#allocation2]  }
  0x2a   :  { %s88_s8 = sshll.u32 %s13198_s7, 4  ;;  %s46_s5 = sshll.u32 %s13199_s30, 4  ;;  %s89_s8 = int_to_ptr.vmem [resolvable:$true] %s88_s8  ;;  %s47_s5 = int_to_ptr.vmem [resolvable:$true] %s46_s5 }
  0x2b   :  { %s15697_s10 = sld [smem:[#allocation24_spill]] }
  0x31   :  { %s13077_s29 = scalar_lea.hbm %s15697_s10, 4608 }
  0x32   :  { %p13078_p8 = scmp.ne.s32.totalorder %s15697_s10, %s13077_s29  ;;  %p13081_p9 = scmp.lt.u32.totalorder %s13077_s29, %s15697_s10 }
  0x34   :  { %p13083_p10 = pnand %p13081_p9, %p13078_p8 }
  0x36   :  { %13086 = shalt.err (!%p13083_p10)
}
  0x37   :  { %s13087_s4 = scalar_lea.vmem %s89_s8, 4608  ;;  %p13092_p12 = scmp.lt.s32.totalorder %s89_s8, %s89_s8 }
  0x38   :  { %p13088_p11 = scmp.ne.s32.totalorder %s89_s8, %s13087_s4  ;;  %p13093_p13 = scmp.lt.s32.totalorder %s13087_s4, %s13087_s4 }
  0x3a   :  { %p13094_p0 = por %p13093_p13, %p13092_p12 }
  0x3c   :  { %p13095_p1 = pnand %p13094_p0, %p13088_p11 }
  0x3e   :  { %13098 = shalt.err (!%p13095_p1)
}
  0x3f   :  { %94 = dma.hbm_to_vmem [thread:$0]  %s15697_s10, 4608, %s89_s8, [#allocation8], %s15677_s6, %s15677_s6, %s15679_s11  }
  0x40   :  { %s15698_s16 = sld [smem:[#allocation18_spill]] }
  0x46   :  { %s13099_s3 = scalar_lea.hbm %s15698_s16, 576 }
  0x47   :  { %p13100_p2 = scmp.ne.s32.totalorder %s15698_s16, %s13099_s3  ;;  %p13103_p3 = scmp.lt.u32.totalorder %s13099_s3, %s15698_s16 }
  0x49   :  { %p13105_p4 = pnand %p13103_p3, %p13100_p2 }
  0x4b   :  { %13108 = shalt.err (!%p13105_p4)
}
  0x4c   :  { %s13109_s29 = scalar_lea.vmem %s47_s5, 576  ;;  %p13114_p6 = scmp.lt.s32.totalorder %s47_s5, %s47_s5 }
  0x4d   :  { %p13110_p5 = scmp.ne.s32.totalorder %s47_s5, %s13109_s29  ;;  %p13115_p7 = scmp.lt.s32.totalorder %s13109_s29, %s13109_s29 }
  0x4f   :  { %p13116_p8 = por %p13115_p7, %p13114_p6 }
  0x51   :  { %p13117_p9 = pnand %p13116_p8, %p13110_p5 }
  0x53   :  { %13120 = shalt.err (!%p13117_p9)
}
  0x54   :  { %s13200_s8 = smov 64   ;;  %s13201_s10 = smov 4  }
  0x55   :  { %52 = dma.hbm_to_vmem [thread:$0]  %s15698_s16, 576, %s47_s5, [#allocation3], %s13200_s8, %s13200_s8, %s13201_s10  }
  0x56   :  { %s13202_s9 = smov [#allocation6]   ;;  %s13203_s27 = smov [#allocation9]  }
  0x57   :  { %s74_s2 = sshll.u32 %s13202_s9, 4  ;;  %s126_s15 = sshll.u32 %s13203_s27, 4  ;;  %s75_s2 = int_to_ptr.vmem [resolvable:$true] %s74_s2  ;;  %s127_s15 = int_to_ptr.vmem [resolvable:$true] %s126_s15 }
  0x58   :  { %s15699_s30 = sld [smem:[#allocation22_spill]] }
  0x5e   :  { %s13121_s28 = scalar_lea.hbm %s15699_s30, 2304 }
  0x5f   :  { %p13122_p10 = scmp.ne.s32.totalorder %s15699_s30, %s13121_s28  ;;  %p13125_p11 = scmp.lt.u32.totalorder %s13121_s28, %s15699_s30 }
  0x61   :  { %p13127_p12 = pnand %p13125_p11, %p13122_p10 }
  0x63   :  { %13130 = shalt.err (!%p13127_p12)
}
  0x64   :  { %s13131_s5 = scalar_lea.vmem %s75_s2, 2304  ;;  %p13136_p0 = scmp.lt.s32.totalorder %s75_s2, %s75_s2 }
  0x65   :  { %p13132_p13 = scmp.ne.s32.totalorder %s75_s2, %s13131_s5  ;;  %p13137_p1 = scmp.lt.s32.totalorder %s13131_s5, %s13131_s5 }
  0x67   :  { %p13138_p2 = por %p13137_p1, %p13136_p0 }
  0x69   :  { %p13139_p3 = pnand %p13138_p2, %p13132_p13 }
  0x6b   :  { %13142 = shalt.err (!%p13139_p3)
}
  0x6c   :  { %s15700_s16 = smov 8   ;;  %s15701_s8 = smov 128  }
  0x6d   :  { %80 = dma.hbm_to_vmem [thread:$0]  %s15699_s30, 2304, %s75_s2, [#allocation5], %s15701_s8, %s15701_s8, %s15700_s16  }
  0x6e   :  { %s13143_s11 = scalar_lea.hbm %s15656_s22, 4096 }
  0x6f   :  { %p13144_p4 = scmp.ne.s32.totalorder %s15656_s22, %s13143_s11  ;;  %p13147_p5 = scmp.lt.u32.totalorder %s13143_s11, %s15656_s22 }
  0x71   :  { %p13149_p6 = pnand %p13147_p5, %p13144_p4 }
  0x73   :  { %13152 = shalt.err (!%p13149_p6)
}
  0x74   :  { %s13153_s0 = scalar_lea.vmem %s127_s15, 4096  ;;  %p13158_p8 = scmp.lt.s32.totalorder %s127_s15, %s127_s15 }
  0x75   :  { %p13154_p7 = scmp.ne.s32.totalorder %s127_s15, %s13153_s0  ;;  %p13159_p9 = scmp.lt.s32.totalorder %s13153_s0, %s13153_s0 }
  0x77   :  { %p13160_p10 = por %p13159_p9, %p13158_p8 }
  0x79   :  { %p13161_p11 = pnand %p13160_p10, %p13154_p7 }
  0x7b   :  { %13164 = shalt.err (!%p13161_p11)
}
  0x7c   :  { %132 = dma.hbm_to_vmem [thread:$0]  %s15656_s22, 4096, %s127_s15, [#allocation8], %s15701_s8, %s15701_s8, %s15700_s16  }
  0x7d   :  { %s13204_s29 = smov [#allocation10]   ;;  %s13165_s9 = scalar_lea.hbm %s15657_s23, 2048 }
  0x7e   :  { %s138_s5 = sshll.u32 %s13204_s29, 4  ;;  %p13166_p12 = scmp.ne.s32.totalorder %s15657_s23, %s13165_s9  ;;  %s139_s5 = int_to_ptr.vmem [resolvable:$true] %s138_s5 }
  0x7f   :  { %p13169_p13 = scmp.lt.u32.totalorder %s13165_s9, %s15657_s23 }
  0x81   :  { %p13171_p0 = pnand %p13169_p13, %p13166_p12 }
  0x83   :  { %13174 = shalt.err (!%p13171_p0)
}
  0x84   :  { %s13175_s7 = scalar_lea.vmem %s139_s5, 2048  ;;  %p13180_p2 = scmp.lt.s32.totalorder %s139_s5, %s139_s5 }
  0x85   :  { %p13176_p1 = scmp.ne.s32.totalorder %s139_s5, %s13175_s7  ;;  %p13181_p3 = scmp.lt.s32.totalorder %s13175_s7, %s13175_s7 }
  0x87   :  { %p13182_p4 = por %p13181_p3, %p13180_p2 }
  0x89   :  { %p13183_p5 = pnand %p13182_p4, %p13176_p1 }
  0x8b   :  { %13186 = shalt.err (!%p13183_p5)
}
  0x8c   :  { %144 = dma.hbm_to_vmem [thread:$0]  %s15657_s23, 2048, %s139_s5, [#allocation11], %s15701_s8, %s15701_s8, %s15700_s16  }
  0x8d   :  { %13187 = dma.done.wait [#allocation3], 576  }
  0x8e   :  { %13188 = vsyncadd [#allocation3], 4294966720 }
  0x8f   :  { %13189 = dma.done.wait [#allocation5], 3456  }
  0x90   :  { %13190 = vsyncadd [#allocation5], 4294963840 }
  0x91   :  { %13191 = dma.done.wait [#allocation8], 8704  }
  0x92   :  { %13192 = vsyncadd [#allocation8], 4294958592 }
  0x93   :  { %13193 = dma.done.wait [#allocation11], 2048  }
  0x94   :  { %13194 = vsyncadd [#allocation11], 4294965248  ;;  %v13205_v0 = vmov 0.0   ;;  %s15702_s2 = sld [smem:[#allocation16_spill]]  ;;  %s13206_s16 = smov 18   ;;  %v182_v7 = vlaneseq  ;;  %vm213_vm1 = vcmask 64512  }
  0x95   :  { %281 = vmatprep.mubr.f32.mxu0 %v13205_v0  ;;  %352 = vmatprep.mubr.f32.mxu1 %v13205_v0  ;;  %s13207_s27 = smov 19   ;;  %s13208_s3 = smov 17   ;;  %vm2365_vm9 = vcmask 1043456   ;;  %vm2496_vm10 = vcmask 31744  }
  0x96   :  { %s13209_s7 = smov 1   ;;  %s13210_s22 = smov 127   ;;  %v13587_v8 = vand.u32 127, %v182_v7 }
  0x97   :  { %s13211_s15 = smov 111   ;;  %s13212_s28 = smov 110  }
  0x98   :  { %s13213_s0 = smov 109   ;;  %vm204_vm0 = vcmp.lt.s32.totalorder %v13587_v8, 18  ;;  %s15703_s23 = sld [smem:[#allocation17_spill]]  ;;  %vm184_vm2 = vcmp.lt.s32.totalorder %v13587_v8, 19  ;;  %vm658_vm3 = vcmp.lt.s32.totalorder %v13587_v8, 17  ;;  %vm901_vm4 = vcmp.lt.s32.totalorder %v13587_v8, 1 }
  0x99   :  { %vm1368_vm5 = vcmp.lt.s32.totalorder %v13587_v8, 127  ;;  %vm1611_vm6 = vcmp.lt.s32.totalorder %v13587_v8, 111  ;;  %vm1854_vm7 = vcmp.lt.s32.totalorder %v13587_v8, 110  ;;  %vm2097_vm8 = vcmp.lt.s32.totalorder %v13587_v8, 109  ;;  %s13219_s29 = smov 118   ;;  %s13220_s5 = smov 117  }
  0x9a   :  { %v13463_v1 = vld [vmem:[%s15702_s2 + $0x28] sm:$0xff]  ;;  %v13468_v2 = vld [vmem:[%s15702_s2] sm:$0xff]  ;;  %v13477_v3 = vld [vmem:[%s15702_s2 + $0x10] sm:$0xff]  ;;  %vm5369_vm11 = vcmp.lt.s32.totalorder %v13587_v8, 10  ;;  %s15706_s9 = sld [smem:[#allocation19_spill]]  ;;  %vm5361_vm12 = vcmp.lt.s32.totalorder %v13587_v8, 11 }
  0x9b   :  { %202 = vrot.lane.b32.xlu1 %v13463_v1, %s13206_s16  ;;  %192 = vrot.lane.b32.xlu0 %v13468_v2, %s13206_s16  ;;  %v13482_v4 = vld [vmem:[%s15702_s2 + $0x8] sm:$0xff]  ;;  %v13491_v5 = vld [vmem:[%s15702_s2 + $0x20] sm:$0xff]  ;;  %vm5538_vm13 = vcmp.lt.s32.totalorder %v13587_v8, 9  ;;  %vm5893_vm14 = vcmp.lt.s32.totalorder %v13587_v8, 119  ;;  %vm5984_vm15 = vcmp.lt.s32.totalorder %v13587_v8, 118  ;;  %s13221_s1 = smov 7  }
  0x9c   :  { %v13496_v6 = vld [vmem:[%s15702_s2 + $0x18] sm:$0xff]  ;;  %s15704_s2 = sld [smem:[#allocation25_spill]]  ;;  %s13222_s4 = smov 6  }
  0x9d   :  { %s13224_s6 = smov 123   ;;  %s13226_s11 = smov 122  }
  0x9e   :  { %v11203_v14 = vld [vmem:[%s15703_s23 + $0x4] sm:$0xf]  ;;  %v191_v27 = vld [vmem:[%s15703_s23] sm:$0xf]  ;;  %v11210_v40 = vld [vmem:[%s15703_s23 + $0x8] sm:$0xf] }
  0x9f   :  { %196 = vrot.lane.b32.xlu1 %v13477_v3, %s13206_s16  ;;  %194 = vrot.lane.b32.xlu0 %v13482_v4, %s13206_s16  ;;  %v11214_v53 = vld [vmem:[%s15703_s23 + $0xc] sm:$0xf]  ;;  %v11218_v63 = vld [vmem:[%s15703_s23 + $0x10] sm:$0xf]  ;;  %s13227_s30 = smov 3   ;;  %s15712_s8 = sld [smem:[#allocation30_spill]] }
  0xa3   :  { %200 = vrot.lane.b32.xlu1 %v13491_v5, %s13206_s16  ;;  %198 = vrot.lane.b32.xlu0 %v13496_v6, %s13206_s16 }
  0xa7   :  { %172 = vrot.lane.b32.xlu1 %v13482_v4, %s13207_s27  ;;  %170 = vrot.lane.b32.xlu0 %v13468_v2, %s13207_s27 }
  0xab   :  { %174 = vrot.lane.b32.xlu1 %v13477_v3, %s13207_s27  ;;  %180 = vrot.lane.b32.xlu0 %v13463_v1, %s13207_s27 }
  0xaf   :  { %178 = vrot.lane.b32.xlu1 %v13491_v5, %s13207_s27  ;;  %176 = vrot.lane.b32.xlu0 %v13496_v6, %s13207_s27 }
  0xb3   :  { %648 = vrot.lane.b32.xlu1 %v13482_v4, %s13208_s3  ;;  %646 = vrot.lane.b32.xlu0 %v13468_v2, %s13208_s3 }
  0xb7   :  { %650 = vrot.lane.b32.xlu1 %v13477_v3, %s13208_s3  ;;  %656 = vrot.lane.b32.xlu0 %v13463_v1, %s13208_s3 }
  0xbb   :  { %654 = vrot.lane.b32.xlu1 %v13491_v5, %s13208_s3  ;;  %652 = vrot.lane.b32.xlu0 %v13496_v6, %s13208_s3 }
  0xbf   :  { %891 = vrot.lane.b32.xlu1 %v13482_v4, %s13209_s7  ;;  %889 = vrot.lane.b32.xlu0 %v13468_v2, %s13209_s7 }
  0xc3   :  { %893 = vrot.lane.b32.xlu1 %v13477_v3, %s13209_s7  ;;  %899 = vrot.lane.b32.xlu0 %v13463_v1, %s13209_s7 }
  0xc7   :  { %897 = vrot.lane.b32.xlu1 %v13491_v5, %s13209_s7  ;;  %895 = vrot.lane.b32.xlu0 %v13496_v6, %s13209_s7 }
  0xcb   :  { %1360 = vrot.lane.b32.xlu1 %v13477_v3, %s13210_s22  ;;  %1358 = vrot.lane.b32.xlu0 %v13482_v4, %s13210_s22 }
  0xcf   :  { %1362 = vrot.lane.b32.xlu1 %v13496_v6, %s13210_s22  ;;  %1356 = vrot.lane.b32.xlu0 %v13468_v2, %s13210_s22 }
  0xd3   :  { %1366 = vrot.lane.b32.xlu1 %v13463_v1, %s13210_s22  ;;  %1364 = vrot.lane.b32.xlu0 %v13491_v5, %s13210_s22 }
  0xd7   :  { %1603 = vrot.lane.b32.xlu1 %v13477_v3, %s13211_s15  ;;  %1601 = vrot.lane.b32.xlu0 %v13482_v4, %s13211_s15 }
  0xdb   :  { %1605 = vrot.lane.b32.xlu1 %v13496_v6, %s13211_s15  ;;  %1599 = vrot.lane.b32.xlu0 %v13468_v2, %s13211_s15 }
  0xdf   :  { %1609 = vrot.lane.b32.xlu1 %v13463_v1, %s13211_s15  ;;  %1607 = vrot.lane.b32.xlu0 %v13491_v5, %s13211_s15 }
  0xe3   :  { %1846 = vrot.lane.b32.xlu1 %v13477_v3, %s13212_s28  ;;  %1844 = vrot.lane.b32.xlu0 %v13482_v4, %s13212_s28 }
  0xe7   :  { %1848 = vrot.lane.b32.xlu1 %v13496_v6, %s13212_s28  ;;  %1842 = vrot.lane.b32.xlu0 %v13468_v2, %s13212_s28 }
  0xeb   :  { %1852 = vrot.lane.b32.xlu1 %v13463_v1, %s13212_s28  ;;  %1850 = vrot.lane.b32.xlu0 %v13491_v5, %s13212_s28 }
  0xef   :  { %2089 = vrot.lane.b32.xlu1 %v13477_v3, %s13213_s0  ;;  %2087 = vrot.lane.b32.xlu0 %v13482_v4, %s13213_s0 }
  0xf3   :  { %2091 = vrot.lane.b32.xlu1 %v13496_v6, %s13213_s0  ;;  %2085 = vrot.lane.b32.xlu0 %v13468_v2, %s13213_s0 }
  0xf7   :  { %2095 = vrot.lane.b32.xlu1 %v13463_v1, %s13213_s0  ;;  %2093 = vrot.lane.b32.xlu0 %v13491_v5, %s13213_s0 }
 0x10d   :  { %v203_v9 = vpop.permute.xlu1 %202  ;;  %v193_v10 = vpop.permute.xlu0 %192 }
 0x10e   :  { %v210_v15 = vsel %vm204_vm0, %v203_v9, %v193_v10 }
 0x111   :  { %v197_v11 = vpop.permute.xlu1 %196  ;;  %v195_v12 = vpop.permute.xlu0 %194 }
 0x112   :  { %v209_v13 = vsel %vm204_vm0, %v193_v10, %v195_v12  ;;  %v208_v21 = vsel %vm204_vm0, %v195_v12, %v197_v11 }
 0x113   :  { %217 = vmatprep.subr.mxu0 %v209_v13 }
 0x114   :  { %218 = vmatpush1.msra.mxu0 %v210_v15 }
 0x115   :  { %v201_v16 = vpop.permute.xlu1 %200  ;;  %v199_v17 = vpop.permute.xlu0 %198  ;;  %11204 = vmatmul.mubr.msk.f32.vlgmr.msra.gmra.mrb[0].mxu0 %vm213_vm1, %v11203_v14 }
 0x116   :  { %v207_v18 = vsel %vm204_vm0, %v197_v11, %v199_v17  ;;  %v205_v19 = vsel %vm204_vm0, %v201_v16, %v203_v9  ;;  %v206_v20 = vsel %vm204_vm0, %v199_v17, %v201_v16  ;;  %423 = vmatprep.mubr.f32.mxu0 %v13205_v0 }
 0x117   :  { %288 = vmatprep.subr.mxu1 %v207_v18  ;;  %359 = vmatprep.subr.mxu0 %v205_v19 }
 0x118   :  { %289 = vmatpush1.msra.mxu1 %v208_v21  ;;  %360 = vmatpush1.msra.mxu0 %v206_v20  ;;  %v11226_v20 = vld [vmem:[%s15703_s23 + $0x18] sm:$0xf] }
 0x119   :  { %v173_v22 = vpop.permute.xlu1 %172  ;;  %v171_v23 = vpop.permute.xlu0 %170  ;;  %11206 = vmatmul.mubr.msk.f32.vlgmr.msra.gmra.mrb[2].mxu0 %vm213_vm1, %v11203_v14  ;;  %11205 = vmatmul.mubr.msk.f32.vlgmr.msra.gmra.mrb[0].mxu1 %vm213_vm1, %v11203_v14 }
 0x11a   :  { %v189_v24 = vsel %vm184_vm2, %v171_v23, %v173_v22  ;;  %497 = vmatprep.mubr.f32.mxu0 %v13205_v0  ;;  %568 = vmatprep.mubr.f32.mxu1 %v13205_v0 }
 0x11b   :  { %433 = vmatprep.subr.mxu0 %v189_v24 }
 0x11d   :  { %v175_v25 = vpop.permute.xlu1 %174  ;;  %v181_v26 = vpop.permute.xlu0 %180 }
 0x11e   :  { %v190_v28 = vsel %vm184_vm2, %v181_v26, %v171_v23  ;;  %v188_v34 = vsel %vm184_vm2, %v173_v22, %v175_v25 }
 0x11f   :  { %434 = vmatpush1.msra.mxu0 %v190_v28 }
 0x120   :  { %11207 = vmatmul.mubr.msk.f32.vlgmr.msra.gmra.mrb[0].mxu0 %vm213_vm1, %v191_v27 }
 0x121   :  { %v179_v29 = vpop.permute.xlu1 %178  ;;  %v177_v30 = vpop.permute.xlu0 %176  ;;  %639 = vmatprep.mubr.f32.mxu0 %v13205_v0 }
 0x122   :  { %v187_v31 = vsel %vm184_vm2, %v175_v25, %v177_v30  ;;  %v185_v32 = vsel %vm184_vm2, %v179_v29, %v181_v26  ;;  %v186_v33 = vsel %vm184_vm2, %v177_v30, %v179_v29 }
 0x123   :  { %504 = vmatprep.subr.mxu1 %v187_v31  ;;  %575 = vmatprep.subr.mxu0 %v185_v32  ;;  %v11230_v32 = vld [vmem:[%s15703_s23 + $0x1c] sm:$0xf] }
 0x124   :  { %505 = vmatpush1.msra.mxu1 %v188_v34  ;;  %576 = vmatpush1.msra.mxu0 %v186_v33 }
 0x125   :  { %v649_v35 = vpop.permute.xlu1 %648  ;;  %v647_v36 = vpop.permute.xlu0 %646  ;;  %11209 = vmatmul.mubr.msk.f32.vlgmr.msra.gmra.mrb[2].mxu0 %vm213_vm1, %v191_v27  ;;  %11208 = vmatmul.mubr.msk.f32.vlgmr.msra.gmra.mrb[0].mxu1 %vm213_vm1, %v191_v27 }
 0x126   :  { %v663_v37 = vsel %vm658_vm3, %v647_v36, %v649_v35  ;;  %734 = vmatprep.mubr.f32.mxu0 %v13205_v0  ;;  %805 = vmatprep.mubr.f32.mxu1 %v13205_v0 }
 0x127   :  { %670 = vmatprep.subr.mxu0 %v663_v37 }
 0x129   :  { %v651_v38 = vpop.permute.xlu1 %650  ;;  %v657_v39 = vpop.permute.xlu0 %656 }
 0x12a   :  { %v664_v41 = vsel %vm658_vm3, %v657_v39, %v647_v36  ;;  %v662_v47 = vsel %vm658_vm3, %v649_v35, %v651_v38 }
 0x12b   :  { %671 = vmatpush1.msra.mxu0 %v664_v41 }
 0x12c   :  { %11211 = vmatmul.mubr.msk.f32.vlgmr.msra.gmra.mrb[0].mxu0 %vm213_vm1, %v11210_v40 }
 0x12d   :  { %v655_v42 = vpop.permute.xlu1 %654  ;;  %v653_v43 = vpop.permute.xlu0 %652  ;;  %876 = vmatprep.mubr.f32.mxu0 %v13205_v0 }
 0x12e   :  { %v661_v44 = vsel %vm658_vm3, %v651_v38, %v653_v43  ;;  %v659_v45 = vsel %vm658_vm3, %v655_v42, %v657_v39  ;;  %v660_v46 = vsel %vm658_vm3, %v653_v43, %v655_v42 }
 0x12f   :  { %741 = vmatprep.subr.mxu1 %v661_v44  ;;  %812 = vmatprep.subr.mxu0 %v659_v45  ;;  %v11234_v45 = vld [vmem:[%s15703_s23 + $0x20] sm:$0xf] }
 0x130   :  { %742 = vmatpush1.msra.mxu1 %v662_v47  ;;  %813 = vmatpush1.msra.mxu0 %v660_v46 }
 0x131   :  { %v892_v48 = vpop.permute.xlu1 %891  ;;  %v890_v49 = vpop.permute.xlu0 %889  ;;  %11213 = vmatmul.mubr.msk.f32.vlgmr.msra.gmra.mrb[2].mxu0 %vm213_vm1, %v11210_v40  ;;  %11212 = vmatmul.mubr.msk.f32.vlgmr.msra.gmra.mrb[0].mxu1 %vm213_vm1, %v11210_v40 }
 0x132   :  { %v906_v50 = vsel %vm901_vm4, %v890_v49, %v892_v48  ;;  %977 = vmatprep.mubr.f32.mxu0 %v13205_v0  ;;  %1048 = vmatprep.mubr.f32.mxu1 %v13205_v0 }
 0x133   :  { %913 = vmatprep.subr.mxu0 %v906_v50 }
 0x135   :  { %v894_v51 = vpop.permute.xlu1 %893  ;;  %v900_v52 = vpop.permute.xlu0 %899 }
 0x136   :  { %v907_v54 = vsel %vm901_vm4, %v900_v52, %v890_v49  ;;  %v905_v60 = vsel %vm901_vm4, %v892_v48, %v894_v51 }
 0x137   :  { %914 = vmatpush1.msra.mxu0 %v907_v54 }
 0x138   :  { %11215 = vmatmul.mubr.msk.f32.vlgmr.msra.gmra.mrb[0].mxu0 %vm213_vm1, %v11214_v53 }
 0x139   :  { %v898_v55 = vpop.permute.xlu1 %897  ;;  %v896_v56 = vpop.permute.xlu0 %895  ;;  %1119 = vmatprep.mubr.f32.mxu0 %v13205_v0 }
 0x13a   :  { %v904_v57 = vsel %vm901_vm4, %v894_v51, %v896_v56  ;;  %v902_v58 = vsel %vm901_vm4, %v898_v55, %v900_v52  ;;  %v903_v59 = vsel %vm901_vm4, %v896_v56, %v898_v55  ;;  %v169_v55 = vld [vmem:[%s15651_s17] sm:$0x3f]  ;;  %s13225_s17 = smov 121  }
 0x13b   :  { %984 = vmatprep.subr.mxu1 %v904_v57  ;;  %1055 = vmatprep.subr.mxu0 %v902_v58 }
 0x13c   :  { %985 = vmatpush1.msra.mxu1 %v905_v60  ;;  %1056 = vmatpush1.msra.mxu0 %v903_v59 }
 0x13d   :  { %v1361_v61 = vpop.permute.xlu1 %1360  ;;  %11217 = vmatmul.mubr.msk.f32.vlgmr.msra.gmra.mrb[2].mxu0 %vm213_vm1, %v11214_v53  ;;  %v1359_v62 = vpop.permute.xlu0 %1358  ;;  %1137 = vmatprep.subr.mxu0 %v13482_v4 }
 0x13e   :  { %1138 = vmatpush1.msra.mxu0 %v13468_v2  ;;  %11216 = vmatmul.mubr.msk.f32.vlgmr.msra.gmra.mrb[0].mxu1 %vm213_vm1, %v11214_v53  ;;  %v1372_v4 = vsel %vm1368_vm5, %v1359_v62, %v1361_v61  ;;  %v13780_v53 = vshrl.u32 %v182_v7, 7 }
 0x13f   :  { %1201 = vmatprep.mubr.f32.mxu0 %v13205_v0  ;;  %1279 = vmatprep.subr.mxu0 %v13463_v1 }
 0x140   :  { %1208 = vmatprep.subr.mxu1 %v13496_v6  ;;  %1272 = vmatprep.mubr.f32.mxu1 %v13205_v0  ;;  %v2331_v54 = vsub.s32 0, %v13780_v53  ;;  %v2335_v56 = vsub.s32 1, %v13780_v53  ;;  %v2339_v59 = vsub.s32 2, %v13780_v53  ;;  %v2343_v7 = vsub.s32 3, %v13780_v53 }
 0x141   :  { %v1363_v9 = vpop.permute.xlu1 %1362  ;;  %11219 = vmatmul.mubr.msk.f32.vlgmr.msra.gmra.mrb[0].mxu0 %vm213_vm1, %v11218_v63  ;;  %v1357_v2 = vpop.permute.xlu0 %1356  ;;  %1209 = vmatpush1.msra.mxu1 %v13477_v3 }
 0x142   :  { %1280 = vmatpush1.msra.mxu0 %v13491_v5  ;;  %1343 = vmatprep.mubr.f32.mxu0 %v13205_v0  ;;  %v1373_v6 = vsel %vm1368_vm5, %v1357_v2, %v1359_v62  ;;  %v11222_v5 = vld [vmem:[%s15703_s23 + $0x14] sm:$0xf]  ;;  %v1371_v12 = vsel %vm1368_vm5, %v1361_v61, %v1363_v9  ;;  %v13789_v57 = vrot.slane %v169_v55, %v2331_v54  ;;  %v2347_v61 = vsub.s32 4, %v13780_v53  ;;  %s13223_s23 = smov 5  }
 0x143   :  { %1380 = vmatprep.subr.mxu0 %v1372_v4  ;;  %v13793_v58 = vrot.slane %v169_v55, %v2335_v56  ;;  %v2351_v4 = vsub.s32 5, %v13780_v53 }
 0x145   :  { %v1367_v1 = vpop.permute.xlu1 %1366  ;;  %11221 = vmatmul.mubr.msk.f32.vlgmr.msra.gmra.mrb[2].mxu0 %vm213_vm1, %v11218_v63  ;;  %v1365_v10 = vpop.permute.xlu0 %1364 }
 0x146   :  { %1381 = vmatpush1.msra.mxu0 %v1373_v6  ;;  %v1370_v11 = vsel %vm1368_vm5, %v1363_v9, %v1365_v10  ;;  %v1374_v3 = vsel %vm1368_vm5, %v1367_v1, %v1357_v2  ;;  %11220 = vmatmul.mubr.msk.f32.vlgmr.msra.gmra.mrb[0].mxu1 %vm213_vm1, %v11218_v63  ;;  %v1369_v14 = vsel %vm1368_vm5, %v1365_v10, %v1367_v1 }
 0x147   :  { %1451 = vmatprep.subr.mxu1 %v1370_v11  ;;  %1522 = vmatprep.subr.mxu0 %v1374_v3  ;;  %v13800_v2 = vrot.slane %v169_v55, %v2339_v59  ;;  %v13804_v6 = vrot.slane %v169_v55, %v2343_v7  ;;  %v13807_v11 = vrot.slane %v169_v55, %v2347_v61 }
 0x148   :  { %1444 = vmatprep.mubr.f32.mxu0 %v13205_v0  ;;  %1452 = vmatpush1.msra.mxu1 %v1371_v12 }
 0x149   :  { %v1604_v13 = vpop.permute.xlu1 %1603  ;;  %11223 = vmatmul.mubr.msk.f32.vlgmr.msra.gmra.mrb[0].mxu0 %vm213_vm1, %v11222_v5  ;;  %v1602_v15 = vpop.permute.xlu0 %1601  ;;  %1515 = vmatprep.mubr.f32.mxu1 %v13205_v0 }
 0x14a   :  { %1523 = vmatpush1.msra.mxu0 %v1369_v14  ;;  %v1615_v16 = vsel %vm1611_vm6, %v1602_v15, %v1604_v13  ;;  %1586 = vmatprep.mubr.f32.mxu0 %v13205_v0 }
 0x14b   :  { %1623 = vmatprep.subr.mxu0 %v1615_v16  ;;  %v13810_v16 = vrot.slane %v169_v55, %v2351_v4  ;;  %v11238_v4 = vld [vmem:[%s15704_s2 + $0x4] sm:$0xf] }
 0x14d   :  { %v1606_v17 = vpop.permute.xlu1 %1605  ;;  %v1600_v18 = vpop.permute.xlu0 %1599  ;;  %11225 = vmatmul.mubr.msk.f32.vlgmr.msra.gmra.mrb[2].mxu0 %vm213_vm1, %v11222_v5 }
 0x14e   :  { %v1616_v19 = vsel %vm1611_vm6, %v1600_v18, %v1602_v15  ;;  %1687 = vmatprep.mubr.f32.mxu0 %v13205_v0  ;;  %11224 = vmatmul.mubr.msk.f32.vlgmr.msra.gmra.mrb[0].mxu1 %vm213_vm1, %v11222_v5  ;;  %v1614_v26 = vsel %vm1611_vm6, %v1604_v13, %v1606_v17 }
 0x14f   :  { %1624 = vmatpush1.msra.mxu0 %v1616_v19  ;;  %1758 = vmatprep.mubr.f32.mxu1 %v13205_v0 }
 0x151   :  { %v1610_v21 = vpop.permute.xlu1 %1609  ;;  %v1608_v22 = vpop.permute.xlu0 %1607  ;;  %11227 = vmatmul.mubr.msk.f32.vlgmr.msra.gmra.mrb[0].mxu0 %vm213_vm1, %v11226_v20 }
 0x152   :  { %v1613_v23 = vsel %vm1611_vm6, %v1606_v17, %v1608_v22  ;;  %v1617_v24 = vsel %vm1611_vm6, %v1610_v21, %v1600_v18  ;;  %v1612_v25 = vsel %vm1611_vm6, %v1608_v22, %v1610_v21  ;;  %1829 = vmatprep.mubr.f32.mxu0 %v13205_v0 }
 0x153   :  { %1694 = vmatprep.subr.mxu1 %v1613_v23  ;;  %1765 = vmatprep.subr.mxu0 %v1617_v24 }
 0x154   :  { %1695 = vmatpush1.msra.mxu1 %v1614_v26  ;;  %1766 = vmatpush1.msra.mxu0 %v1612_v25 }
 0x155   :  { %v1847_v27 = vpop.permute.xlu1 %1846  ;;  %v1845_v28 = vpop.permute.xlu0 %1844  ;;  %11229 = vmatmul.mubr.msk.f32.vlgmr.msra.gmra.mrb[2].mxu0 %vm213_vm1, %v11226_v20 }
 0x156   :  { %v1858_v29 = vsel %vm1854_vm7, %v1845_v28, %v1847_v27  ;;  %11228 = vmatmul.mubr.msk.f32.vlgmr.msra.gmra.mrb[0].mxu1 %vm213_vm1, %v11226_v20  ;;  %1930 = vmatprep.mubr.f32.mxu0 %v13205_v0 }
 0x157   :  { %1866 = vmatprep.subr.mxu0 %v1858_v29  ;;  %2001 = vmatprep.mubr.f32.mxu1 %v13205_v0  ;;  %v13214_v29 = vmov 0  }
 0x158   :  { %12801 = vset.pattern.permute.xlu0 %v13214_v29  ;;  %12802 = vset.pattern.permute.xlu1 %v13214_v29 }
 0x159   :  { %v1849_v30 = vpop.permute.xlu1 %1848  ;;  %v1843_v31 = vpop.permute.xlu0 %1842 }
 0x15a   :  { %v1859_v33 = vsel %vm1854_vm7, %v1843_v31, %v1845_v28  ;;  %v1857_v39 = vsel %vm1854_vm7, %v1847_v27, %v1849_v30  ;;  %v2412_v28 = vld [vmem:[%s15704_s2] sm:$0xf] }
 0x15b   :  { %1867 = vmatpush1.msra.mxu0 %v1859_v33 }
 0x15c   :  { %11231 = vmatmul.mubr.msk.f32.vlgmr.msra.gmra.mrb[0].mxu0 %vm213_vm1, %v11230_v32 }
 0x15d   :  { %v1853_v34 = vpop.permute.xlu1 %1852  ;;  %v1851_v35 = vpop.permute.xlu0 %1850  ;;  %2072 = vmatprep.mubr.f32.mxu0 %v13205_v0 }
 0x15e   :  { %v1856_v36 = vsel %vm1854_vm7, %v1849_v30, %v1851_v35  ;;  %v1860_v37 = vsel %vm1854_vm7, %v1853_v34, %v1843_v31  ;;  %v1855_v38 = vsel %vm1854_vm7, %v1851_v35, %v1853_v34 }
 0x15f   :  { %1937 = vmatprep.subr.mxu1 %v1856_v36  ;;  %2008 = vmatprep.subr.mxu0 %v1860_v37 }
 0x160   :  { %1938 = vmatpush1.msra.mxu1 %v1857_v39  ;;  %2009 = vmatpush1.msra.mxu0 %v1855_v38 }
 0x161   :  { %v2090_v40 = vpop.permute.xlu1 %2089  ;;  %v2088_v41 = vpop.permute.xlu0 %2087  ;;  %11233 = vmatmul.mubr.msk.f32.vlgmr.msra.gmra.mrb[2].mxu0 %vm213_vm1, %v11230_v32  ;;  %11232 = vmatmul.mubr.msk.f32.vlgmr.msra.gmra.mrb[0].mxu1 %vm213_vm1, %v11230_v32 }
 0x162   :  { %v2101_v42 = vsel %vm2097_vm8, %v2088_v41, %v2090_v40  ;;  %2173 = vmatprep.mubr.f32.mxu0 %v13205_v0  ;;  %2244 = vmatprep.mubr.f32.mxu1 %v13205_v0 }
 0x163   :  { %2109 = vmatprep.subr.mxu0 %v2101_v42 }
 0x165   :  { %v2092_v43 = vpop.permute.xlu1 %2091  ;;  %v2086_v44 = vpop.permute.xlu0 %2085 }
 0x166   :  { %v2102_v46 = vsel %vm2097_vm8, %v2086_v44, %v2088_v41  ;;  %v2100_v52 = vsel %vm2097_vm8, %v2090_v40, %v2092_v43 }
 0x167   :  { %2110 = vmatpush1.msra.mxu0 %v2102_v46 }
 0x168   :  { %11235 = vmatmul.mubr.msk.f32.vlgmr.msra.gmra.mrb[0].mxu0 %vm213_vm1, %v11234_v45 }
 0x169   :  { %v2096_v47 = vpop.permute.xlu1 %2095  ;;  %v2094_v48 = vpop.permute.xlu0 %2093  ;;  %2315 = vmatprep.mubr.f32.mxu0 %v13205_v0 }
 0x16a   :  { %v2099_v49 = vsel %vm2097_vm8, %v2092_v43, %v2094_v48  ;;  %v2103_v50 = vsel %vm2097_vm8, %v2096_v47, %v2086_v44  ;;  %v2098_v51 = vsel %vm2097_vm8, %v2094_v48, %v2096_v47 }
 0x16b   :  { %2180 = vmatprep.subr.mxu1 %v2099_v49  ;;  %2251 = vmatprep.subr.mxu0 %v2103_v50 }
 0x16c   :  { %2181 = vmatpush1.msra.mxu1 %v2100_v52  ;;  %2252 = vmatpush1.msra.mxu0 %v2098_v51 }
 0x16d   :  { %11236 = vmatmul.mubr.msk.f32.vlgmr.msra.gmra.mrb[0].mxu1 %vm213_vm1, %v11234_v45  ;;  %11237 = vmatmul.mubr.msk.f32.vlgmr.msra.gmra.mrb[2].mxu0 %vm213_vm1, %v11234_v45 }
 0x16e   :  { %2582 = vmatprep.mubr.f32.mxu1 %v13205_v0 }
 0x23b   :  { %v2175_v60 = vpop.f32.mrb[0].mxu0 }
 0x23c   :  { %v2359_v62 = vmul.f32 %v13789_v57, %v2175_v60  ;;  %v2177_v63 = vpop.f32.mrb[1].mxu0 }
 0x23d   :  { %v2360_v9 = vmul.f32 %v13793_v58, %v2177_v63 }
 0x23e   :  { %v2366_v1 = vsel %vm2365_vm9, %v2359_v62, 0.0 }
 0x23f   :  { %v2367_v10 = vsel %vm2365_vm9, %v2360_v9, 0.0 }
 0x240   :  { %v2368_v3 = vadd.f32 %v2367_v10, %v2366_v1  ;;  %v2246_v5 = vpop.f32.mrb[0].mxu1  ;;  %v2317_v12 = vpop.f32.mrb[2].mxu0 }
 0x241   :  { %v2361_v13 = vmul.f32 %v13800_v2, %v2246_v5  ;;  %v2248_v14 = vpop.f32.mrb[1].mxu1  ;;  %v2319_v15 = vpop.f32.mrb[3].mxu0  ;;  %v2363_v19 = vmul.f32 %v13807_v11, %v2317_v12 }
 0x242   :  { %v2362_v17 = vmul.f32 %v13804_v6, %v2248_v14  ;;  %v2364_v22 = vmul.f32 %v13810_v16, %v2319_v15 }
 0x243   :  { %v2369_v18 = vsel %vm2365_vm9, %v2361_v13, 0.0  ;;  %v2373_v24 = vsel %vm2365_vm9, %v2363_v19, 0.0 }
 0x244   :  { %v2370_v20 = vadd.f32 %v2369_v18, %v2368_v3  ;;  %v2371_v21 = vsel %vm2365_vm9, %v2362_v17, 0.0  ;;  %v2375_v26 = vsel %vm2365_vm9, %v2364_v22, 0.0 }
 0x246   :  { %v2372_v23 = vadd.f32 %v2371_v21, %v2370_v20 }
 0x248   :  { %v2374_v25 = vadd.f32 %v2373_v24, %v2372_v23 }
 0x24a   :  { %v2376_v27 = vadd.f32 %v2375_v26, %v2374_v25 }
 0x24c   :  { %2377 = vadd.xlane.f32.xlu0 %v2376_v27 }
 0x262   :  { %2423 = vperm.xlu0 %12801, %v2412_v28  }
 0x2d9   :  { %v2378_v30 = vpop.xlane.xlu0 %2377 }
 0x2da   :  { %v2379_v31 = vmul.f32 0.001953125, %v2378_v30 }
 0x2dc   :  { %v2380_v32 = vsub.f32 %v2175_v60, %v2379_v31  ;;  %v2381_v33 = vsub.f32 %v2177_v63, %v2379_v31  ;;  %v2382_v34 = vsub.f32 %v2246_v5, %v2379_v31  ;;  %v2383_v35 = vsub.f32 %v2248_v14, %v2379_v31 }
 0x2dd   :  { %v2384_v36 = vsub.f32 %v2317_v12, %v2379_v31  ;;  %v2385_v37 = vsub.f32 %v2319_v15, %v2379_v31 }
 0x2de   :  { %v2386_v38 = vmul.f32 %v2380_v32, %v2380_v32  ;;  %v2387_v39 = vmul.f32 %v2381_v33, %v2381_v33  ;;  %v2388_v40 = vmul.f32 %v2382_v34, %v2382_v34  ;;  %v2389_v41 = vmul.f32 %v2383_v35, %v2383_v35 }
 0x2df   :  { %v2390_v42 = vmul.f32 %v2384_v36, %v2384_v36  ;;  %v2391_v46 = vmul.f32 %v2385_v37, %v2385_v37 }
 0x2e0   :  { %v2392_v43 = vmul.f32 %v2386_v38, %v13789_v57  ;;  %v2393_v44 = vmul.f32 %v2387_v39, %v13793_v58  ;;  %v2394_v45 = vmul.f32 %v2388_v40, %v13800_v2  ;;  %v2395_v47 = vmul.f32 %v2389_v41, %v13804_v6 }
 0x2e1   :  { %v2396_v51 = vmul.f32 %v2390_v42, %v13807_v11  ;;  %v2397_v59 = vmul.f32 %v2391_v46, %v13810_v16  ;;  %v2424_v12 = vpop.permute.xlu0 %2423 }
 0x2e2   :  { %v2398_v48 = vsel %vm2365_vm9, %v2392_v43, 0.0  ;;  %v2399_v49 = vsel %vm2365_vm9, %v2393_v44, 0.0  ;;  %v2401_v52 = vsel %vm2365_vm9, %v2394_v45, 0.0  ;;  %v2403_v7 = vsel %vm2365_vm9, %v2395_v47, 0.0 }
 0x2e3   :  { %v2400_v50 = vadd.f32 %v2399_v49, %v2398_v48  ;;  %v2405_v61 = vsel %vm2365_vm9, %v2396_v51, 0.0  ;;  %v2407_v63 = vsel %vm2365_vm9, %v2397_v59, 0.0 }
 0x2e5   :  { %v2402_v55 = vadd.f32 %v2401_v52, %v2400_v50  ;;  %v2495_v52 = vld [vmem:[#allocation2 + $0x4] sm:$0xf] }
 0x2e7   :  { %v2404_v60 = vadd.f32 %v2403_v7, %v2402_v55 }
 0x2e9   :  { %v2406_v62 = vadd.f32 %v2405_v61, %v2404_v60 }
 0x2eb   :  { %v2408_v9 = vadd.f32 %v2407_v63, %v2406_v62 }
 0x2ed   :  { %2409 = vadd.xlane.f32.xlu1 %v2408_v9 }
 0x2fe   :  { %2436 = vperm.xlu1 %12802, %v11238_v4  }
 0x37a   :  { %v2410_v1 = vpop.xlane.xlu1 %2409 }
 0x37b   :  { %v2411_v10 = vmul.f32 0.001953125, %v2410_v1 }
 0x37d   :  { %v2413_v3 = vadd.f32 1e-05, %v2411_v10 }
 0x37e   :  { %v2437_v18 = vpop.permute.xlu1 %2436 }
 0x37f   :  { %13023 = vrsqrt.f32 %v2413_v3 }
 0x389   :  { %v13024_v5 = vpop.eup %13023 }
 0x38a   :  { %v2415_v13 = vmul.f32 %v13024_v5, %v2380_v32  ;;  %v2416_v14 = vmul.f32 %v13024_v5, %v2381_v33  ;;  %v2418_v15 = vmul.f32 %v13024_v5, %v2383_v35  ;;  %v2420_v17 = vmul.f32 %v13024_v5, %v2385_v37 }
 0x38b   :  { %v2417_v21 = vmul.f32 %v13024_v5, %v2382_v34  ;;  %v2419_v32 = vmul.f32 %v13024_v5, %v2384_v36 }
 0x38c   :  { %v2426_v19 = vmul.f32 %v2424_v12, %v2415_v13  ;;  %v2427_v20 = vmul.f32 %v2424_v12, %v2416_v14  ;;  %v2431_v22 = vmul.f32 %v2424_v12, %v2420_v17  ;;  %v2429_v23 = vmul.f32 %v2424_v12, %v2418_v15  ;;  %v2475_v13 = vld [vmem:[#allocation2] sm:$0xf] }
 0x38d   :  { %v2428_v28 = vmul.f32 %v2424_v12, %v2417_v21  ;;  %v2430_v39 = vmul.f32 %v2424_v12, %v2419_v32 }
 0x38e   :  { %v2439_v24 = vadd.f32 %v2437_v18, %v2426_v19  ;;  %v2440_v25 = vadd.f32 %v2437_v18, %v2427_v20  ;;  %v2444_v26 = vadd.f32 %v2437_v18, %v2431_v22  ;;  %v2442_v29 = vadd.f32 %v2437_v18, %v2429_v23 }
 0x38f   :  { %v2441_v33 = vadd.f32 %v2437_v18, %v2428_v28  ;;  %v2443_v36 = vadd.f32 %v2437_v18, %v2430_v39 }
 0x390   :  { %v2445_v27 = vmax.f32 %v2439_v24, 0.0  ;;  %v2446_v30 = vmax.f32 %v2440_v25, 0.0  ;;  %v2450_v31 = vmax.f32 %v2444_v26, 0.0  ;;  %v2448_v34 = vmax.f32 %v2442_v29, 0.0  ;;  %v2984_v26 = vld [vmem:[#allocation2 + $0x8] sm:$0xf] }
 0x391   :  { %v2447_v40 = vmax.f32 %v2441_v33, 0.0  ;;  %v2449_v43 = vmax.f32 %v2443_v36, 0.0 }
 0x392   :  { %v13838_v38 = vmul.f32 %v2445_v27, %v13789_v57  ;;  %v13845_v35 = vmul.f32 %v2446_v30, %v13793_v58  ;;  %v13848_v37 = vmul.f32 %v2450_v31, %v13810_v16  ;;  %v13855_v41 = vmul.f32 %v2448_v34, %v13804_v6 }
 0x393   :  { %v13862_v42 = vmul.f32 %v2447_v40, %v13800_v2  ;;  %v13873_v44 = vmul.f32 %v2449_v43, %v13807_v11  ;;  %v3244_v43 = vld [vmem:[#allocation2 + $0xc] sm:$0xf] }
 0x394   :  { %2457 = vrot.lane.b32.xlu0 %v13838_v38, %s13207_s27  ;;  %2476 = vrot.lane.b32.xlu1 %v13838_v38, %s13206_s16 }
 0x398   :  { %2467 = vrot.lane.b32.xlu0 %v13848_v37, %s13207_s27  ;;  %2478 = vrot.lane.b32.xlu1 %v13845_v35, %s13206_s16 }
 0x39c   :  { %2463 = vrot.lane.b32.xlu0 %v13855_v41, %s13207_s27  ;;  %2486 = vrot.lane.b32.xlu1 %v13848_v37, %s13206_s16 }
 0x3a0   :  { %2965 = vrot.lane.b32.xlu0 %v13838_v38, %s13208_s3  ;;  %2480 = vrot.lane.b32.xlu1 %v13862_v42, %s13206_s16 }
 0x3a4   :  { %2975 = vrot.lane.b32.xlu0 %v13848_v37, %s13208_s3  ;;  %2482 = vrot.lane.b32.xlu1 %v13855_v41, %s13206_s16 }
 0x3a8   :  { %2971 = vrot.lane.b32.xlu0 %v13855_v41, %s13208_s3  ;;  %2484 = vrot.lane.b32.xlu1 %v13873_v44, %s13206_s16 }
 0x3ac   :  { %3225 = vrot.lane.b32.xlu0 %v13838_v38, %s13209_s7  ;;  %2459 = vrot.lane.b32.xlu1 %v13845_v35, %s13207_s27 }
 0x3b0   :  { %3235 = vrot.lane.b32.xlu0 %v13848_v37, %s13209_s7  ;;  %2461 = vrot.lane.b32.xlu1 %v13862_v42, %s13207_s27 }
 0x3b4   :  { %3231 = vrot.lane.b32.xlu0 %v13855_v41, %s13209_s7  ;;  %2465 = vrot.lane.b32.xlu1 %v13873_v44, %s13207_s27  ;;  %s13215_s27 = smov 10  }
 0x3b8   :  { %3729 = vrot.lane.b32.xlu0 %v13845_v35, %s13210_s22  ;;  %2967 = vrot.lane.b32.xlu1 %v13845_v35, %s13208_s3 }
 0x3bc   :  { %3727 = vrot.lane.b32.xlu0 %v13838_v38, %s13210_s22  ;;  %2969 = vrot.lane.b32.xlu1 %v13862_v42, %s13208_s3 }
 0x3c0   :  { %3735 = vrot.lane.b32.xlu0 %v13873_v44, %s13210_s22  ;;  %2973 = vrot.lane.b32.xlu1 %v13873_v44, %s13208_s3  ;;  %s15705_s3 = sld [smem:[#allocation26_spill]] }
 0x3c4   :  { %3989 = vrot.lane.b32.xlu0 %v13845_v35, %s13211_s15  ;;  %3227 = vrot.lane.b32.xlu1 %v13845_v35, %s13209_s7 }
 0x3c8   :  { %3987 = vrot.lane.b32.xlu0 %v13838_v38, %s13211_s15  ;;  %3229 = vrot.lane.b32.xlu1 %v13862_v42, %s13209_s7 }
 0x3cc   :  { %3995 = vrot.lane.b32.xlu0 %v13873_v44, %s13211_s15  ;;  %3233 = vrot.lane.b32.xlu1 %v13873_v44, %s13209_s7 }
 0x3d0   :  { %4249 = vrot.lane.b32.xlu0 %v13845_v35, %s13212_s28  ;;  %3731 = vrot.lane.b32.xlu1 %v13862_v42, %s13210_s22 }
 0x3d4   :  { %4247 = vrot.lane.b32.xlu0 %v13838_v38, %s13212_s28  ;;  %3733 = vrot.lane.b32.xlu1 %v13855_v41, %s13210_s22 }
 0x3d8   :  { %4255 = vrot.lane.b32.xlu0 %v13873_v44, %s13212_s28  ;;  %3737 = vrot.lane.b32.xlu1 %v13848_v37, %s13210_s22 }
 0x3dc   :  { %4509 = vrot.lane.b32.xlu0 %v13845_v35, %s13213_s0  ;;  %3991 = vrot.lane.b32.xlu1 %v13862_v42, %s13211_s15 }
 0x3e0   :  { %4507 = vrot.lane.b32.xlu0 %v13838_v38, %s13213_s0  ;;  %3993 = vrot.lane.b32.xlu1 %v13855_v41, %s13211_s15 }
 0x3e4   :  { %4515 = vrot.lane.b32.xlu0 %v13873_v44, %s13213_s0  ;;  %3997 = vrot.lane.b32.xlu1 %v13848_v37, %s13211_s15  ;;  %s13218_s15 = smov 119  }
 0x3e8   :  { %4251 = vrot.lane.b32.xlu1 %v13862_v42, %s13212_s28 }
 0x3ec   :  { %4253 = vrot.lane.b32.xlu1 %v13855_v41, %s13212_s28 }
 0x3f0   :  { %4257 = vrot.lane.b32.xlu1 %v13848_v37, %s13212_s28 }
 0x3f4   :  { %4511 = vrot.lane.b32.xlu1 %v13862_v42, %s13213_s0 }
 0x3f8   :  { %4513 = vrot.lane.b32.xlu1 %v13855_v41, %s13213_s0 }
 0x3fc   :  { %4517 = vrot.lane.b32.xlu1 %v13848_v37, %s13213_s0 }
 0x406   :  { %v2458_v45 = vpop.permute.xlu0 %2457  ;;  %v2477_v46 = vpop.permute.xlu1 %2476 }
 0x40a   :  { %v2468_v47 = vpop.permute.xlu0 %2467  ;;  %v2479_v48 = vpop.permute.xlu1 %2478 }
 0x40b   :  { %v2492_v49 = vsel %vm204_vm0, %v2477_v46, %v2479_v48  ;;  %v2474_v14 = vsel %vm184_vm2, %v2468_v47, %v2458_v45 }
 0x40c   :  { %11239 = vmatprep.subr.msk.mxu1 %vm2365_vm9, %v2492_v49 }
 0x40e   :  { %v2464_v50 = vpop.permute.xlu0 %2463  ;;  %v2487_v51 = vpop.permute.xlu1 %2486 }
 0x40f   :  { %v2493_v55 = vsel %vm204_vm0, %v2487_v51, %v2477_v46 }
 0x410   :  { %11240 = vmatpush1.msk.msra.mxu1 %vm2365_vm9, %v2493_v55 }
 0x411   :  { %11241 = vmatmul.mubr.msk.f32.vlgmr.msra.gmra.mrb[2].mxu1 %vm2496_vm10, %v2495_v52 }
 0x412   :  { %v2966_v59 = vpop.permute.xlu0 %2965  ;;  %v2481_v7 = vpop.permute.xlu1 %2480  ;;  %2653 = vmatprep.mubr.f32.mxu1 %v13205_v0 }
 0x413   :  { %v2491_v63 = vsel %vm204_vm0, %v2479_v48, %v2481_v7 }
 0x416   :  { %v2976_v60 = vpop.permute.xlu0 %2975  ;;  %v2483_v61 = vpop.permute.xlu1 %2482 }
 0x417   :  { %v2490_v62 = vsel %vm204_vm0, %v2481_v7, %v2483_v61  ;;  %v2982_v27 = vsel %vm658_vm3, %v2976_v60, %v2966_v59  ;;  %v3486_v7 = vld [vmem:[#allocation2 + $0x10] sm:$0xf] }
 0x418   :  { %11242 = vmatprep.subr.msk.mxu1 %vm2365_vm9, %v2490_v62 }
 0x419   :  { %11243 = vmatpush1.msk.msra.mxu1 %vm2365_vm9, %v2491_v63 }
 0x41a   :  { %v2972_v9 = vpop.permute.xlu0 %2971  ;;  %11244 = vmatmul.mubr.msk.f32.vlgmr.msra.gmra.mrb[4].mxu1 %vm2496_vm10, %v2495_v52  ;;  %v2485_v4 = vpop.permute.xlu1 %2484 }
 0x41b   :  { %v2489_v1 = vsel %vm204_vm0, %v2483_v61, %v2485_v4  ;;  %v2488_v10 = vsel %vm204_vm0, %v2485_v4, %v2487_v51  ;;  %2724 = vmatprep.mubr.f32.mxu1 %v13205_v0  ;;  %vm6075_vm0 = vcmp.lt.s32.totalorder %v13587_v8, 117 }
 0x41c   :  { %11245 = vmatprep.subr.msk.mxu1 %vm2365_vm9, %v2488_v10 }
 0x41d   :  { %11246 = vmatpush1.msk.msra.mxu1 %vm2365_vm9, %v2489_v1 }
 0x41e   :  { %v3226_v3 = vpop.permute.xlu0 %3225  ;;  %11247 = vmatmul.mubr.msk.f32.vlgmr.msra.gmra.mrb[6].mxu1 %vm2496_vm10, %v2495_v52  ;;  %v2460_v5 = vpop.permute.xlu1 %2459 }
 0x41f   :  { %v2473_v12 = vsel %vm184_vm2, %v2458_v45, %v2460_v5  ;;  %2816 = vmatprep.mubr.f32.mxu1 %v13205_v0 }
 0x420   :  { %11248 = vmatprep.subr.msk.mxu1 %vm2365_vm9, %v2473_v12 }
 0x421   :  { %11249 = vmatpush1.msk.msra.mxu1 %vm2365_vm9, %v2474_v14 }
 0x422   :  { %11250 = vmatmul.mubr.msk.f32.vlgmr.msra.gmra.mrb[2].mxu1 %vm2496_vm10, %v2475_v13  ;;  %v2462_v15 = vpop.permute.xlu1 %2461  ;;  %v3236_v19 = vpop.permute.xlu0 %3235 }
 0x423   :  { %v2472_v17 = vsel %vm184_vm2, %v2460_v5, %v2462_v15  ;;  %v2471_v18 = vsel %vm184_vm2, %v2462_v15, %v2464_v50  ;;  %2887 = vmatprep.mubr.f32.mxu1 %v13205_v0  ;;  %v3242_v45 = vsel %vm901_vm4, %v3236_v19, %v3226_v3 }
 0x424   :  { %11251 = vmatprep.subr.msk.mxu1 %vm2365_vm9, %v2471_v18 }
 0x425   :  { %11252 = vmatpush1.msk.msra.mxu1 %vm2365_vm9, %v2472_v17  ;;  %v4006_v17 = vld [vmem:[#allocation2 + $0x18] sm:$0xf] }
 0x426   :  { %11253 = vmatmul.mubr.msk.f32.vlgmr.msra.gmra.mrb[4].mxu1 %vm2496_vm10, %v2475_v13  ;;  %v2466_v20 = vpop.permute.xlu1 %2465  ;;  %v3232_v23 = vpop.permute.xlu0 %3231 }
 0x427   :  { %v2470_v21 = vsel %vm184_vm2, %v2464_v50, %v2466_v20  ;;  %v2469_v22 = vsel %vm184_vm2, %v2466_v20, %v2468_v47  ;;  %2958 = vmatprep.mubr.f32.mxu1 %v13205_v0  ;;  %vm10077_vm2 = vcmask 261120  }
 0x428   :  { %11254 = vmatprep.subr.msk.mxu1 %vm2365_vm9, %v2469_v22 }
 0x429   :  { %11255 = vmatpush1.msk.msra.mxu1 %vm2365_vm9, %v2470_v21 }
 0x42a   :  { %11256 = vmatmul.mubr.msk.f32.vlgmr.msra.gmra.mrb[6].mxu1 %vm2496_vm10, %v2475_v13  ;;  %v2968_v24 = vpop.permute.xlu1 %2967  ;;  %v3730_v31 = vpop.permute.xlu0 %3729 }
 0x42b   :  { %v2981_v25 = vsel %vm658_vm3, %v2966_v59, %v2968_v24  ;;  %3070 = vmatprep.mubr.f32.mxu1 %v13205_v0 }
 0x42c   :  { %11257 = vmatprep.subr.msk.mxu1 %vm2365_vm9, %v2981_v25 }
 0x42d   :  { %11258 = vmatpush1.msk.msra.mxu1 %vm2365_vm9, %v2982_v27 }
 0x42e   :  { %11259 = vmatmul.mubr.msk.f32.vlgmr.msra.gmra.mrb[2].mxu1 %vm2496_vm10, %v2984_v26  ;;  %v2970_v28 = vpop.permute.xlu1 %2969  ;;  %v3728_v39 = vpop.permute.xlu0 %3727 }
 0x42f   :  { %v2980_v29 = vsel %vm658_vm3, %v2968_v24, %v2970_v28  ;;  %v2979_v30 = vsel %vm658_vm3, %v2970_v28, %v2972_v9  ;;  %3141 = vmatprep.mubr.f32.mxu1 %v13205_v0  ;;  %v4266_v28 = vld [vmem:[#allocation2 + $0x1c] sm:$0xf] }
 0x430   :  { %11260 = vmatprep.subr.msk.mxu1 %vm2365_vm9, %v2979_v30 }
 0x431   :  { %11261 = vmatpush1.msk.msra.mxu1 %vm2365_vm9, %v2980_v29 }
 0x432   :  { %11262 = vmatmul.mubr.msk.f32.vlgmr.msra.gmra.mrb[4].mxu1 %vm2496_vm10, %v2984_v26  ;;  %v2974_v32 = vpop.permute.xlu1 %2973  ;;  %v3736_v49 = vpop.permute.xlu0 %3735 }
 0x433   :  { %v2978_v33 = vsel %vm658_vm3, %v2972_v9, %v2974_v32  ;;  %v2977_v34 = vsel %vm658_vm3, %v2974_v32, %v2976_v60  ;;  %3212 = vmatprep.mubr.f32.mxu1 %v13205_v0 }
 0x434   :  { %11263 = vmatprep.subr.msk.mxu1 %vm2365_vm9, %v2977_v34 }
 0x435   :  { %11264 = vmatpush1.msk.msra.mxu1 %vm2365_vm9, %v2978_v33 }
 0x436   :  { %11265 = vmatmul.mubr.msk.f32.vlgmr.msra.gmra.mrb[6].mxu1 %vm2496_vm10, %v2984_v26  ;;  %v3228_v40 = vpop.permute.xlu1 %3227  ;;  %v3990_v55 = vpop.permute.xlu0 %3989 }
 0x437   :  { %v3241_v36 = vsel %vm901_vm4, %v3226_v3, %v3228_v40  ;;  %3330 = vmatprep.mubr.f32.mxu1 %v13205_v0 }
 0x438   :  { %11266 = vmatprep.subr.msk.mxu1 %vm2365_vm9, %v3241_v36 }
 0x439   :  { %11267 = vmatpush1.msk.msra.mxu1 %vm2365_vm9, %v3242_v45  ;;  %v4526_v45 = vld [vmem:[#allocation2 + $0x20] sm:$0xf] }
 0x43a   :  { %11268 = vmatmul.mubr.msk.f32.vlgmr.msra.gmra.mrb[2].mxu1 %vm2496_vm10, %v3244_v43  ;;  %v3230_v46 = vpop.permute.xlu1 %3229  ;;  %v3988_v61 = vpop.permute.xlu0 %3987 }
 0x43b   :  { %v3240_v47 = vsel %vm901_vm4, %v3228_v40, %v3230_v46  ;;  %v3239_v48 = vsel %vm901_vm4, %v3230_v46, %v3232_v23  ;;  %3401 = vmatprep.mubr.f32.mxu1 %v13205_v0  ;;  %v4003_v12 = vsel %vm1611_vm6, %v3988_v61, %v3990_v55 }
 0x43c   :  { %11269 = vmatprep.subr.msk.mxu1 %vm2365_vm9, %v3239_v48 }
 0x43d   :  { %11270 = vmatpush1.msk.msra.mxu1 %vm2365_vm9, %v3240_v47 }
 0x43e   :  { %11271 = vmatmul.mubr.msk.f32.vlgmr.msra.gmra.mrb[4].mxu1 %vm2496_vm10, %v3244_v43  ;;  %v3234_v50 = vpop.permute.xlu1 %3233 }
 0x43f   :  { %v3238_v51 = vsel %vm901_vm4, %v3232_v23, %v3234_v50  ;;  %v3237_v52 = vsel %vm901_vm4, %v3234_v50, %v3236_v19  ;;  %3472 = vmatprep.mubr.f32.mxu1 %v13205_v0 }
 0x440   :  { %11272 = vmatprep.subr.msk.mxu1 %vm2365_vm9, %v3237_v52 }
 0x441   :  { %11273 = vmatpush1.msk.msra.mxu1 %vm2365_vm9, %v3238_v51 }
 0x442   :  { %11274 = vmatmul.mubr.msk.f32.vlgmr.msra.gmra.mrb[6].mxu1 %vm2496_vm10, %v3244_v43  ;;  %11275 = vmatprep.subr.msk.mxu1 %vm2365_vm9, %v13845_v35  ;;  %v3732_v59 = vpop.permute.xlu1 %3731 }
 0x443   :  { %11276 = vmatpush1.msk.msra.mxu1 %vm2365_vm9, %v13838_v38  ;;  %3572 = vmatprep.mubr.f32.mxu1 %v13205_v0  ;;  %v3742_v35 = vsel %vm1368_vm5, %v3730_v31, %v3732_v59 }
 0x444   :  { %11278 = vmatprep.subr.msk.mxu1 %vm2365_vm9, %v13855_v41  ;;  %v3743_v41 = vsel %vm1368_vm5, %v3728_v39, %v3730_v31 }
 0x446   :  { %11277 = vmatmul.mubr.msk.f32.vlgmr.msra.gmra.mrb[2].mxu1 %vm2496_vm10, %v3486_v7  ;;  %v3734_v60 = vpop.permute.xlu1 %3733 }
 0x447   :  { %11279 = vmatpush1.msk.msra.mxu1 %vm2365_vm9, %v13862_v42  ;;  %3643 = vmatprep.mubr.f32.mxu1 %v13205_v0  ;;  %v3996_v42 = vpop.permute.xlu0 %3995  ;;  %v3740_v62 = vsel %vm1368_vm5, %v3734_v60, %v3736_v49  ;;  %v3741_v63 = vsel %vm1368_vm5, %v3732_v59, %v3734_v60 }
 0x448   :  { %11281 = vmatprep.subr.msk.mxu1 %vm2365_vm9, %v13848_v37 }
 0x44a   :  { %11280 = vmatmul.mubr.msk.f32.vlgmr.msra.gmra.mrb[4].mxu1 %vm2496_vm10, %v3486_v7  ;;  %v3738_v38 = vpop.permute.xlu1 %3737 }
 0x44b   :  { %11282 = vmatpush1.msk.msra.mxu1 %vm2365_vm9, %v13873_v44  ;;  %3714 = vmatprep.mubr.f32.mxu1 %v13205_v0  ;;  %v3746_v44 = vld [vmem:[#allocation2 + $0x14] sm:$0xf]  ;;  %v3744_v4 = vsel %vm1368_vm5, %v3738_v38, %v3728_v39  ;;  %v4250_v1 = vpop.permute.xlu0 %4249  ;;  %v3739_v10 = vsel %vm1368_vm5, %v3736_v49, %v3738_v38 }
 0x44c   :  { %11284 = vmatprep.subr.msk.mxu1 %vm2365_vm9, %v3742_v35 }
 0x44e   :  { %11283 = vmatmul.mubr.msk.f32.vlgmr.msra.gmra.mrb[6].mxu1 %vm2496_vm10, %v3486_v7  ;;  %v3992_v37 = vpop.permute.xlu1 %3991 }
 0x44f   :  { %11285 = vmatpush1.msk.msra.mxu1 %vm2365_vm9, %v3743_v41  ;;  %3832 = vmatprep.mubr.f32.mxu1 %v13205_v0  ;;  %v4002_v5 = vsel %vm1611_vm6, %v3990_v55, %v3992_v37  ;;  %v4248_v13 = vpop.permute.xlu0 %4247 }
 0x450   :  { %11287 = vmatprep.subr.msk.mxu1 %vm2365_vm9, %v3740_v62  ;;  %v4263_v25 = vsel %vm1854_vm7, %v4248_v13, %v4250_v1 }
 0x452   :  { %11286 = vmatmul.mubr.msk.f32.vlgmr.msra.gmra.mrb[2].mxu1 %vm2496_vm10, %v3746_v44  ;;  %v3994_v9 = vpop.permute.xlu1 %3993 }
 0x453   :  { %11288 = vmatpush1.msk.msra.mxu1 %vm2365_vm9, %v3741_v63  ;;  %3903 = vmatprep.mubr.f32.mxu1 %v13205_v0  ;;  %v4000_v15 = vsel %vm1611_vm6, %v3994_v9, %v3996_v42  ;;  %v4001_v18 = vsel %vm1611_vm6, %v3992_v37, %v3994_v9  ;;  %v4256_v21 = vpop.permute.xlu0 %4255 }
 0x454   :  { %11290 = vmatprep.subr.msk.mxu1 %vm2365_vm9, %v3744_v4 }
 0x456   :  { %11289 = vmatmul.mubr.msk.f32.vlgmr.msra.gmra.mrb[4].mxu1 %vm2496_vm10, %v3746_v44  ;;  %v3998_v3 = vpop.permute.xlu1 %3997 }
 0x457   :  { %11291 = vmatpush1.msk.msra.mxu1 %vm2365_vm9, %v3739_v10  ;;  %3974 = vmatprep.mubr.f32.mxu1 %v13205_v0  ;;  %v4004_v20 = vsel %vm1611_vm6, %v3998_v3, %v3988_v61  ;;  %v3999_v22 = vsel %vm1611_vm6, %v3996_v42, %v3998_v3  ;;  %v4510_v26 = vpop.permute.xlu0 %4509 }
 0x458   :  { %11293 = vmatprep.subr.msk.mxu1 %vm2365_vm9, %v4002_v5 }
 0x45a   :  { %11292 = vmatmul.mubr.msk.f32.vlgmr.msra.gmra.mrb[6].mxu1 %vm2496_vm10, %v3746_v44  ;;  %v4252_v14 = vpop.permute.xlu1 %4251 }
 0x45b   :  { %11294 = vmatpush1.msk.msra.mxu1 %vm2365_vm9, %v4003_v12  ;;  %4092 = vmatprep.mubr.f32.mxu1 %v13205_v0  ;;  %v4262_v24 = vsel %vm1854_vm7, %v4250_v1, %v4252_v14  ;;  %v4508_v32 = vpop.permute.xlu0 %4507 }
 0x45c   :  { %11296 = vmatprep.subr.msk.mxu1 %vm2365_vm9, %v4000_v15  ;;  %v4523_v40 = vsel %vm2097_vm8, %v4508_v32, %v4510_v26 }
 0x45e   :  { %11295 = vmatmul.mubr.msk.f32.vlgmr.msra.gmra.mrb[2].mxu1 %vm2496_vm10, %v4006_v17  ;;  %v4254_v19 = vpop.permute.xlu1 %4253 }
 0x45f   :  { %11297 = vmatpush1.msk.msra.mxu1 %vm2365_vm9, %v4001_v18  ;;  %4163 = vmatprep.mubr.f32.mxu1 %v13205_v0  ;;  %v4260_v27 = vsel %vm1854_vm7, %v4254_v19, %v4256_v21  ;;  %v4261_v30 = vsel %vm1854_vm7, %v4252_v14, %v4254_v19  ;;  %v4516_v36 = vpop.permute.xlu0 %4515 }
 0x460   :  { %11299 = vmatprep.subr.msk.mxu1 %vm2365_vm9, %v4004_v20 }
 0x462   :  { %11298 = vmatmul.mubr.msk.f32.vlgmr.msra.gmra.mrb[4].mxu1 %vm2496_vm10, %v4006_v17  ;;  %v4258_v23 = vpop.permute.xlu1 %4257 }
 0x463   :  { %11300 = vmatpush1.msk.msra.mxu1 %vm2365_vm9, %v3999_v22  ;;  %4234 = vmatprep.mubr.f32.mxu1 %v13205_v0  ;;  %v4264_v31 = vsel %vm1854_vm7, %v4258_v23, %v4248_v13  ;;  %v4259_v33 = vsel %vm1854_vm7, %v4256_v21, %v4258_v23  ;;  %v4819_v13 = vld [vmem:[%s15705_s3] sm:$0xf] }
 0x464   :  { %11302 = vmatprep.subr.msk.mxu1 %vm2365_vm9, %v4262_v24 }
 0x466   :  { %11301 = vmatmul.mubr.msk.f32.vlgmr.msra.gmra.mrb[6].mxu1 %vm2496_vm10, %v4006_v17  ;;  %v4512_v29 = vpop.permute.xlu1 %4511 }
 0x467   :  { %11303 = vmatpush1.msk.msra.mxu1 %vm2365_vm9, %v4263_v25  ;;  %4352 = vmatprep.mubr.f32.mxu1 %v13205_v0  ;;  %v4522_v39 = vsel %vm2097_vm8, %v4510_v26, %v4512_v29 }
 0x468   :  { %11305 = vmatprep.subr.msk.mxu1 %vm2365_vm9, %v4260_v27 }
 0x46a   :  { %11304 = vmatmul.mubr.msk.f32.vlgmr.msra.gmra.mrb[2].mxu1 %vm2496_vm10, %v4266_v28  ;;  %v4514_v34 = vpop.permute.xlu1 %4513 }
 0x46b   :  { %11306 = vmatpush1.msk.msra.mxu1 %vm2365_vm9, %v4261_v30  ;;  %4423 = vmatprep.mubr.f32.mxu1 %v13205_v0  ;;  %v4520_v43 = vsel %vm2097_vm8, %v4514_v34, %v4516_v36  ;;  %v4521_v47 = vsel %vm2097_vm8, %v4512_v29, %v4514_v34 }
 0x46c   :  { %11308 = vmatprep.subr.msk.mxu1 %vm2365_vm9, %v4264_v31 }
 0x46e   :  { %11307 = vmatmul.mubr.msk.f32.vlgmr.msra.gmra.mrb[4].mxu1 %vm2496_vm10, %v4266_v28  ;;  %v4518_v46 = vpop.permute.xlu1 %4517 }
 0x46f   :  { %11309 = vmatpush1.msk.msra.mxu1 %vm2365_vm9, %v4259_v33  ;;  %4494 = vmatprep.mubr.f32.mxu1 %v13205_v0  ;;  %v4524_v48 = vsel %vm2097_vm8, %v4518_v46, %v4508_v32  ;;  %v4519_v49 = vsel %vm2097_vm8, %v4516_v36, %v4518_v46 }
 0x470   :  { %11311 = vmatprep.subr.msk.mxu1 %vm2365_vm9, %v4522_v39 }
 0x472   :  { %11310 = vmatmul.mubr.msk.f32.vlgmr.msra.gmra.mrb[6].mxu1 %vm2496_vm10, %v4266_v28 }
 0x473   :  { %11312 = vmatpush1.msk.msra.mxu1 %vm2365_vm9, %v4523_v40  ;;  %4612 = vmatprep.mubr.f32.mxu1 %v13205_v0 }
 0x474   :  { %11314 = vmatprep.subr.msk.mxu1 %vm2365_vm9, %v4520_v43 }
 0x476   :  { %11313 = vmatmul.mubr.msk.f32.vlgmr.msra.gmra.mrb[2].mxu1 %vm2496_vm10, %v4526_v45 }
 0x477   :  { %11315 = vmatpush1.msk.msra.mxu1 %vm2365_vm9, %v4521_v47  ;;  %4683 = vmatprep.mubr.f32.mxu1 %v13205_v0 }
 0x478   :  { %11317 = vmatprep.subr.msk.mxu1 %vm2365_vm9, %v4524_v48 }
 0x47a   :  { %11316 = vmatmul.mubr.msk.f32.vlgmr.msra.gmra.mrb[4].mxu1 %vm2496_vm10, %v4526_v45 }
 0x47b   :  { %11318 = vmatpush1.msk.msra.mxu1 %vm2365_vm9, %v4519_v49  ;;  %4754 = vmatprep.mubr.f32.mxu1 %v13205_v0 }
 0x47e   :  { %11319 = vmatmul.mubr.msk.f32.vlgmr.msra.gmra.mrb[6].mxu1 %vm2496_vm10, %v4526_v45 }
 0x47f   :  { %5447 = vmatprep.mubr.f32.mxu1 %v13205_v0 }
 0x549   :  { %v4614_v50 = vpop.f32.mrb[2].mxu1 }
 0x54a   :  { %v4767_v51 = vmul.f32 %v4614_v50, %v13789_v57  ;;  %v4616_v52 = vpop.f32.mrb[3].mxu1 }
 0x54b   :  { %v4768_v55 = vmul.f32 %v4616_v52, %v13793_v58 }
 0x54c   :  { %v4773_v59 = vsel %vm2365_vm9, %v4767_v51, 0.0 }
 0x54d   :  { %v4774_v7 = vsel %vm2365_vm9, %v4768_v55, 0.0  ;;  %v4685_v60 = vpop.f32.mrb[4].mxu1  ;;  %v4952_v55 = vld [vmem:[%s15655_s21 + $0x8] sm:$0xff] }
 0x54e   :  { %v4775_v61 = vadd.f32 %v4774_v7, %v4773_v59  ;;  %v4769_v38 = vmul.f32 %v4685_v60, %v13800_v2  ;;  %v4687_v35 = vpop.f32.mrb[5].mxu1  ;;  %v4954_v59 = vld [vmem:[%s15655_s21 + $0x18] sm:$0xff]  ;;  %v4951_v7 = vld [vmem:[%s15655_s21] sm:$0xff] }
 0x54f   :  { %v4770_v41 = vmul.f32 %v4687_v35, %v13804_v6 }
 0x550   :  { %v4776_v42 = vsel %vm2365_vm9, %v4769_v38, 0.0  ;;  %v4956_v38 = vld [vmem:[%s15655_s21 + $0x28] sm:$0xff] }
 0x551   :  { %v4777_v37 = vadd.f32 %v4776_v42, %v4775_v61  ;;  %v4778_v62 = vsel %vm2365_vm9, %v4770_v41, 0.0  ;;  %v4756_v44 = vpop.f32.mrb[6].mxu1  ;;  %v4953_v61 = vld [vmem:[%s15655_s21 + $0x10] sm:$0xff] }
 0x552   :  { %v4771_v63 = vmul.f32 %v4756_v44, %v13807_v11  ;;  %v4758_v9 = vpop.f32.mrb[7].mxu1  ;;  %v12140_v41 = vpack.c.bf16 %v4953_v61, %v4951_v7  ;;  %v4983_v61 = vld [vmem:[%s15655_s21 + $0x100] sm:$0xff] }
 0x553   :  { %v4779_v4 = vadd.f32 %v4778_v62, %v4777_v37  ;;  %v4772_v1 = vmul.f32 %v4758_v9, %v13810_v16  ;;  %v4955_v37 = vld [vmem:[%s15655_s21 + $0x20] sm:$0xff]  ;;  %v4957_v62 = vld [vmem:[%s15655_s21 + $0x30] sm:$0xff] }
 0x554   :  { %v4780_v10 = vsel %vm2365_vm9, %v4771_v63, 0.0  ;;  %v4962_v63 = vld [vmem:[%s15655_s21 + $0x58] sm:$0xff] }
 0x555   :  { %v4781_v3 = vadd.f32 %v4780_v10, %v4779_v4  ;;  %v4782_v5 = vsel %vm2365_vm9, %v4772_v1, 0.0  ;;  %v4959_v1 = vld [vmem:[%s15655_s21 + $0x40] sm:$0xff]  ;;  %v4961_v10 = vld [vmem:[%s15655_s21 + $0x50] sm:$0xff] }
 0x557   :  { %v4783_v12 = vadd.f32 %v4782_v5, %v4781_v3  ;;  %v4964_v3 = vld [vmem:[%s15655_s21 + $0x68] sm:$0xff]  ;;  %v4966_v5 = vld [vmem:[%s15655_s21 + $0x78] sm:$0xff] }
 0x559   :  { %4784 = vadd.xlane.f32.xlu0 %v4783_v12  ;;  %v12148_v12 = vpack.c.bf16 %v4961_v10, %v4959_v1  ;;  %v4991_v10 = vld [vmem:[%s15655_s21 + $0x140] sm:$0xff] }
 0x56f   :  { %4830 = vperm.xlu0 %12801, %v4819_v13   ;;  %v12150_v13 = vpack.c.bf16 %v4966_v5, %v4964_v3  ;;  %v4993_v3 = vld [vmem:[%s15655_s21 + $0x150] sm:$0xff]  ;;  %v4996_v5 = vld [vmem:[%s15655_s21 + $0x168] sm:$0xff] }
 0x5e6   :  { %v4785_v14 = vpop.xlane.xlu0 %4784 }
 0x5e7   :  { %v4786_v15 = vmul.f32 0.001953125, %v4785_v14  ;;  %v4963_v14 = vld [vmem:[%s15655_s21 + $0x60] sm:$0xff] }
 0x5e9   :  { %v14176_v17 = vsub.f32 %v4614_v50, %v4786_v15  ;;  %v14178_v18 = vsub.f32 %v4616_v52, %v4786_v15  ;;  %v14180_v19 = vsub.f32 %v4685_v60, %v4786_v15  ;;  %v14182_v20 = vsub.f32 %v4687_v35, %v4786_v15  ;;  %v11320_v52 = vld [vmem:[%s15705_s3 + $0x4] sm:$0xf]  ;;  %v4958_v35 = vld [vmem:[%s15655_s21 + $0x38] sm:$0xff]  ;;  %s13216_s3 = smov 11  }
 0x5ea   :  { %v14184_v21 = vsub.f32 %v4756_v44, %v4786_v15  ;;  %v14186_v22 = vsub.f32 %v4758_v9, %v4786_v15  ;;  %v12138_v60 = vpack.c.bf16 %v4954_v59, %v4952_v55  ;;  %v12142_v42 = vpack.c.bf16 %v4958_v35, %v4956_v38  ;;  %v4960_v44 = vld [vmem:[%s15655_s21 + $0x48] sm:$0xff]  ;;  %v4965_v15 = vld [vmem:[%s15655_s21 + $0x70] sm:$0xff]  ;;  %v4986_v59 = vld [vmem:[%s15655_s21 + $0x118] sm:$0xff] }
 0x5eb   :  { %v4793_v23 = vmul.f32 %v14176_v17, %v14176_v17  ;;  %v4794_v24 = vmul.f32 %v14178_v18, %v14178_v18  ;;  %v4795_v25 = vmul.f32 %v14180_v19, %v14180_v19  ;;  %v4796_v26 = vmul.f32 %v14182_v20, %v14182_v20  ;;  %v4984_v55 = vld [vmem:[%s15655_s21 + $0x108] sm:$0xff]  ;;  %v4985_v38 = vld [vmem:[%s15655_s21 + $0x110] sm:$0xff] }
 0x5ec   :  { %v4797_v27 = vmul.f32 %v14184_v21, %v14184_v21  ;;  %v4798_v31 = vmul.f32 %v14186_v22, %v14186_v22  ;;  %12139 = vmatprep.subr.bf16.mxu0 %v12138_v60  ;;  %v12144_v9 = vpack.c.bf16 %v4957_v62, %v4955_v37  ;;  %v12146_v4 = vpack.c.bf16 %v4962_v63, %v4960_v44  ;;  %v4988_v35 = vld [vmem:[%s15655_s21 + $0x128] sm:$0xff]  ;;  %v4987_v62 = vld [vmem:[%s15655_s21 + $0x120] sm:$0xff]  ;;  %v4989_v44 = vld [vmem:[%s15655_s21 + $0x130] sm:$0xff] }
 0x5ed   :  { %v4799_v28 = vmul.f32 %v4793_v23, %v13789_v57  ;;  %v4800_v29 = vmul.f32 %v4794_v24, %v13793_v58  ;;  %v4801_v30 = vmul.f32 %v4795_v25, %v13800_v2  ;;  %v4802_v32 = vmul.f32 %v4796_v26, %v13804_v6  ;;  %12141 = vmatpush1.bf16.msra.mxu0 %v12140_v41  ;;  %v4968_v23 = vld [vmem:[%s15655_s21 + $0x88] sm:$0xff]  ;;  %v4970_v24 = vld [vmem:[%s15655_s21 + $0x98] sm:$0xff] }
 0x5ee   :  { %v4803_v40 = vmul.f32 %v4797_v27, %v13807_v11  ;;  %v4804_v45 = vmul.f32 %v4798_v31, %v13810_v16  ;;  %12143 = vmatprep.subr.bf16.mxu0 %v12142_v42  ;;  %v12152_v25 = vpack.c.bf16 %v4965_v15, %v4963_v14  ;;  %v12154_v26 = vpack.c.bf16 %v4970_v24, %v4968_v23  ;;  %v4967_v27 = vld [vmem:[%s15655_s21 + $0x80] sm:$0xff]  ;;  %v4990_v41 = vld [vmem:[%s15655_s21 + $0x138] sm:$0xff]  ;;  %v4992_v63 = vld [vmem:[%s15655_s21 + $0x148] sm:$0xff] }
 0x5ef   :  { %v4805_v33 = vsel %vm2365_vm9, %v4799_v28, 0.0  ;;  %v4806_v34 = vsel %vm2365_vm9, %v4800_v29, 0.0  ;;  %v4808_v36 = vsel %vm2365_vm9, %v4801_v30, 0.0  ;;  %v4810_v46 = vsel %vm2365_vm9, %v4802_v32, 0.0  ;;  %v4969_v28 = vld [vmem:[%s15655_s21 + $0x90] sm:$0xff]  ;;  %v4972_v29 = vld [vmem:[%s15655_s21 + $0xa8] sm:$0xff] }
 0x5f0   :  { %v4807_v39 = vadd.f32 %v4806_v34, %v4805_v33  ;;  %v4812_v48 = vsel %vm2365_vm9, %v4803_v40, 0.0  ;;  %v4814_v50 = vsel %vm2365_vm9, %v4804_v45, 0.0  ;;  %v4974_v30 = vld [vmem:[%s15655_s21 + $0xb8] sm:$0xff]  ;;  %v12156_v31 = vpack.c.bf16 %v4969_v28, %v4967_v27  ;;  %v4971_v33 = vld [vmem:[%s15655_s21 + $0xa0] sm:$0xff]  ;;  %v4973_v34 = vld [vmem:[%s15655_s21 + $0xb0] sm:$0xff] }
 0x5f1   :  { %12145 = vmatpush1.bf16.msra.mxu0 %v12144_v9  ;;  %v12158_v32 = vpack.c.bf16 %v4974_v30, %v4972_v29  ;;  %v4978_v40 = vld [vmem:[%s15655_s21 + $0xd8] sm:$0xff]  ;;  %v4975_v45 = vld [vmem:[%s15655_s21 + $0xc0] sm:$0xff]  ;;  %v12170_v60 = vpack.c.bf16 %v4986_v59, %v4984_v55  ;;  %v12172_v42 = vpack.c.bf16 %v4985_v38, %v4983_v61  ;;  %v12174_v37 = vpack.c.bf16 %v4990_v41, %v4988_v35  ;;  %v4997_v23 = vld [vmem:[%s15655_s21 + $0x170] sm:$0xff] }
 0x5f2   :  { %v4809_v43 = vadd.f32 %v4808_v36, %v4807_v39  ;;  %12147 = vmatprep.subr.bf16.mxu0 %v12146_v4  ;;  %v4976_v39 = vld [vmem:[%s15655_s21 + $0xc8] sm:$0xff]  ;;  %v12160_v36 = vpack.c.bf16 %v4973_v34, %v4971_v33  ;;  %v4994_v9 = vld [vmem:[%s15655_s21 + $0x158] sm:$0xff]  ;;  %v12176_v4 = vpack.c.bf16 %v4989_v44, %v4987_v62  ;;  %v4995_v15 = vld [vmem:[%s15655_s21 + $0x160] sm:$0xff] }
 0x5f3   :  { %v12178_v1 = vpack.c.bf16 %v4994_v9, %v4992_v63  ;;  %v5000_v24 = vld [vmem:[%s15655_s21 + $0x188] sm:$0xff]  ;;  %v4999_v28 = vld [vmem:[%s15655_s21 + $0x180] sm:$0xff]  ;;  %v5001_v29 = vld [vmem:[%s15655_s21 + $0x190] sm:$0xff] }
 0x5f4   :  { %v4811_v47 = vadd.f32 %v4810_v46, %v4809_v43  ;;  %v12162_v43 = vpack.c.bf16 %v4978_v40, %v4976_v39  ;;  %v4977_v46 = vld [vmem:[%s15655_s21 + $0xd0] sm:$0xff]  ;;  %v12188_v30 = vpack.c.bf16 %v5001_v29, %v4999_v28  ;;  %v5004_v34 = vld [vmem:[%s15655_s21 + $0x1a8] sm:$0xff]  ;;  %v5006_v39 = vld [vmem:[%s15655_s21 + $0x1b8] sm:$0xff] }
 0x5f5   :  { %12149 = vmatpush1.bf16.msra.mxu0 %v12148_v12  ;;  %v4998_v12 = vld [vmem:[%s15655_s21 + $0x178] sm:$0xff]  ;;  %v5009_v35 = vld [vmem:[%s15655_s21 + $0x1d0] sm:$0xff] }
 0x5f6   :  { %v4813_v49 = vadd.f32 %v4812_v48, %v4811_v47  ;;  %12151 = vmatprep.subr.bf16.mxu0 %v12150_v13  ;;  %v4980_v47 = vld [vmem:[%s15655_s21 + $0xe8] sm:$0xff]  ;;  %v4982_v48 = vld [vmem:[%s15655_s21 + $0xf8] sm:$0xff]  ;;  %v12180_v13 = vpack.c.bf16 %v4993_v3, %v4991_v10  ;;  %v12182_v14 = vpack.c.bf16 %v4998_v12, %v4996_v5 }
 0x5f7   :  { %v5012_v5 = vld [vmem:[%s15655_s21 + $0x1e8] sm:$0xff]  ;;  %v5014_v12 = vld [vmem:[%s15655_s21 + $0x1f8] sm:$0xff] }
 0x5f8   :  { %v4815_v51 = vadd.f32 %v4814_v50, %v4813_v49  ;;  %v12164_v49 = vpack.c.bf16 %v4977_v46, %v4975_v45  ;;  %v12166_v50 = vpack.c.bf16 %v4982_v48, %v4980_v47  ;;  %v5005_v45 = vld [vmem:[%s15655_s21 + $0x1b0] sm:$0xff] }
 0x5f9   :  { %12153 = vmatpush1.bf16.msra.mxu0 %v12152_v25  ;;  %v5002_v25 = vld [vmem:[%s15655_s21 + $0x198] sm:$0xff] }
 0x5fa   :  { %4816 = vadd.xlane.f32.xlu1 %v4815_v51  ;;  %12155 = vmatprep.subr.bf16.mxu0 %v12154_v26  ;;  %v4979_v51 = vld [vmem:[%s15655_s21 + $0xe0] sm:$0xff]  ;;  %v12184_v26 = vpack.c.bf16 %v4997_v23, %v4995_v15  ;;  %v12186_v27 = vpack.c.bf16 %v5002_v25, %v5000_v24  ;;  %v12198_v15 = vpack.c.bf16 %v5014_v12, %v5012_v5  ;;  %v5013_v24 = vld [vmem:[%s15655_s21 + $0x1f0] sm:$0xff]  ;;  %v5026_v5 = vld [vmem:[%s15655_s21 + $0x258] sm:$0xff] }
 0x5fb   :  { %v5011_v23 = vld [vmem:[%s15655_s21 + $0x1e0] sm:$0xff] }
 0x5fd   :  { %12157 = vmatpush1.bf16.msra.mxu0 %v12156_v31 }
 0x5fe   :  { %12159 = vmatprep.subr.bf16.mxu0 %v12158_v32 }
 0x601   :  { %12161 = vmatpush1.bf16.msra.mxu0 %v12160_v36  ;;  %v12190_v36 = vpack.c.bf16 %v5006_v39, %v5004_v34 }
 0x602   :  { %12163 = vmatprep.subr.bf16.mxu0 %v12162_v43  ;;  %v5003_v43 = vld [vmem:[%s15655_s21 + $0x1a0] sm:$0xff] }
 0x603   :  { %v12192_v55 = vpack.c.bf16 %v5005_v45, %v5003_v43 }
 0x605   :  { %12165 = vmatpush1.bf16.msra.mxu0 %v12164_v49 }
 0x606   :  { %12167 = vmatprep.subr.bf16.mxu0 %v12166_v50  ;;  %v4831_v50 = vpop.permute.xlu0 %4830 }
 0x60b   :  { %4843 = vperm.xlu1 %12802, %v11320_v52   ;;  %v4981_v52 = vld [vmem:[%s15655_s21 + $0xf0] sm:$0xff] }
 0x60c   :  { %v12168_v7 = vpack.c.bf16 %v4981_v52, %v4979_v51 }
 0x60e   :  { %12169 = vmatpush1.bf16.msra.mxu0 %v12168_v7 }
 0x60f   :  { %12171 = vmatprep.subr.bf16.mxu0 %v12170_v60 }
 0x612   :  { %12173 = vmatpush1.bf16.msra.mxu0 %v12172_v42 }
 0x613   :  { %12175 = vmatprep.subr.bf16.mxu0 %v12174_v37 }
 0x616   :  { %12177 = vmatpush1.bf16.msra.mxu0 %v12176_v4 }
 0x617   :  { %12179 = vmatprep.subr.bf16.mxu0 %v12178_v1 }
 0x61a   :  { %12181 = vmatpush1.bf16.msra.mxu0 %v12180_v13 }
 0x61b   :  { %12183 = vmatprep.subr.bf16.mxu0 %v12182_v14 }
 0x61e   :  { %12185 = vmatpush1.bf16.msra.mxu0 %v12184_v26 }
 0x61f   :  { %12187 = vmatprep.subr.bf16.mxu0 %v12186_v27 }
 0x622   :  { %12189 = vmatpush1.bf16.msra.mxu0 %v12188_v30 }
 0x623   :  { %12191 = vmatprep.subr.bf16.mxu0 %v12190_v36 }
 0x626   :  { %12193 = vmatpush1.bf16.msra.mxu0 %v12192_v55 }
 0x687   :  { %v4817_v31 = vpop.xlane.xlu1 %4816 }
 0x688   :  { %v4818_v32 = vmul.f32 0.001953125, %v4817_v31  ;;  %v12200_v31 = vpack.c.bf16 %v5013_v24, %v5011_v23  ;;  %v5025_v23 = vld [vmem:[%s15655_s21 + $0x250] sm:$0xff]  ;;  %v5028_v24 = vld [vmem:[%s15655_s21 + $0x268] sm:$0xff] }
 0x68a   :  { %v4820_v33 = vadd.f32 1e-05, %v4818_v32 }
 0x68c   :  { %13025 = vrsqrt.f32 %v4820_v33 }
 0x696   :  { %v13026_v40 = vpop.eup %13025 }
 0x697   :  { %v4823_v46 = vmul.f32 %v13026_v40, %v14178_v18  ;;  %v4824_v47 = vmul.f32 %v13026_v40, %v14180_v19  ;;  %v4825_v48 = vmul.f32 %v13026_v40, %v14182_v20  ;;  %v4826_v49 = vmul.f32 %v13026_v40, %v14184_v21  ;;  %v5008_v18 = vld [vmem:[%s15655_s21 + $0x1c8] sm:$0xff]  ;;  %v5010_v19 = vld [vmem:[%s15655_s21 + $0x1d8] sm:$0xff]  ;;  %v4844_v20 = vpop.permute.xlu1 %4843 }
 0x698   :  { %v4822_v51 = vmul.f32 %v13026_v40, %v14176_v17  ;;  %v4827_v52 = vmul.f32 %v13026_v40, %v14186_v22  ;;  %v12194_v17 = vpack.c.bf16 %v5010_v19, %v5008_v18  ;;  %v5007_v22 = vld [vmem:[%s15655_s21 + $0x1c0] sm:$0xff]  ;;  %v5017_v19 = vld [vmem:[%s15655_s21 + $0x210] sm:$0xff] }
 0x699   :  { %v4834_v59 = vmul.f32 %v4831_v50, %v4823_v46  ;;  %v4835_v7 = vmul.f32 %v4831_v50, %v4824_v47  ;;  %v4836_v60 = vmul.f32 %v4831_v50, %v4825_v48  ;;  %v4837_v61 = vmul.f32 %v4831_v50, %v4826_v49  ;;  %v5015_v18 = vld [vmem:[%s15655_s21 + $0x200] sm:$0xff] }
 0x69a   :  { %v4833_v21 = vmul.f32 %v4831_v50, %v4822_v51  ;;  %v4838_v38 = vmul.f32 %v4831_v50, %v4827_v52  ;;  %12195 = vmatprep.subr.bf16.mxu0 %v12194_v17  ;;  %v12196_v9 = vpack.c.bf16 %v5009_v35, %v5007_v22  ;;  %v5022_v17 = vld [vmem:[%s15655_s21 + $0x238] sm:$0xff] }
 0x69b   :  { %v4847_v41 = vadd.f32 %v4844_v20, %v4834_v59  ;;  %v4848_v42 = vadd.f32 %v4844_v20, %v4835_v7  ;;  %v4849_v37 = vadd.f32 %v4844_v20, %v4836_v60  ;;  %v4850_v62 = vadd.f32 %v4844_v20, %v4837_v61 }
 0x69c   :  { %v4846_v44 = vadd.f32 %v4844_v20, %v4833_v21  ;;  %v4851_v63 = vadd.f32 %v4844_v20, %v4838_v38  ;;  %12197 = vmatpush1.bf16.msra.mxu0 %v12196_v9  ;;  %v5020_v38 = vld [vmem:[%s15655_s21 + $0x228] sm:$0xff]  ;;  %v5019_v9 = vld [vmem:[%s15655_s21 + $0x220] sm:$0xff] }
 0x69d   :  { %v4853_v4 = vmax.f32 %v4847_v41, 0.0  ;;  %v4854_v1 = vmax.f32 %v4848_v42, 0.0  ;;  %v4855_v10 = vmax.f32 %v4849_v37, 0.0  ;;  %v4856_v3 = vmax.f32 %v4850_v62, 0.0  ;;  %12199 = vmatprep.subr.bf16.mxu0 %v12198_v15 }
 0x69e   :  { %v4852_v13 = vmax.f32 %v4846_v44, 0.0  ;;  %v4857_v14 = vmax.f32 %v4851_v63, 0.0  ;;  %v12204_v42 = vpack.c.bf16 %v5017_v19, %v5015_v18  ;;  %v12206_v63 = vpack.c.bf16 %v5022_v17, %v5020_v38 }
 0x69f   :  { %v4859_v25 = vmul.f32 %v4853_v4, %v13793_v58  ;;  %v14415_v26 = vmul.f32 %v4854_v1, %v13800_v2  ;;  %v14418_v27 = vmul.f32 %v4855_v10, %v13804_v6  ;;  %v14421_v28 = vmul.f32 %v4856_v3, %v13807_v11  ;;  %v5016_v2 = vld [vmem:[%s15655_s21 + $0x208] sm:$0xff]  ;;  %v5018_v6 = vld [vmem:[%s15655_s21 + $0x218] sm:$0xff]  ;;  %v5021_v4 = vld [vmem:[%s15655_s21 + $0x230] sm:$0xff] }
 0x6a0   :  { %v4858_v29 = vmul.f32 %v4852_v13, %v13789_v57  ;;  %v14425_v30 = vmul.f32 %v4857_v14, %v13810_v16  ;;  %12201 = vmatpush1.bf16.msra.mxu0 %v12200_v31  ;;  %v12202_v16 = vpack.c.bf16 %v5018_v6, %v5016_v2  ;;  %v5024_v3 = vld [vmem:[%s15655_s21 + $0x248] sm:$0xff]  ;;  %v5023_v13 = vld [vmem:[%s15655_s21 + $0x240] sm:$0xff]  ;;  %v12208_v15 = vpack.c.bf16 %v5021_v4, %v5019_v9  ;;  %v5042_v9 = vld [vmem:[%s15655_s21 + $0x2d8] sm:$0xff] }
 0x6a1   :  { %v4871_v32 = vcombine.low %v14415_v26, %v14418_v27  ;;  %v12808_v58 = vpack.i.bf16 %v14415_v26, %v4859_v25  ;;  %v12818_v33 = vpack.i.bf16 %v14421_v28, %v14418_v27 }
 0x6a2   :  { %v4870_v11 = vcombine.low %v4858_v29, %v4859_v25  ;;  %v4872_v57 = vcombine.low %v14421_v28, %v14425_v30  ;;  %12203 = vmatprep.subr.bf16.mxu0 %v12202_v16  ;;  %v12212_v16 = vpack.c.bf16 %v5025_v23, %v5023_v13  ;;  %v5045_v23 = vld [vmem:[%s15655_s21 + $0x2f0] sm:$0xff] }
 0x6a3   :  { %4877 = vst [vmem:[%s15658_s24 + $0x8] sm:$0xff] %v4871_v32  ;;  %12809 = vrot.lane.b32.xlu1 %v12808_v58, %s13212_s28  ;;  %12804 = vrot.lane.b32.xlu0 %v12808_v58, %s13210_s22  ;;  %v12210_v32 = vpack.c.bf16 %v5026_v5, %v5024_v3  ;;  %v5041_v3 = vld [vmem:[%s15655_s21 + $0x2d0] sm:$0xff] }
 0x6a4   :  { %4876 = vst [vmem:[%s15658_s24] sm:$0xff] %v4870_v11  ;;  %4878 = vst [vmem:[%s15658_s24 + $0x10] sm:$0xff] %v4872_v57  ;;  %v5044_v5 = vld [vmem:[%s15655_s21 + $0x2e8] sm:$0xff]  ;;  %s15707_s24 = sld [smem:[#allocation27_spill]] }
 0x6a7   :  { %12814 = vrot.lane.b32.xlu0 %v12808_v58, %s13213_s0  ;;  %4879 = vrot.lane.b32.xlu1 %v4858_v29, %s13210_s22 }
 0x6ab   :  { %4903 = vrot.lane.b32.xlu0 %v4858_v29, %s13212_s28  ;;  %4921 = vrot.lane.b32.xlu1 %v4858_v29, %s13213_s0 }
 0x6af   :  { %12819 = vrot.lane.b32.xlu0 %v12818_v33, %s13210_s22  ;;  %12824 = vrot.lane.b32.xlu1 %v12818_v33, %s13212_s28 }
 0x6b3   :  { %12829 = vrot.lane.b32.xlu0 %v12818_v33, %s13213_s0  ;;  %4889 = vrot.lane.b32.xlu1 %v14425_v30, %s13210_s22 }
 0x6b7   :  { %4913 = vrot.lane.b32.xlu0 %v14425_v30, %s13212_s28  ;;  %4931 = vrot.lane.b32.xlu1 %v14425_v30, %s13213_s0 }
 0x715   :  { %v12810_v34 = vpop.permute.xlu1 %12809  ;;  %v12805_v39 = vpop.permute.xlu0 %12804 }
 0x716   :  { %v12807_v40 = vunpack.i.h.bf16 %v12805_v39  ;;  %v12806_v36 = vunpack.i.l.bf16 %v12805_v39  ;;  %v12812_v43 = vunpack.i.h.bf16 %v12810_v34  ;;  %v12811_v45 = vunpack.i.l.bf16 %v12810_v34 }
 0x718   :  { %v4894_v50 = vsel %vm1368_vm5, %v12806_v36, %v12807_v40  ;;  %v4918_v52 = vsel %vm1854_vm7, %v12811_v45, %v12812_v43 }
 0x719   :  { %v12815_v46 = vpop.permute.xlu0 %12814  ;;  %v14464_v47 = vpop.permute.xlu1 %4879  ;;  %v4898_v60 = vmax.f32 %v4859_v25, %v4894_v50  ;;  %v5030_v25 = vld [vmem:[%s15655_s21 + $0x278] sm:$0xff] }
 0x71a   :  { %v12817_v48 = vunpack.i.h.bf16 %v12815_v46  ;;  %v12816_v49 = vunpack.i.l.bf16 %v12815_v46  ;;  %v4895_v51 = vsel %vm1368_vm5, %v14464_v47, %v12806_v36  ;;  %v12214_v33 = vpack.c.bf16 %v5030_v25, %v5028_v24  ;;  %v5048_v24 = vld [vmem:[%s15655_s21 + $0x308] sm:$0xff]  ;;  %v5050_v25 = vld [vmem:[%s15655_s21 + $0x318] sm:$0xff] }
 0x71b   :  { %v4897_v22 = vmax.f32 %v4858_v29, %v4895_v51  ;;  %v5027_v51 = vld [vmem:[%s15655_s21 + $0x260] sm:$0xff] }
 0x71c   :  { %v4936_v55 = vsel %vm2097_vm8, %v12816_v49, %v12817_v48 }
 0x71d   :  { %v14475_v59 = vpop.permute.xlu0 %4903  ;;  %v14477_v7 = vpop.permute.xlu1 %4921  ;;  %v4940_v61 = vmax.f32 %v4918_v52, %v4936_v55  ;;  %v5029_v52 = vld [vmem:[%s15655_s21 + $0x270] sm:$0xff] }
 0x71e   :  { %v4919_v20 = vsel %vm1854_vm7, %v14475_v59, %v12811_v45  ;;  %v4937_v21 = vsel %vm2097_vm8, %v14477_v7, %v12816_v49 }
 0x71f   :  { %v4939_v35 = vmax.f32 %v4919_v20, %v4937_v21  ;;  %v4946_v41 = vmax.f32 %v4898_v60, %v4940_v61  ;;  %v5034_v60 = vld [vmem:[%s15655_s21 + $0x298] sm:$0xff]  ;;  %v12216_v21 = vpack.c.bf16 %v5029_v52, %v5027_v51 }
 0x720   :  { %v5062_v51 = vld [vmem:[%s15655_s21 + $0x378] sm:$0xff] }
 0x721   :  { %v4945_v37 = vmax.f32 %v4897_v22, %v4939_v35  ;;  %5207 = vmatprep.mubr.f32.mxu0 %v4946_v41  ;;  %v12820_v62 = vpop.permute.xlu0 %12819  ;;  %v12825_v44 = vpop.permute.xlu1 %12824  ;;  %v5031_v22 = vld [vmem:[%s15655_s21 + $0x280] sm:$0xff]  ;;  %v5033_v35 = vld [vmem:[%s15655_s21 + $0x290] sm:$0xff]  ;;  %v5038_v41 = vld [vmem:[%s15655_s21 + $0x2b8] sm:$0xff] }
 0x722   :  { %v12822_v1 = vunpack.i.h.bf16 %v12820_v62  ;;  %v12821_v10 = vunpack.i.l.bf16 %v12820_v62  ;;  %v12826_v12 = vunpack.i.l.bf16 %v12825_v44  ;;  %v12827_v14 = vunpack.i.h.bf16 %v12825_v44  ;;  %v5035_v62 = vld [vmem:[%s15655_s21 + $0x2a0] sm:$0xff]  ;;  %v5037_v44 = vld [vmem:[%s15655_s21 + $0x2b0] sm:$0xff] }
 0x723   :  { %5208 = vmatmul.mubr.f32.vlgmr.msra.gmra.mrb[4].mxu0 %v4945_v37  ;;  %v12224_v4 = vpack.c.bf16 %v5037_v44, %v5035_v62  ;;  %v5072_v62 = vld [vmem:[%s15655_s21 + $0x3c8] sm:$0xff]  ;;  %v5074_v44 = vld [vmem:[%s15655_s21 + $0x3d8] sm:$0xff] }
 0x724   :  { %12205 = vmatpush1.bf16.msra.mxu0 %v12204_v42  ;;  %v4893_v58 = vsel %vm1368_vm5, %v12807_v40, %v12821_v10  ;;  %v4892_v11 = vsel %vm1368_vm5, %v12821_v10, %v12822_v1  ;;  %v4917_v57 = vsel %vm1854_vm7, %v12812_v43, %v12826_v12  ;;  %v4916_v40 = vsel %vm1854_vm7, %v12826_v12, %v12827_v14  ;;  %v5039_v10 = vld [vmem:[%s15655_s21 + $0x2c0] sm:$0xff]  ;;  %v5046_v12 = vld [vmem:[%s15655_s21 + $0x2f8] sm:$0xff] }
 0x725   :  { %v12830_v29 = vpop.permute.xlu0 %12829  ;;  %v14521_v31 = vpop.permute.xlu1 %4889  ;;  %12207 = vmatprep.subr.bf16.mxu0 %v12206_v63  ;;  %v4899_v45 = vmax.f32 %v14415_v26, %v4893_v58  ;;  %v12220_v42 = vpack.c.bf16 %v5033_v35, %v5031_v22  ;;  %v5040_v63 = vld [vmem:[%s15655_s21 + $0x2c8] sm:$0xff]  ;;  %v12228_v13 = vpack.c.bf16 %v5041_v3, %v5039_v10  ;;  %v5047_v58 = vld [vmem:[%s15655_s21 + $0x300] sm:$0xff]  ;;  %v5070_v35 = vld [vmem:[%s15655_s21 + $0x3b8] sm:$0xff] }
 0x726   :  { %v12832_v2 = vunpack.i.h.bf16 %v12830_v29  ;;  %v12831_v6 = vunpack.i.l.bf16 %v12830_v29  ;;  %v4891_v39 = vsel %vm1368_vm5, %v12822_v1, %v14521_v31  ;;  %v12226_v1 = vpack.c.bf16 %v5042_v9, %v5040_v63  ;;  %v5068_v22 = vld [vmem:[%s15655_s21 + $0x3a8] sm:$0xff]  ;;  %v5078_v3 = vld [vmem:[%s15655_s21 + $0x3f8] sm:$0xff] }
 0x727   :  { %v4901_v61 = vmax.f32 %v14421_v28, %v4891_v39  ;;  %v5036_v28 = vld [vmem:[%s15655_s21 + $0x2a8] sm:$0xff]  ;;  %v12258_v9 = vpack.c.bf16 %v5074_v44, %v5072_v62  ;;  %v5103_v62 = vld [vmem:[%s15655_s21 + $0x4c0] sm:$0xff]  ;;  %v5105_v44 = vld [vmem:[%s15655_s21 + $0x4d0] sm:$0xff] }
 0x728   :  { %v4935_v34 = vsel %vm2097_vm8, %v12817_v48, %v12831_v6  ;;  %12209 = vmatpush1.bf16.msra.mxu0 %v12208_v15  ;;  %v4934_v36 = vsel %vm2097_vm8, %v12831_v6, %v12832_v2  ;;  %v4900_v48 = vmax.f32 %v14418_v27, %v4892_v11  ;;  %v5032_v27 = vld [vmem:[%s15655_s21 + $0x288] sm:$0xff]  ;;  %v12222_v37 = vpack.c.bf16 %v5038_v41, %v5036_v28  ;;  %v5043_v15 = vld [vmem:[%s15655_s21 + $0x2e0] sm:$0xff]  ;;  %v5054_v11 = vld [vmem:[%s15655_s21 + $0x338] sm:$0xff] }
 0x729   :  { %v4941_v46 = vmax.f32 %v4917_v57, %v4935_v34  ;;  %v14539_v43 = vpop.permute.xlu0 %4913  ;;  %v14541_v49 = vpop.permute.xlu1 %4931  ;;  %12211 = vmatprep.subr.bf16.mxu0 %v12210_v32  ;;  %v4942_v50 = vmax.f32 %v4916_v40, %v4934_v36  ;;  %v12218_v17 = vpack.c.bf16 %v5034_v60, %v5032_v27  ;;  %v12232_v29 = vpack.c.bf16 %v5045_v23, %v5043_v15  ;;  %v5052_v6 = vld [vmem:[%s15655_s21 + $0x328] sm:$0xff]  ;;  %v5053_v34 = vld [vmem:[%s15655_s21 + $0x330] sm:$0xff]  ;;  %v5058_v40 = vld [vmem:[%s15655_s21 + $0x358] sm:$0xff] }
 0x72a   :  { %v4915_v26 = vsel %vm1854_vm7, %v12827_v14, %v14539_v43  ;;  %v4933_v55 = vsel %vm2097_vm8, %v12832_v2, %v14541_v49  ;;  %v12230_v14 = vpack.c.bf16 %v5046_v12, %v5044_v5  ;;  %v12234_v32 = vpack.c.bf16 %v5050_v25, %v5048_v24  ;;  %v5049_v2 = vld [vmem:[%s15655_s21 + $0x310] sm:$0xff]  ;;  %v5056_v39 = vld [vmem:[%s15655_s21 + $0x348] sm:$0xff]  ;;  %v5082_v23 = vld [vmem:[%s15655_s21 + $0x418] sm:$0xff] }
 0x72b   :  { %v4943_v18 = vmax.f32 %v4915_v26, %v4933_v55  ;;  %v4948_v19 = vmax.f32 %v4900_v48, %v4942_v50  ;;  %v14563_v20 = vmax.f32 %v4899_v45, %v4941_v46  ;;  %v12236_v57 = vpack.c.bf16 %v5049_v2, %v5047_v58  ;;  %v5055_v46 = vld [vmem:[%s15655_s21 + $0x340] sm:$0xff]  ;;  %v5057_v48 = vld [vmem:[%s15655_s21 + $0x350] sm:$0xff]  ;;  %v5060_v50 = vld [vmem:[%s15655_s21 + $0x368] sm:$0xff] }
 0x72c   :  { %12213 = vmatpush1.bf16.msra.mxu0 %v12212_v16  ;;  %v12238_v16 = vpack.c.bf16 %v5054_v11, %v5052_v6  ;;  %v12242_v45 = vpack.c.bf16 %v5058_v40, %v5056_v39  ;;  %v12244_v52 = vpack.c.bf16 %v5057_v48, %v5055_v46  ;;  %v12246_v26 = vpack.c.bf16 %v5062_v51, %v5060_v50  ;;  %v5059_v55 = vld [vmem:[%s15655_s21 + $0x360] sm:$0xff]  ;;  %v5061_v27 = vld [vmem:[%s15655_s21 + $0x370] sm:$0xff]  ;;  %v5064_v60 = vld [vmem:[%s15655_s21 + $0x388] sm:$0xff] }
 0x72d   :  { %v14565_v38 = vmax.f32 %v4901_v61, %v4943_v18  ;;  %5278 = vmatprep.mubr.f32.mxu0 %v4948_v19  ;;  %12215 = vmatprep.subr.bf16.mxu0 %v12214_v33  ;;  %v5051_v33 = vld [vmem:[%s15655_s21 + $0x320] sm:$0xff]  ;;  %v5066_v61 = vld [vmem:[%s15655_s21 + $0x398] sm:$0xff]  ;;  %v12248_v18 = vpack.c.bf16 %v5061_v27, %v5059_v55  ;;  %v12254_v41 = vpack.c.bf16 %v5070_v35, %v5068_v22  ;;  %v5076_v10 = vld [vmem:[%s15655_s21 + $0x3e8] sm:$0xff] }
 0x72e   :  { %v12240_v36 = vpack.c.bf16 %v5053_v34, %v5051_v33  ;;  %v12250_v19 = vpack.c.bf16 %v5066_v61, %v5064_v60  ;;  %v12262_v12 = vpack.c.bf16 %v5078_v3, %v5076_v10  ;;  %v5080_v15 = vld [vmem:[%s15655_s21 + $0x408] sm:$0xff]  ;;  %v4920_v24 = vsel %vm1854_vm7, %v14539_v43, %v14475_v59  ;;  %v5079_v2 = vld [vmem:[%s15655_s21 + $0x400] sm:$0xff]  ;;  %v5081_v59 = vld [vmem:[%s15655_s21 + $0x410] sm:$0xff] }
 0x72f   :  { %v4938_v25 = vsel %vm2097_vm8, %v14541_v49, %v14477_v7  ;;  %v12266_v58 = vpack.c.bf16 %v5082_v23, %v5080_v15  ;;  %v5084_v7 = vld [vmem:[%s15655_s21 + $0x428] sm:$0xff]  ;;  %v5086_v49 = vld [vmem:[%s15655_s21 + $0x438] sm:$0xff]  ;;  %v5083_v11 = vld [vmem:[%s15655_s21 + $0x420] sm:$0xff] }
 0x730   :  { %12217 = vmatpush1.bf16.msra.mxu0 %v12216_v21  ;;  %v5063_v21 = vld [vmem:[%s15655_s21 + $0x380] sm:$0xff]  ;;  %v4944_v43 = vmax.f32 %v4920_v24, %v4938_v25  ;;  %v12270_v6 = vpack.c.bf16 %v5086_v49, %v5084_v7  ;;  %v5088_v33 = vld [vmem:[%s15655_s21 + $0x448] sm:$0xff]  ;;  %v5093_v51 = vld [vmem:[%s15655_s21 + $0x470] sm:$0xff] }
 0x731   :  { %12219 = vmatprep.subr.bf16.mxu0 %v12218_v17  ;;  %v5065_v17 = vld [vmem:[%s15655_s21 + $0x390] sm:$0xff]  ;;  %v5087_v40 = vld [vmem:[%s15655_s21 + $0x440] sm:$0xff]  ;;  %v5116_v24 = vld [vmem:[%s15655_s21 + $0x528] sm:$0xff] }
 0x732   :  { %v12252_v28 = vpack.c.bf16 %v5065_v17, %v5063_v21  ;;  %v5091_v50 = vld [vmem:[%s15655_s21 + $0x460] sm:$0xff]  ;;  %v5097_v61 = vld [vmem:[%s15655_s21 + $0x490] sm:$0xff]  ;;  %v5118_v25 = vld [vmem:[%s15655_s21 + $0x538] sm:$0xff] }
 0x733   :  { %v12280_v55 = vpack.c.bf16 %v5093_v51, %v5091_v50  ;;  %v5095_v60 = vld [vmem:[%s15655_s21 + $0x480] sm:$0xff]  ;;  %v5101_v35 = vld [vmem:[%s15655_s21 + $0x4b0] sm:$0xff] }
 0x734   :  { %12221 = vmatpush1.bf16.msra.mxu0 %v12220_v42  ;;  %v5067_v42 = vld [vmem:[%s15655_s21 + $0x3a0] sm:$0xff]  ;;  %v12284_v21 = vpack.c.bf16 %v5097_v61, %v5095_v60  ;;  %v5109_v3 = vld [vmem:[%s15655_s21 + $0x4f0] sm:$0xff] }
 0x735   :  { %12223 = vmatprep.subr.bf16.mxu0 %v12222_v37  ;;  %v5069_v37 = vld [vmem:[%s15655_s21 + $0x3b0] sm:$0xff]  ;;  %v5099_v22 = vld [vmem:[%s15655_s21 + $0x4a0] sm:$0xff] }
 0x736   :  { %v12256_v63 = vpack.c.bf16 %v5069_v37, %v5067_v42  ;;  %v12288_v42 = vpack.c.bf16 %v5101_v35, %v5099_v22  ;;  %v5107_v10 = vld [vmem:[%s15655_s21 + $0x4e0] sm:$0xff]  ;;  %v5113_v23 = vld [vmem:[%s15655_s21 + $0x510] sm:$0xff] }
 0x737   :  { %v5111_v15 = vld [vmem:[%s15655_s21 + $0x500] sm:$0xff] }
 0x738   :  { %12225 = vmatpush1.bf16.msra.mxu0 %v12224_v4  ;;  %v5071_v4 = vld [vmem:[%s15655_s21 + $0x3c0] sm:$0xff] }
 0x739   :  { %12227 = vmatprep.subr.bf16.mxu0 %v12226_v1  ;;  %v5073_v1 = vld [vmem:[%s15655_s21 + $0x3d0] sm:$0xff] }
 0x73a   :  { %v12260_v5 = vpack.c.bf16 %v5073_v1, %v5071_v4  ;;  %v12292_v4 = vpack.c.bf16 %v5105_v44, %v5103_v62 }
 0x73c   :  { %12229 = vmatpush1.bf16.msra.mxu0 %v12228_v13  ;;  %v5075_v13 = vld [vmem:[%s15655_s21 + $0x3e0] sm:$0xff] }
 0x73d   :  { %12231 = vmatprep.subr.bf16.mxu0 %v12230_v14  ;;  %v5077_v14 = vld [vmem:[%s15655_s21 + $0x3f0] sm:$0xff] }
 0x740   :  { %12233 = vmatpush1.bf16.msra.mxu0 %v12232_v29  ;;  %v12264_v29 = vpack.c.bf16 %v5077_v14, %v5075_v13  ;;  %v12296_v13 = vpack.c.bf16 %v5109_v3, %v5107_v10 }
 0x741   :  { %12235 = vmatprep.subr.bf16.mxu0 %v12234_v32  ;;  %v4896_v32 = vsel %vm1368_vm5, %v14521_v31, %v14464_v47  ;;  %v12268_v31 = vpack.c.bf16 %v5081_v59, %v5079_v2  ;;  %v5117_v2 = vld [vmem:[%s15655_s21 + $0x530] sm:$0xff]  ;;  %v5120_v59 = vld [vmem:[%s15655_s21 + $0x548] sm:$0xff] }
 0x742   :  { %v4902_v47 = vmax.f32 %v14425_v30, %v4896_v32  ;;  %v5090_v30 = vld [vmem:[%s15655_s21 + $0x458] sm:$0xff]  ;;  %v12302_v32 = vpack.c.bf16 %v5118_v25, %v5116_v24 }
 0x743   :  { %v12274_v39 = vpack.c.bf16 %v5090_v30, %v5088_v33  ;;  %v5123_v33 = vld [vmem:[%s15655_s21 + $0x560] sm:$0xff]  ;;  %v5125_v30 = vld [vmem:[%s15655_s21 + $0x570] sm:$0xff] }
 0x744   :  { %12237 = vmatpush1.bf16.msra.mxu0 %v12236_v57  ;;  %v5085_v57 = vld [vmem:[%s15655_s21 + $0x430] sm:$0xff] }
 0x745   :  { %12239 = vmatprep.subr.bf16.mxu0 %v12238_v16  ;;  %v4950_v16 = vmax.f32 %v4902_v47, %v4944_v43  ;;  %v12272_v34 = vpack.c.bf16 %v5085_v57, %v5083_v11  ;;  %v5122_v43 = vld [vmem:[%s15655_s21 + $0x558] sm:$0xff]  ;;  %v5119_v47 = vld [vmem:[%s15655_s21 + $0x540] sm:$0xff] }
 0x746   :  { %v12306_v49 = vpack.c.bf16 %v5122_v43, %v5120_v59  ;;  %v5126_v11 = vld [vmem:[%s15655_s21 + $0x578] sm:$0xff] }
 0x748   :  { %12241 = vmatpush1.bf16.msra.mxu0 %v12240_v36  ;;  %v5089_v36 = vld [vmem:[%s15655_s21 + $0x450] sm:$0xff] }
 0x749   :  { %12243 = vmatprep.subr.bf16.mxu0 %v12242_v45  ;;  %v5092_v45 = vld [vmem:[%s15655_s21 + $0x468] sm:$0xff]  ;;  %v12276_v46 = vpack.c.bf16 %v5089_v36, %v5087_v40  ;;  %v12312_v40 = vpack.c.bf16 %v5125_v30, %v5123_v33 }
 0x74c   :  { %12245 = vmatpush1.bf16.msra.mxu0 %v12244_v52  ;;  %v5096_v52 = vld [vmem:[%s15655_s21 + $0x488] sm:$0xff] }
 0x74d   :  { %12247 = vmatprep.subr.bf16.mxu0 %v12246_v26  ;;  %v5098_v26 = vld [vmem:[%s15655_s21 + $0x498] sm:$0xff] }
 0x74e   :  { %v12282_v27 = vpack.c.bf16 %v5098_v26, %v5096_v52  ;;  %v5131_v52 = vld [vmem:[%s15655_s21 + $0x5a0] sm:$0xff]  ;;  %v5133_v26 = vld [vmem:[%s15655_s21 + $0x5b0] sm:$0xff] }
 0x74f   :  { %v12320_v60 = vpack.c.bf16 %v5133_v26, %v5131_v52 }
 0x750   :  { %12249 = vmatpush1.bf16.msra.mxu0 %v12248_v18  ;;  %v5100_v18 = vld [vmem:[%s15655_s21 + $0x4a8] sm:$0xff] }
 0x751   :  { %12251 = vmatprep.subr.bf16.mxu0 %v12250_v19  ;;  %v5102_v19 = vld [vmem:[%s15655_s21 + $0x4b8] sm:$0xff] }
 0x752   :  { %v12286_v17 = vpack.c.bf16 %v5102_v19, %v5100_v18  ;;  %v5135_v18 = vld [vmem:[%s15655_s21 + $0x5c0] sm:$0xff]  ;;  %v5137_v19 = vld [vmem:[%s15655_s21 + $0x5d0] sm:$0xff] }
 0x753   :  { %v12324_v22 = vpack.c.bf16 %v5137_v19, %v5135_v18  ;;  %v6189_v19 = vld [vmem:[%s15707_s24] sm:$0xff] }
 0x754   :  { %12253 = vmatpush1.bf16.msra.mxu0 %v12252_v28  ;;  %v5104_v28 = vld [vmem:[%s15655_s21 + $0x4c8] sm:$0xff] }
 0x755   :  { %12255 = vmatprep.subr.bf16.mxu0 %v12254_v41  ;;  %v5106_v41 = vld [vmem:[%s15655_s21 + $0x4d8] sm:$0xff] }
 0x756   :  { %v12290_v37 = vpack.c.bf16 %v5106_v41, %v5104_v28  ;;  %v5139_v28 = vld [vmem:[%s15655_s21 + $0x5e0] sm:$0xff]  ;;  %v5141_v41 = vld [vmem:[%s15655_s21 + $0x5f0] sm:$0xff] }
 0x758   :  { %12257 = vmatpush1.bf16.msra.mxu0 %v12256_v63  ;;  %v5108_v63 = vld [vmem:[%s15655_s21 + $0x4e8] sm:$0xff] }
 0x759   :  { %12259 = vmatprep.subr.bf16.mxu0 %v12258_v9  ;;  %v5110_v9 = vld [vmem:[%s15655_s21 + $0x4f8] sm:$0xff] }
 0x75a   :  { %v12294_v1 = vpack.c.bf16 %v5110_v9, %v5108_v63 }
 0x75c   :  { %12261 = vmatpush1.bf16.msra.mxu0 %v12260_v5  ;;  %v5112_v5 = vld [vmem:[%s15655_s21 + $0x508] sm:$0xff] }
 0x75d   :  { %12263 = vmatprep.subr.bf16.mxu0 %v12262_v12  ;;  %v5114_v12 = vld [vmem:[%s15655_s21 + $0x518] sm:$0xff] }
 0x75e   :  { %v12298_v14 = vpack.c.bf16 %v5114_v12, %v5112_v5 }
 0x760   :  { %12265 = vmatpush1.bf16.msra.mxu0 %v12264_v29  ;;  %v12300_v29 = vpack.c.bf16 %v5113_v23, %v5111_v15  ;;  %v5364_v15 = vld [vmem:[%s15706_s9] sm:$0xff] }
 0x761   :  { %12267 = vmatprep.subr.bf16.mxu0 %v12266_v58  ;;  %v5115_v58 = vld [vmem:[%s15655_s21 + $0x520] sm:$0xff] }
 0x762   :  { %v12304_v7 = vpack.c.bf16 %v5117_v2, %v5115_v58  ;;  %v11332_v2 = vld [vmem:[%s15706_s9 + $0x18] sm:$0xff] }
 0x763   :  { %5279 = vmatmul.mubr.f32.vlgmr.msra.gmra.mrb[4].mxu0 %v14563_v20  ;;  %v5094_v20 = vld [vmem:[%s15655_s21 + $0x478] sm:$0xff] }
 0x764   :  { %12269 = vmatpush1.bf16.msra.mxu0 %v12268_v31  ;;  %5349 = vmatprep.mubr.f32.mxu0 %v4950_v16  ;;  %v12278_v48 = vpack.c.bf16 %v5094_v20, %v5092_v45  ;;  %v5121_v31 = vld [vmem:[%s15655_s21 + $0x550] sm:$0xff]  ;;  %v5127_v45 = vld [vmem:[%s15655_s21 + $0x580] sm:$0xff] }
 0x765   :  { %12271 = vmatprep.subr.bf16.mxu0 %v12270_v6  ;;  %v5124_v6 = vld [vmem:[%s15655_s21 + $0x568] sm:$0xff]  ;;  %v12308_v57 = vpack.c.bf16 %v5121_v31, %v5119_v47  ;;  %v5129_v20 = vld [vmem:[%s15655_s21 + $0x590] sm:$0xff] }
 0x766   :  { %v12310_v16 = vpack.c.bf16 %v5126_v11, %v5124_v6  ;;  %v12316_v50 = vpack.c.bf16 %v5129_v20, %v5127_v45 }
 0x768   :  { %12273 = vmatpush1.bf16.msra.mxu0 %v12272_v34  ;;  %v5128_v34 = vld [vmem:[%s15655_s21 + $0x588] sm:$0xff] }
 0x769   :  { %12275 = vmatprep.subr.bf16.mxu0 %v12274_v39  ;;  %v5130_v39 = vld [vmem:[%s15655_s21 + $0x598] sm:$0xff] }
 0x76a   :  { %v12314_v36 = vpack.c.bf16 %v5130_v39, %v5128_v34  ;;  %v11344_v39 = vld [vmem:[%s15706_s9 + $0x30] sm:$0xff] }
 0x76c   :  { %12277 = vmatpush1.bf16.msra.mxu0 %v12276_v46  ;;  %v5132_v46 = vld [vmem:[%s15655_s21 + $0x5a8] sm:$0xff] }
 0x76d   :  { %12279 = vmatprep.subr.bf16.mxu0 %v12278_v48  ;;  %v5134_v48 = vld [vmem:[%s15655_s21 + $0x5b8] sm:$0xff] }
 0x76e   :  { %v12318_v51 = vpack.c.bf16 %v5134_v48, %v5132_v46  ;;  %v11348_v46 = vld [vmem:[%s15706_s9 + $0x38] sm:$0xff] }
 0x770   :  { %12281 = vmatpush1.bf16.msra.mxu0 %v12280_v55  ;;  %v5136_v55 = vld [vmem:[%s15655_s21 + $0x5c8] sm:$0xff] }
 0x771   :  { %12283 = vmatprep.subr.bf16.mxu0 %v12282_v27  ;;  %v5138_v27 = vld [vmem:[%s15655_s21 + $0x5d8] sm:$0xff] }
 0x772   :  { %v12322_v61 = vpack.c.bf16 %v5138_v27, %v5136_v55 }
 0x774   :  { %12285 = vmatpush1.bf16.msra.mxu0 %v12284_v21  ;;  %v5140_v21 = vld [vmem:[%s15655_s21 + $0x5e8] sm:$0xff] }
 0x775   :  { %12287 = vmatprep.subr.bf16.mxu0 %v12286_v17  ;;  %v5142_v17 = vld [vmem:[%s15655_s21 + $0x5f8] sm:$0xff]  ;;  %s13217_s21 = smov 9  }
 0x776   :  { %v12326_v35 = vpack.c.bf16 %v5142_v17, %v5140_v21 }
 0x778   :  { %12289 = vmatpush1.bf16.msra.mxu0 %v12288_v42  ;;  %v12328_v42 = vpack.c.bf16 %v5141_v41, %v5139_v28 }
 0x779   :  { %12291 = vmatprep.subr.bf16.mxu0 %v12290_v37 }
 0x77c   :  { %12293 = vmatpush1.bf16.msra.mxu0 %v12292_v4  ;;  %v11321_v4 = vld [vmem:[%s15706_s9 + $0x8] sm:$0xff] }
 0x77d   :  { %12295 = vmatprep.subr.bf16.mxu0 %v12294_v1 }
 0x780   :  { %12297 = vmatpush1.bf16.msra.mxu0 %v12296_v13 }
 0x781   :  { %12299 = vmatprep.subr.bf16.mxu0 %v12298_v14 }
 0x784   :  { %12301 = vmatpush1.bf16.msra.mxu0 %v12300_v29 }
 0x785   :  { %12303 = vmatprep.subr.bf16.mxu0 %v12302_v32  ;;  %v11328_v32 = vld [vmem:[%s15706_s9 + $0x10] sm:$0xff] }
 0x788   :  { %12305 = vmatpush1.bf16.msra.mxu0 %v12304_v7 }
 0x789   :  { %12307 = vmatprep.subr.bf16.mxu0 %v12306_v49  ;;  %v11336_v49 = vld [vmem:[%s15706_s9 + $0x20] sm:$0xff] }
 0x78c   :  { %12309 = vmatpush1.bf16.msra.mxu0 %v12308_v57  ;;  %v11340_v57 = vld [vmem:[%s15706_s9 + $0x28] sm:$0xff] }
 0x78d   :  { %12311 = vmatprep.subr.bf16.mxu0 %v12310_v16 }
 0x790   :  { %12313 = vmatpush1.bf16.msra.mxu0 %v12312_v40 }
 0x791   :  { %12315 = vmatprep.subr.bf16.mxu0 %v12314_v36 }
 0x794   :  { %12317 = vmatpush1.bf16.msra.mxu0 %v12316_v50  ;;  %v11352_v50 = vld [vmem:[%s15706_s9 + $0x40] sm:$0xff] }
 0x795   :  { %12319 = vmatprep.subr.bf16.mxu0 %v12318_v51  ;;  %v5356_v51 = vld [vmem:[%s15652_s18] sm:$0x3]  ;;  %s13229_s18 = smov 124  }
 0x796   :  { %v15045_v52 = vrot.slane %v5356_v51, %v2331_v54  ;;  %v15049_v26 = vrot.slane %v5356_v51, %v2335_v56 }
 0x798   :  { %12321 = vmatpush1.bf16.msra.mxu0 %v12320_v60 }
 0x799   :  { %12323 = vmatprep.subr.bf16.mxu0 %v12322_v61 }
 0x79c   :  { %12325 = vmatpush1.bf16.msra.mxu0 %v12324_v22 }
 0x79d   :  { %12327 = vmatprep.subr.bf16.mxu0 %v12326_v35 }
 0x7a0   :  { %12329 = vmatpush1.bf16.msra.mxu0 %v12328_v42  ;;  %v11356_v42 = vld [vmem:[%s15707_s24 + $0x8] sm:$0xff]  ;;  %s13228_s24 = smov 125  }
 0x7a3   :  { %5350 = vmatmul.mubr.f32.vlgmr.msra.gmra.mrb[4].mxu0 %v14565_v38 }
 0x876   :  { %v14912_v37 = vpop.f32.mrb[4].mxu0 }
 0x877   :  { %5365 = vrot.lane.b32.xlu0 %v14912_v37, %s13215_s27  ;;  %v5353_v62 = vpop.f32.mrb[5].mxu0 }
 0x878   :  { %5367 = vrot.lane.b32.xlu1 %v5353_v62, %s13215_s27 }
 0x87b   :  { %5357 = vrot.lane.b32.xlu0 %v14912_v37, %s13216_s3 }
 0x87c   :  { %5359 = vrot.lane.b32.xlu1 %v5353_v62, %s13216_s3 }
 0x87f   :  { %5534 = vrot.lane.b32.xlu0 %v14912_v37, %s13217_s21 }
 0x880   :  { %5536 = vrot.lane.b32.xlu1 %v5353_v62, %s13217_s21 }
 0x883   :  { %5625 = vrot.lane.b32.xlu0 %v14912_v37, %s13209_s7 }
 0x884   :  { %5627 = vrot.lane.b32.xlu1 %v5353_v62, %s13209_s7 }
 0x887   :  { %5799 = vrot.lane.b32.xlu0 %v14912_v37, %s13210_s22 }
 0x888   :  { %5801 = vrot.lane.b32.xlu1 %v5353_v62, %s13210_s22 }
 0x88b   :  { %5889 = vrot.lane.b32.xlu0 %v14912_v37, %s13218_s15 }
 0x88c   :  { %5891 = vrot.lane.b32.xlu1 %v5353_v62, %s13218_s15 }
 0x88f   :  { %5980 = vrot.lane.b32.xlu0 %v14912_v37, %s13219_s29 }
 0x890   :  { %5982 = vrot.lane.b32.xlu1 %v5353_v62, %s13219_s29 }
 0x893   :  { %6071 = vrot.lane.b32.xlu0 %v14912_v37, %s13220_s5 }
 0x894   :  { %6073 = vrot.lane.b32.xlu1 %v5353_v62, %s13220_s5 }
 0x8e9   :  { %v5366_v38 = vpop.permute.xlu0 %5365 }
 0x8ea   :  { %v5368_v44 = vpop.permute.xlu1 %5367 }
 0x8eb   :  { %v5371_v63 = vsel %vm5369_vm11, %v5368_v44, %v5366_v38  ;;  %v5370_v9 = vsel %vm5369_vm11, %v5366_v38, %v5368_v44 }
 0x8ec   :  { %11322 = vmatprep.subr.msk.mxu1 %vm2365_vm9, %v5370_v9 }
 0x8ed   :  { %v5358_v1 = vpop.permute.xlu0 %5357  ;;  %11323 = vmatpush1.msk.msra.mxu1 %vm2365_vm9, %v5371_v63 }
 0x8ee   :  { %11324 = vmatmul.mubr.msk.f32.vlgmr.msra.gmra.mrb[8].mxu1 %vm2496_vm10, %v11321_v4  ;;  %v5360_v10 = vpop.permute.xlu1 %5359 }
 0x8ef   :  { %v5363_v3 = vsel %vm5361_vm12, %v5360_v10, %v5358_v1  ;;  %v5362_v5 = vsel %vm5361_vm12, %v5358_v1, %v5360_v10  ;;  %5527 = vmatprep.mubr.f32.mxu1 %v13205_v0 }
 0x8f0   :  { %11325 = vmatprep.subr.msk.mxu1 %vm2365_vm9, %v5362_v5 }
 0x8f1   :  { %v5535_v12 = vpop.permute.xlu0 %5534  ;;  %11326 = vmatpush1.msk.msra.mxu1 %vm2365_vm9, %v5363_v3 }
 0x8f2   :  { %v5537_v13 = vpop.permute.xlu1 %5536 }
 0x8f3   :  { %v5539_v14 = vsel %vm5538_vm13, %v5535_v12, %v5537_v13  ;;  %v5540_v24 = vsel %vm5538_vm13, %v5537_v13, %v5535_v12 }
 0x8f4   :  { %11329 = vmatprep.subr.msk.mxu1 %vm2365_vm9, %v5539_v14 }
 0x8f5   :  { %v5626_v23 = vpop.permute.xlu0 %5625 }
 0x8f6   :  { %11327 = vmatmul.mubr.msk.f32.vlgmr.msra.gmra.mrb[8].mxu1 %vm2496_vm10, %v5364_v15  ;;  %v5628_v25 = vpop.permute.xlu1 %5627 }
 0x8f7   :  { %11330 = vmatpush1.msk.msra.mxu1 %vm2365_vm9, %v5540_v24  ;;  %v5629_v29 = vsel %vm901_vm4, %v5626_v23, %v5628_v25  ;;  %5616 = vmatprep.mubr.f32.mxu1 %v13205_v0  ;;  %v5630_v58 = vsel %vm901_vm4, %v5628_v25, %v5626_v23 }
 0x8f8   :  { %11333 = vmatprep.subr.msk.mxu1 %vm2365_vm9, %v5629_v29 }
 0x8f9   :  { %v5800_v59 = vpop.permute.xlu0 %5799 }
 0x8fa   :  { %v5802_v43 = vpop.permute.xlu1 %5801 }
 0x8fb   :  { %v5804_v7 = vsel %vm1368_vm5, %v5802_v43, %v5800_v59  ;;  %v5803_v6 = vsel %vm1368_vm5, %v5800_v59, %v5802_v43 }
 0x8fd   :  { %v5890_v47 = vpop.permute.xlu0 %5889 }
 0x8fe   :  { %11331 = vmatmul.mubr.msk.f32.vlgmr.msra.gmra.mrb[8].mxu1 %vm2496_vm10, %v11328_v32  ;;  %v5892_v31 = vpop.permute.xlu1 %5891 }
 0x8ff   :  { %11334 = vmatpush1.msk.msra.mxu1 %vm2365_vm9, %v5630_v58  ;;  %5706 = vmatprep.mubr.f32.mxu1 %v13205_v0  ;;  %v5895_v11 = vsel %vm5893_vm14, %v5892_v31, %v5890_v47  ;;  %v5894_v30 = vsel %vm5893_vm14, %v5890_v47, %v5892_v31  ;;  %v6228_v58 = vld [vmem:[#allocation4 + $0x8] sm:$0xff] }
 0x900   :  { %11337 = vmatprep.subr.msk.mxu1 %vm2365_vm9, %v5353_v62 }
 0x901   :  { %v5981_v16 = vpop.permute.xlu0 %5980 }
 0x902   :  { %v5983_v33 = vpop.permute.xlu1 %5982 }
 0x903   :  { %v5986_v34 = vsel %vm5984_vm15, %v5983_v33, %v5981_v16  ;;  %v5985_v45 = vsel %vm5984_vm15, %v5981_v16, %v5983_v33 }
 0x905   :  { %v6072_v40 = vpop.permute.xlu0 %6071 }
 0x906   :  { %11335 = vmatmul.mubr.msk.f32.vlgmr.msra.gmra.mrb[8].mxu1 %vm2496_vm10, %v11332_v2  ;;  %v6074_v36 = vpop.permute.xlu1 %6073 }
 0x907   :  { %11338 = vmatpush1.msk.msra.mxu1 %vm2365_vm9, %v14912_v37  ;;  %5790 = vmatprep.mubr.f32.mxu1 %v13205_v0  ;;  %v6077_v20 = vsel %vm6075_vm0, %v6074_v36, %v6072_v40  ;;  %v6076_v48 = vsel %vm6075_vm0, %v6072_v40, %v6074_v36 }
 0x908   :  { %11341 = vmatprep.subr.msk.mxu1 %vm2365_vm9, %v5804_v7 }
 0x90e   :  { %11339 = vmatmul.mubr.msk.f32.vlgmr.msra.gmra.mrb[8].mxu1 %vm2496_vm10, %v11336_v49 }
 0x90f   :  { %11342 = vmatpush1.msk.msra.mxu1 %vm2365_vm9, %v5803_v6  ;;  %5880 = vmatprep.mubr.f32.mxu1 %v13205_v0  ;;  %v6220_v6 = vld [vmem:[#allocation4] sm:$0xff] }
 0x910   :  { %11345 = vmatprep.subr.msk.mxu1 %vm2365_vm9, %v5895_v11 }
 0x916   :  { %11343 = vmatmul.mubr.msk.f32.vlgmr.msra.gmra.mrb[8].mxu1 %vm2496_vm10, %v11340_v57 }
 0x917   :  { %11346 = vmatpush1.msk.msra.mxu1 %vm2365_vm9, %v5894_v30  ;;  %5971 = vmatprep.mubr.f32.mxu1 %v13205_v0  ;;  %v6384_v30 = vld [vmem:[#allocation4 + $0x10] sm:$0xff] }
 0x918   :  { %11349 = vmatprep.subr.msk.mxu1 %vm2365_vm9, %v5986_v34 }
 0x91e   :  { %11347 = vmatmul.mubr.msk.f32.vlgmr.msra.gmra.mrb[8].mxu1 %vm2496_vm10, %v11344_v39  ;;  %v6468_v39 = vld [vmem:[#allocation4 + $0x18] sm:$0xff] }
 0x91f   :  { %11350 = vmatpush1.msk.msra.mxu1 %vm2365_vm9, %v5985_v45  ;;  %6062 = vmatprep.mubr.f32.mxu1 %v13205_v0 }
 0x920   :  { %11353 = vmatprep.subr.msk.mxu1 %vm2365_vm9, %v6077_v20  ;;  %v6546_v20 = vld [vmem:[#allocation4 + $0x20] sm:$0xff] }
 0x926   :  { %11351 = vmatmul.mubr.msk.f32.vlgmr.msra.gmra.mrb[8].mxu1 %vm2496_vm10, %v11348_v46 }
 0x927   :  { %11354 = vmatpush1.msk.msra.mxu1 %vm2365_vm9, %v6076_v48  ;;  %6153 = vmatprep.mubr.f32.mxu1 %v13205_v0 }
 0x92e   :  { %11355 = vmatmul.mubr.msk.f32.vlgmr.msra.gmra.mrb[8].mxu1 %vm2496_vm10, %v11352_v50 }
 0x92f   :  { %6296 = vmatprep.mubr.f32.mxu1 %v13205_v0 }
 0xa01   :  { %v6155_v55 = vpop.f32.mrb[8].mxu1 }
 0xa02   :  { %v6173_v27 = vmul.f32 %v15045_v52, %v6155_v55  ;;  %v6157_v60 = vpop.f32.mrb[9].mxu1 }
 0xa03   :  { %v6174_v61 = vmul.f32 %v15049_v26, %v6157_v60 }
 0xa05   :  { %v6175_v18 = vadd.f32 %v6174_v61, %v6173_v27 }
 0xa07   :  { %6176 = vadd.xlane.f32.xlu0 %v6175_v18 }
 0xa1d   :  { %6196 = vperm.xlu0 %12801, %v6189_v19   ;;  %v6714_v19 = vld [vmem:[#allocation4 + $0x30] sm:$0xff] }
 0xa94   :  { %v6177_v21 = vpop.xlane.xlu0 %6176 }
 0xa95   :  { %v6178_v54 = vmul.f32 0.0078125, %v6177_v21 }
 0xa97   :  { %v6179_v17 = vsub.f32 %v6155_v55, %v6178_v54  ;;  %v6180_v22 = vsub.f32 %v6157_v60, %v6178_v54  ;;  %v6630_v55 = vld [vmem:[#allocation4 + $0x28] sm:$0xff] }
 0xa99   :  { %v6181_v53 = vmul.f32 %v6179_v17, %v6179_v17  ;;  %v6182_v56 = vmul.f32 %v6180_v22, %v6180_v22 }
 0xa9b   :  { %v6183_v35 = vmul.f32 %v6181_v53, %v15045_v52  ;;  %v6184_v28 = vmul.f32 %v6182_v56, %v15049_v26  ;;  %v6798_v53 = vld [vmem:[#allocation4 + $0x38] sm:$0xff] }
 0xa9c   :  { %v6197_v4 = vpop.permute.xlu0 %6196 }
 0xa9d   :  { %v6185_v41 = vadd.f32 %v6184_v28, %v6183_v35  ;;  %v6882_v35 = vld [vmem:[#allocation4 + $0x40] sm:$0xff] }
 0xa9f   :  { %6186 = vadd.xlane.f32.xlu1 %v6185_v41 }
 0xab0   :  { %6205 = vperm.xlu1 %12802, %v11356_v42  }
 0xb2c   :  { %v6187_v37 = vpop.xlane.xlu1 %6186 }
 0xb2d   :  { %v6188_v62 = vmul.f32 0.0078125, %v6187_v37 }
 0xb2f   :  { %v6190_v38 = vadd.f32 1e-05, %v6188_v62 }
 0xb30   :  { %v6206_v3 = vpop.permute.xlu1 %6205 }
 0xb31   :  { %13027 = vrsqrt.f32 %v6190_v38  ;;  %v6975_v38 = vld [vmem:[%s15646_s12] sm:$0xff] }
 0xb3b   :  { %v13028_v44 = vpop.eup %13027 }
 0xb3c   :  { %v6192_v63 = vmul.f32 %v13028_v44, %v6179_v17  ;;  %v6193_v9 = vmul.f32 %v13028_v44, %v6180_v22 }
 0xb3e   :  { %v6199_v1 = vmul.f32 %v6197_v4, %v6192_v63  ;;  %v6200_v10 = vmul.f32 %v6197_v4, %v6193_v9 }
 0xb40   :  { %v6208_v5 = vadd.f32 %v6206_v3, %v6199_v1  ;;  %v6209_v12 = vadd.f32 %v6206_v3, %v6200_v10 }
 0xb42   :  { %v6210_v13 = vmax.f32 %v6208_v5, 0.0  ;;  %v6211_v14 = vmax.f32 %v6209_v12, 0.0  ;;  %v11366_v12 = vld [vmem:[%s15646_s12 + $0x8] sm:$0xff] }
 0xb44   :  { %v6212_v15 = vmul.f32 %v6210_v13, %v15045_v52  ;;  %v6213_v23 = vmul.f32 %v6211_v14, %v15049_v26  ;;  %v7042_v13 = vld [vmem:[#allocation9 + $0x80] sm:$0xff]  ;;  %v7043_v14 = vld [vmem:[#allocation9 + $0x88] sm:$0xff] }
 0xb46   :  { %6223 = vrot.lane.b32.xlu1 %v6213_v23, %s13215_s27  ;;  %6221 = vrot.lane.b32.xlu0 %v6212_v15, %s13215_s27 }
 0xb4a   :  { %6216 = vrot.lane.b32.xlu1 %v6213_v23, %s13216_s3  ;;  %6214 = vrot.lane.b32.xlu0 %v6212_v15, %s13216_s3 }
 0xb4e   :  { %6379 = vrot.lane.b32.xlu1 %v6213_v23, %s13217_s21  ;;  %6377 = vrot.lane.b32.xlu0 %v6212_v15, %s13217_s21 }
 0xb52   :  { %6463 = vrot.lane.b32.xlu1 %v6213_v23, %s13209_s7  ;;  %6461 = vrot.lane.b32.xlu0 %v6212_v15, %s13209_s7 }
 0xb56   :  { %6625 = vrot.lane.b32.xlu1 %v6213_v23, %s13210_s22  ;;  %6623 = vrot.lane.b32.xlu0 %v6212_v15, %s13210_s22 }
 0xb5a   :  { %6709 = vrot.lane.b32.xlu1 %v6213_v23, %s13218_s15  ;;  %6707 = vrot.lane.b32.xlu0 %v6212_v15, %s13218_s15 }
 0xb5e   :  { %6793 = vrot.lane.b32.xlu1 %v6213_v23, %s13219_s29  ;;  %6791 = vrot.lane.b32.xlu0 %v6212_v15, %s13219_s29 }
 0xb62   :  { %6877 = vrot.lane.b32.xlu1 %v6213_v23, %s13220_s5  ;;  %6875 = vrot.lane.b32.xlu0 %v6212_v15, %s13220_s5 }
 0xbb8   :  { %v6224_v24 = vpop.permute.xlu1 %6223  ;;  %v6222_v25 = vpop.permute.xlu0 %6221 }
 0xbb9   :  { %v6225_v29 = vsel %vm5369_vm11, %v6222_v25, %v6224_v24  ;;  %v6226_v32 = vsel %vm5369_vm11, %v6224_v24, %v6222_v25  ;;  %v7027_v24 = vld [vmem:[#allocation9 + $0x8] sm:$0xff]  ;;  %v7044_v25 = vld [vmem:[#allocation9 + $0x90] sm:$0xff] }
 0xbba   :  { %6232 = vmatprep.subr.mxu1 %v6225_v29  ;;  %v7045_v29 = vld [vmem:[#allocation9 + $0x98] sm:$0xff] }
 0xbbb   :  { %6233 = vmatpush1.msra.mxu1 %v6226_v32 }
 0xbbc   :  { %v6217_v2 = vpop.permute.xlu1 %6216  ;;  %11357 = vmatmul.mubr.msk.f32.vlgmr.msra.gmra.mrb[10].mxu1 %vm213_vm1, %v6228_v58  ;;  %v6215_v59 = vpop.permute.xlu0 %6214  ;;  %v12334_v58 = vpack.c.bf16 %v7045_v29, %v7044_v25 }
 0xbbd   :  { %v6218_v43 = vsel %vm5361_vm12, %v6215_v59, %v6217_v2  ;;  %v6219_v7 = vsel %vm5361_vm12, %v6217_v2, %v6215_v59  ;;  %6370 = vmatprep.mubr.f32.mxu1 %v13205_v0  ;;  %v7028_v2 = vld [vmem:[#allocation9 + $0x10] sm:$0xff]  ;;  %v7029_v59 = vld [vmem:[#allocation9 + $0x18] sm:$0xff] }
 0xbbe   :  { %6306 = vmatprep.subr.mxu1 %v6218_v43  ;;  %v7046_v43 = vld [vmem:[#allocation9 + $0xa0] sm:$0xff] }
 0xbbf   :  { %6307 = vmatpush1.msra.mxu1 %v6219_v7  ;;  %v7047_v7 = vld [vmem:[#allocation9 + $0xa8] sm:$0xff] }
 0xbc0   :  { %v6380_v49 = vpop.permute.xlu1 %6379  ;;  %v6378_v47 = vpop.permute.xlu0 %6377 }
 0xbc1   :  { %v6381_v31 = vsel %vm5538_vm13, %v6378_v47, %v6380_v49  ;;  %v6382_v57 = vsel %vm5538_vm13, %v6380_v49, %v6378_v47  ;;  %v12336_v49 = vpack.c.bf16 %v7029_v59, %v7028_v2  ;;  %v12338_v47 = vpack.c.bf16 %v7047_v7, %v7046_v43 }
 0xbc2   :  { %6388 = vmatprep.subr.mxu1 %v6381_v31  ;;  %v7030_v31 = vld [vmem:[#allocation9 + $0x20] sm:$0xff] }
 0xbc4   :  { %v6464_v11 = vpop.permute.xlu1 %6463  ;;  %11358 = vmatmul.mubr.msk.f32.vlgmr.msra.gmra.mrb[10].mxu1 %vm213_vm1, %v6220_v6  ;;  %v6462_v16 = vpop.permute.xlu0 %6461  ;;  %v7031_v6 = vld [vmem:[#allocation9 + $0x28] sm:$0xff] }
 0xbc5   :  { %6389 = vmatpush1.msra.mxu1 %v6382_v57  ;;  %v6465_v33 = vsel %vm901_vm4, %v6462_v16, %v6464_v11  ;;  %6452 = vmatprep.mubr.f32.mxu1 %v13205_v0  ;;  %v6466_v34 = vsel %vm901_vm4, %v6464_v11, %v6462_v16  ;;  %v7048_v11 = vld [vmem:[#allocation9 + $0xb0] sm:$0xff]  ;;  %v7049_v57 = vld [vmem:[#allocation9 + $0xb8] sm:$0xff]  ;;  %v12340_v16 = vpack.c.bf16 %v7031_v6, %v7030_v31 }
 0xbc6   :  { %6472 = vmatprep.subr.mxu1 %v6465_v33  ;;  %v12342_v33 = vpack.c.bf16 %v7049_v57, %v7048_v11 }
 0xbc8   :  { %v6626_v40 = vpop.permute.xlu1 %6625  ;;  %v6624_v36 = vpop.permute.xlu0 %6623 }
 0xbc9   :  { %v6628_v45 = vsel %vm1368_vm5, %v6626_v40, %v6624_v36  ;;  %v6627_v50 = vsel %vm1368_vm5, %v6624_v36, %v6626_v40  ;;  %v7051_v40 = vld [vmem:[#allocation9 + $0xc8] sm:$0xff] }
 0xbcc   :  { %11359 = vmatmul.mubr.msk.f32.vlgmr.msra.gmra.mrb[10].mxu1 %vm213_vm1, %v6384_v30  ;;  %v6710_v46 = vpop.permute.xlu1 %6709  ;;  %v6708_v48 = vpop.permute.xlu0 %6707  ;;  %v7032_v30 = vld [vmem:[#allocation9 + $0x30] sm:$0xff] }
 0xbcd   :  { %6473 = vmatpush1.msra.mxu1 %v6466_v34  ;;  %6536 = vmatprep.mubr.f32.mxu1 %v13205_v0  ;;  %v6712_v51 = vsel %vm5893_vm14, %v6710_v46, %v6708_v48  ;;  %v6711_v61 = vsel %vm5893_vm14, %v6708_v48, %v6710_v46  ;;  %v7033_v34 = vld [vmem:[#allocation9 + $0x38] sm:$0xff]  ;;  %v7035_v46 = vld [vmem:[#allocation9 + $0x48] sm:$0xff] }
 0xbce   :  { %6550 = vmatprep.subr.mxu1 %v6213_v23  ;;  %v12330_v23 = vpack.c.bf16 %v7043_v14, %v7042_v13  ;;  %v12344_v36 = vpack.c.bf16 %v7033_v34, %v7032_v30 }
 0xbd0   :  { %v6794_v27 = vpop.permute.xlu1 %6793  ;;  %v6792_v60 = vpop.permute.xlu0 %6791 }
 0xbd1   :  { %v6796_v18 = vsel %vm5984_vm15, %v6794_v27, %v6792_v60  ;;  %v6795_v17 = vsel %vm5984_vm15, %v6792_v60, %v6794_v27  ;;  %v7052_v27 = vld [vmem:[#allocation9 + $0xd0] sm:$0xff]  ;;  %v7053_v60 = vld [vmem:[#allocation9 + $0xd8] sm:$0xff] }
 0xbd4   :  { %11360 = vmatmul.mubr.msk.f32.vlgmr.msra.gmra.mrb[10].mxu1 %vm213_vm1, %v6468_v39  ;;  %v6878_v21 = vpop.permute.xlu1 %6877  ;;  %v6876_v54 = vpop.permute.xlu0 %6875  ;;  %v7050_v39 = vld [vmem:[#allocation9 + $0xc0] sm:$0xff] }
 0xbd5   :  { %6551 = vmatpush1.msra.mxu1 %v6212_v15  ;;  %6614 = vmatprep.mubr.f32.mxu1 %v13205_v0  ;;  %v6880_v22 = vsel %vm6075_vm0, %v6878_v21, %v6876_v54  ;;  %v6879_v56 = vsel %vm6075_vm0, %v6876_v54, %v6878_v21  ;;  %v7026_v15 = vld [vmem:[#allocation9] sm:$0xff] }
 0xbd6   :  { %6634 = vmatprep.subr.mxu1 %v6628_v45  ;;  %v12332_v32 = vpack.c.bf16 %v7027_v24, %v7026_v15  ;;  %v12346_v45 = vpack.c.bf16 %v7051_v40, %v7050_v39 }
 0xbdc   :  { %11361 = vmatmul.mubr.msk.f32.vlgmr.msra.gmra.mrb[10].mxu1 %vm213_vm1, %v6546_v20  ;;  %v7034_v20 = vld [vmem:[#allocation9 + $0x40] sm:$0xff] }
 0xbdd   :  { %6635 = vmatpush1.msra.mxu1 %v6627_v50  ;;  %6698 = vmatprep.mubr.f32.mxu1 %v13205_v0  ;;  %v12348_v48 = vpack.c.bf16 %v7035_v46, %v7034_v20 }
 0xbde   :  { %6718 = vmatprep.subr.mxu1 %v6712_v51 }
 0xbe4   :  { %11362 = vmatmul.mubr.msk.f32.vlgmr.msra.gmra.mrb[10].mxu1 %vm213_vm1, %v6630_v55 }
 0xbe5   :  { %6719 = vmatpush1.msra.mxu1 %v6711_v61  ;;  %6782 = vmatprep.mubr.f32.mxu1 %v13205_v0  ;;  %v12350_v61 = vpack.c.bf16 %v7053_v60, %v7052_v27 }
 0xbe6   :  { %6802 = vmatprep.subr.mxu1 %v6796_v18  ;;  %v7036_v18 = vld [vmem:[#allocation9 + $0x50] sm:$0xff] }
 0xbec   :  { %11363 = vmatmul.mubr.msk.f32.vlgmr.msra.gmra.mrb[10].mxu1 %vm213_vm1, %v6714_v19  ;;  %v7037_v19 = vld [vmem:[#allocation9 + $0x58] sm:$0xff] }
 0xbed   :  { %6803 = vmatpush1.msra.mxu1 %v6795_v17  ;;  %6866 = vmatprep.mubr.f32.mxu1 %v13205_v0  ;;  %v12352_v54 = vpack.c.bf16 %v7037_v19, %v7036_v18 }
 0xbee   :  { %6886 = vmatprep.subr.mxu1 %v6880_v22 }
 0xbf4   :  { %11364 = vmatmul.mubr.msk.f32.vlgmr.msra.gmra.mrb[10].mxu1 %vm213_vm1, %v6798_v53 }
 0xbf5   :  { %6887 = vmatpush1.msra.mxu1 %v6879_v56  ;;  %6950 = vmatprep.mubr.f32.mxu1 %v13205_v0  ;;  %v7054_v56 = vld [vmem:[#allocation9 + $0xe0] sm:$0xff] }
 0xbf6   :  { %12331 = vmatprep.subr.bf16.mxu1 %v12330_v23 }
 0xbfc   :  { %11365 = vmatmul.mubr.msk.f32.vlgmr.msra.gmra.mrb[10].mxu1 %vm213_vm1, %v6882_v35  ;;  %v7055_v35 = vld [vmem:[#allocation9 + $0xe8] sm:$0xff] }
 0xbfd   :  { %12333 = vmatpush3.bf16.msra.mxu1 %v12332_v32 }
 0xbfe   :  { %12335 = vmatprep.subr.bf16.mxu1 %v12334_v58 }
 0xc01   :  { %12337 = vmatpush3.bf16.msra.mxu1 %v12336_v49 }
 0xc02   :  { %12339 = vmatprep.subr.bf16.mxu1 %v12338_v47 }
 0xc05   :  { %12341 = vmatpush3.bf16.msra.mxu1 %v12340_v16 }
 0xc06   :  { %12343 = vmatprep.subr.bf16.mxu1 %v12342_v33 }
 0xc09   :  { %12345 = vmatpush3.bf16.msra.mxu1 %v12344_v36 }
 0xc0a   :  { %12347 = vmatprep.subr.bf16.mxu1 %v12346_v45 }
 0xc0d   :  { %12349 = vmatpush3.bf16.msra.mxu1 %v12348_v48 }
 0xc0e   :  { %12351 = vmatprep.subr.bf16.mxu1 %v12350_v61 }
 0xc11   :  { %12353 = vmatpush3.bf16.msra.mxu1 %v12352_v54 }
 0xccf   :  { %v6952_v28 = vpop.f32.mrb[10].mxu1 }
 0xcd0   :  { %v6959_v41 = vmul.f32 %v6952_v28, %v15045_v52  ;;  %v6954_v42 = vpop.f32.mrb[11].mxu1 }
 0xcd1   :  { %v6960_v37 = vmul.f32 %v6954_v42, %v15049_v26 }
 0xcd3   :  { %v6961_v62 = vadd.f32 %v6960_v37, %v6959_v41  ;;  %v7038_v37 = vld [vmem:[#allocation9 + $0x60] sm:$0xff] }
 0xcd5   :  { %6962 = vadd.xlane.f32.xlu0 %v6961_v62  ;;  %v7039_v62 = vld [vmem:[#allocation9 + $0x68] sm:$0xff] }
 0xceb   :  { %6982 = vperm.xlu0 %12801, %v6975_v38  }
 0xd62   :  { %v6963_v44 = vpop.xlane.xlu0 %6962 }
 0xd63   :  { %v6964_v63 = vmul.f32 0.0078125, %v6963_v44  ;;  %v12356_v44 = vpack.c.bf16 %v7039_v62, %v7038_v37 }
 0xd65   :  { %v6965_v9 = vsub.f32 %v6952_v28, %v6964_v63  ;;  %v6966_v0 = vsub.f32 %v6954_v42, %v6964_v63  ;;  %v12354_v42 = vpack.c.bf16 %v7055_v35, %v7054_v56 }
 0xd67   :  { %v6967_v4 = vmul.f32 %v6965_v9, %v6965_v9  ;;  %v6968_v1 = vmul.f32 %v6966_v0, %v6966_v0  ;;  %12355 = vmatprep.subr.bf16.mxu1 %v12354_v42 }
 0xd68   :  { %12357 = vmatpush3.bf16.msra.mxu1 %v12356_v44  ;;  %v15244_v44 = vld [vmem:[%s15653_s19] ss:$0 sm:$0xff] }
 0xd69   :  { %v6969_v10 = vmul.f32 %v6967_v4, %v15045_v52  ;;  %v6970_v3 = vmul.f32 %v6968_v1, %v15049_v26  ;;  %v7056_v1 = vld [vmem:[#allocation9 + $0xf0] sm:$0xff] }
 0xd6a   :  { %v6983_v53 = vpop.permute.xlu0 %6982 }
 0xd6b   :  { %v6971_v5 = vadd.f32 %v6970_v3, %v6969_v10  ;;  %v7057_v10 = vld [vmem:[#allocation9 + $0xf8] sm:$0xff] }
 0xd6c   :  { %v12358_v3 = vpack.c.bf16 %v7057_v10, %v7056_v1 }
 0xd6d   :  { %6972 = vadd.xlane.f32.xlu1 %v6971_v5  ;;  %v7040_v5 = vld [vmem:[#allocation9 + $0x70] sm:$0xff] }
 0xd6e   :  { %12359 = vmatprep.subr.bf16.mxu1 %v12358_v3 }
 0xd7e   :  { %6991 = vperm.xlu1 %12802, %v11366_v12   ;;  %v7041_v12 = vld [vmem:[#allocation9 + $0x78] sm:$0xff] }
 0xd7f   :  { %v12360_v13 = vpack.c.bf16 %v7041_v12, %v7040_v5 }
 0xd81   :  { %12361 = vmatpush3.bf16.msra.mxu1 %v12360_v13 }
 0xdfa   :  { %v6973_v50 = vpop.xlane.xlu1 %6972 }
 0xdfb   :  { %v6974_v51 = vmul.f32 0.0078125, %v6973_v50 }
 0xdfd   :  { %v6976_v55 = vadd.f32 1e-05, %v6974_v51 }
 0xdfe   :  { %v6992_v38 = vpop.permute.xlu1 %6991 }
 0xdff   :  { %13029 = vrsqrt.f32 %v6976_v55 }
 0xe09   :  { %v13030_v21 = vpop.eup %13029 }
 0xe0a   :  { %v6978_v17 = vmul.f32 %v13030_v21, %v6965_v9  ;;  %v6979_v22 = vmul.f32 %v13030_v21, %v6966_v0 }
 0xe0c   :  { %v6985_v28 = vmul.f32 %v6983_v53, %v6978_v17  ;;  %v6986_v41 = vmul.f32 %v6983_v53, %v6979_v22 }
 0xe0e   :  { %v6994_v63 = vadd.f32 %v6992_v38, %v6985_v28  ;;  %v6995_v4 = vadd.f32 %v6992_v38, %v6986_v41 }
 0xe10   :  { %v6996_v9 = vmax.f32 %v6994_v63, 0.0  ;;  %v6997_v0 = vmax.f32 %v6995_v4, 0.0 }
 0xe12   :  { %v6998_v14 = vmul.f32 %v6996_v9, %v15045_v52  ;;  %v6999_v15 = vmul.f32 %v6997_v0, %v15049_v26  ;;  %v7941_v9 = vld [vmem:[%s15647_s13 + $0x8] sm:$0xff]  ;;  %v7940_v0 = vld [vmem:[%s15647_s13] sm:$0xff] }
 0xe14   :  { %7000 = vst [vmem:[%s15659_s25] sm:$0xff] %v6998_v14  ;;  %7001 = vst [vmem:[%s15659_s25 + $0x8] sm:$0xff] %v6999_v15  ;;  %v12838_v23 = vpack.i.bf16 %v6999_v15, %v6998_v14 }
 0xe16   :  { %12839 = vrot.lane.b32.xlu1 %v12838_v23, %s13219_s29  ;;  %12834 = vrot.lane.b32.xlu0 %v12838_v23, %s13210_s22 }
 0xe1a   :  { %12844 = vrot.lane.b32.xlu0 %v12838_v23, %s13220_s5  ;;  %s15708_s5 = sld [smem:[#allocation21_spill]] }
 0xe20   :  { %v11367_v39 = vld [vmem:[%s15708_s5 + $0x10] sm:$0xff]  ;;  %v11368_v20 = vld [vmem:[%s15708_s5 + $0x18] sm:$0xff]  ;;  %v7131_v46 = vld [vmem:[%s15708_s5] sm:$0xff] }
 0xe21   :  { %v7132_v51 = vld [vmem:[%s15708_s5 + $0x8] sm:$0xff]  ;;  %v11373_v55 = vld [vmem:[%s15708_s5 + $0x20] sm:$0xff]  ;;  %v11377_v61 = vld [vmem:[%s15708_s5 + $0x30] sm:$0xff] }
 0xe22   :  { %v11374_v60 = vld [vmem:[%s15708_s5 + $0x28] sm:$0xff]  ;;  %v11378_v18 = vld [vmem:[%s15708_s5 + $0x38] sm:$0xff]  ;;  %v11381_v19 = vld [vmem:[%s15708_s5 + $0x40] sm:$0xff] }
 0xe23   :  { %v11382_v54 = vld [vmem:[%s15708_s5 + $0x48] sm:$0xff]  ;;  %v11385_v17 = vld [vmem:[%s15708_s5 + $0x50] sm:$0xff]  ;;  %v11386_v53 = vld [vmem:[%s15708_s5 + $0x58] sm:$0xff] }
 0xe24   :  { %v11389_v56 = vld [vmem:[%s15708_s5 + $0x60] sm:$0xff]  ;;  %v11390_v28 = vld [vmem:[%s15708_s5 + $0x68] sm:$0xff]  ;;  %v11393_v41 = vld [vmem:[%s15708_s5 + $0x70] sm:$0xff] }
 0xe25   :  { %v11394_v37 = vld [vmem:[%s15708_s5 + $0x78] sm:$0xff]  ;;  %v11397_v62 = vld [vmem:[%s15708_s5 + $0x80] sm:$0xff]  ;;  %v11398_v38 = vld [vmem:[%s15708_s5 + $0x88] sm:$0xff] }
 0xe88   :  { %v12840_v52 = vpop.permute.xlu1 %12839  ;;  %v12835_v24 = vpop.permute.xlu0 %12834 }
 0xe89   :  { %v12837_v26 = vunpack.i.h.bf16 %v12835_v24  ;;  %v12836_v25 = vunpack.i.l.bf16 %v12835_v24  ;;  %v12842_v29 = vunpack.i.h.bf16 %v12840_v52  ;;  %v12841_v32 = vunpack.i.l.bf16 %v12840_v52 }
 0xe8b   :  { %v7006_v2 = vsel %vm1368_vm5, %v12836_v25, %v12837_v26  ;;  %v7007_v59 = vsel %vm1368_vm5, %v12837_v26, %v12836_v25  ;;  %v7014_v49 = vsel %vm5984_vm15, %v12841_v32, %v12842_v29  ;;  %v7015_v47 = vsel %vm5984_vm15, %v12842_v29, %v12841_v32  ;;  %v11402_v25 = vld [vmem:[%s15647_s13 + $0x10] sm:$0xff]  ;;  %v11403_v29 = vld [vmem:[%s15647_s13 + $0x18] sm:$0xff] }
 0xe8c   :  { %v12845_v58 = vpop.permute.xlu0 %12844  ;;  %v7008_v11 = vmax.f32 %v6998_v14, %v7006_v2  ;;  %v7009_v16 = vmax.f32 %v6999_v15, %v7007_v59 }
 0xe8d   :  { %v12847_v43 = vunpack.i.h.bf16 %v12845_v58  ;;  %v12846_v7 = vunpack.i.l.bf16 %v12845_v58 }
 0xe8f   :  { %v7020_v31 = vsel %vm6075_vm0, %v12846_v7, %v12847_v43  ;;  %v7021_v6 = vsel %vm6075_vm0, %v12847_v43, %v12846_v7 }
 0xe90   :  { %v7022_v57 = vmax.f32 %v7014_v49, %v7020_v31  ;;  %v7023_v33 = vmax.f32 %v7015_v47, %v7021_v6 }
 0xe92   :  { %v7025_v30 = vmax.f32 %v7009_v16, %v7023_v33  ;;  %v7024_v34 = vmax.f32 %v7008_v11, %v7022_v57 }
 0xe94   :  { %7122 = vmatprep.mubr.f32.mxu1 %v7025_v30 }
 0xe95   :  { %7123 = vmatmul.mubr.f32.vlgmr.msra.gmra.mrb[12].mxu1 %v7024_v34 }
 0xe96   :  { %11781 = vmatprep.mubr.msk.f32.mxu1 %vm213_vm1, %v11367_v39 }
 0xf68   :  { %v11569_v40 = vpop.f32.mrb[12].mxu1 }
 0xf69   :  { %v11570_v36 = vpop.f32.mrb[13].mxu1 }
 0xf6a   :  { %v11571_v45 = vadd.f32 %v11570_v36, %v11569_v40 }
 0xf6c   :  { %7129 = vrot.lane.b32.xlu0 %v11571_v45, %s13221_s1  ;;  %7133 = vrot.lane.b32.xlu1 %v11571_v45, %s13222_s4 }
 0xf70   :  { %7388 = vrot.lane.b32.xlu0 %v11571_v45, %s13209_s7  ;;  %7300 = vrot.lane.b32.xlu1 %v11571_v45, %s13223_s23 }
 0xf74   :  { %7650 = vrot.lane.b32.xlu0 %v11571_v45, %s13224_s6  ;;  %7562 = vrot.lane.b32.xlu1 %v11571_v45, %s13210_s22 }
 0xf78   :  { %7826 = vrot.lane.b32.xlu0 %v11571_v45, %s13225_s17  ;;  %7738 = vrot.lane.b32.xlu1 %v11571_v45, %s13226_s11 }
 0xfde   :  { %v7134_v8 = vpop.permute.xlu1 %7133  ;;  %v7130_v48 = vpop.permute.xlu0 %7129 }
 0xfdf   :  { %11779 = vmatprep.subr.mxu1 %v7134_v8 }
 0xfe0   :  { %11780 = vmatpush3.msra.mxu1 %v7134_v8 }
 0xfe1   :  { %11782 = vmatmul.mubr.msk.f32.vlgmr.msra.gmra.mrb[14].mxu1 %vm213_vm1, %v11368_v20  ;;  %11784 = vmatprep.subr.mxu1 %v7130_v48 }
 0xfe2   :  { %11785 = vmatpush3.msra.mxu1 %v7130_v48  ;;  %v7301_v50 = vpop.permute.xlu1 %7300  ;;  %11786 = vmatprep.mubr.msk.f32.mxu1 %vm213_vm1, %v7131_v46  ;;  %v7389_v27 = vpop.permute.xlu0 %7388 }
 0xfe3   :  { %11789 = vmatprep.subr.mxu1 %v7301_v50 }
 0xfe6   :  { %v7563_v21 = vpop.permute.xlu1 %7562  ;;  %v7651_v22 = vpop.permute.xlu0 %7650 }
 0xfe9   :  { %11787 = vmatmul.mubr.msk.f32.vlgmr.msra.gmra.mrb[14].mxu1 %vm213_vm1, %v7132_v51 }
 0xfea   :  { %11790 = vmatpush3.msra.mxu1 %v7301_v50  ;;  %11791 = vmatprep.mubr.msk.f32.mxu1 %vm213_vm1, %v11373_v55  ;;  %v7739_v35 = vpop.permute.xlu1 %7738  ;;  %v7827_v42 = vpop.permute.xlu0 %7826 }
 0xfeb   :  { %11794 = vmatprep.subr.mxu1 %v7389_v27 }
 0xff1   :  { %11792 = vmatmul.mubr.msk.f32.vlgmr.msra.gmra.mrb[14].mxu1 %vm213_vm1, %v11374_v60 }
 0xff2   :  { %11795 = vmatpush3.msra.mxu1 %v7389_v27  ;;  %11796 = vmatprep.mubr.msk.f32.mxu1 %vm213_vm1, %v11377_v61 }
 0xff3   :  { %11799 = vmatprep.subr.mxu1 %v11571_v45 }
 0xff9   :  { %11797 = vmatmul.mubr.msk.f32.vlgmr.msra.gmra.mrb[14].mxu1 %vm213_vm1, %v11378_v18 }
 0xffa   :  { %11800 = vmatpush3.msra.mxu1 %v11571_v45  ;;  %11801 = vmatprep.mubr.msk.f32.mxu1 %vm213_vm1, %v11381_v19  ;;  %v7990_v45 = vld [vmem:[#allocation6 + $0x10] sm:$0xff] }
 0xffb   :  { %11804 = vmatprep.subr.mxu1 %v7563_v21 }
0x1001   :  { %11802 = vmatmul.mubr.msk.f32.vlgmr.msra.gmra.mrb[14].mxu1 %vm213_vm1, %v11382_v54 }
0x1002   :  { %11805 = vmatpush3.msra.mxu1 %v7563_v21  ;;  %11806 = vmatprep.mubr.msk.f32.mxu1 %vm213_vm1, %v11385_v17 }
0x1003   :  { %11809 = vmatprep.subr.mxu1 %v7651_v22 }
0x1009   :  { %11807 = vmatmul.mubr.msk.f32.vlgmr.msra.gmra.mrb[14].mxu1 %vm213_vm1, %v11386_v53  ;;  %v7991_v53 = vld [vmem:[#allocation6 + $0x18] sm:$0xff] }
0x100a   :  { %11810 = vmatpush3.msra.mxu1 %v7651_v22  ;;  %11811 = vmatprep.mubr.msk.f32.mxu1 %vm213_vm1, %v11389_v56  ;;  %v7983_v56 = vld [vmem:[#allocation6] sm:$0xff] }
0x100b   :  { %11814 = vmatprep.subr.mxu1 %v7739_v35 }
0x1011   :  { %11812 = vmatmul.mubr.msk.f32.vlgmr.msra.gmra.mrb[14].mxu1 %vm213_vm1, %v11390_v28 }
0x1012   :  { %11815 = vmatpush3.msra.mxu1 %v7739_v35  ;;  %11816 = vmatprep.mubr.msk.f32.mxu1 %vm213_vm1, %v11393_v41 }
0x1013   :  { %11819 = vmatprep.subr.mxu1 %v7827_v42 }
0x1019   :  { %11817 = vmatmul.mubr.msk.f32.vlgmr.msra.gmra.mrb[14].mxu1 %vm213_vm1, %v11394_v37  ;;  %v7984_v37 = vld [vmem:[#allocation6 + $0x8] sm:$0xff] }
0x101a   :  { %11820 = vmatpush3.msra.mxu1 %v7827_v42  ;;  %11821 = vmatprep.mubr.msk.f32.mxu1 %vm213_vm1, %v11397_v62  ;;  %v8160_v62 = vld [vmem:[#allocation6 + $0x20] sm:$0xff] }
0x1021   :  { %11822 = vmatmul.mubr.msk.f32.vlgmr.msra.gmra.mrb[14].mxu1 %vm213_vm1, %v11398_v38  ;;  %vm7992_vm1 = vcmask 130048  }
0x1022   :  { %11828 = vmatprep.mubr.msk.f32.mxu0 %vm7992_vm1, %v7990_v45 }
0x10f4   :  { %v11823_v63 = vpop.f32.mrb[14].mxu1 }
0x10f5   :  { %v7921_v4 = vmul.f32 %v11823_v63, %v15244_v44  ;;  %v7903_v1 = vpop.f32.mrb[15].mxu1 }
0x10f6   :  { %v7920_v10 = vmul.f32 %v15244_v44, %v7903_v1 }
0x10f7   :  { %7924 = vadd.xlane.f32.xlu0 %v7921_v4  ;;  %v8250_v4 = vld [vmem:[#allocation6 + $0x30] sm:$0xff] }
0x10f8   :  { %7922 = vadd.xlane.f32.xlu1 %v7920_v10 }
0x1109   :  { %7955 = vperm.xlu1 %12802, %v7941_v9  }
0x110d   :  { %7950 = vperm.xlu0 %12801, %v7940_v0   ;;  %v8251_v0 = vld [vmem:[#allocation6 + $0x38] sm:$0xff] }
0x1184   :  { %v7925_v3 = vpop.xlane.xlu0 %7924 }
0x1185   :  { %v7927_v5 = vmul.f32 0.03125, %v7925_v3  ;;  %v7923_v12 = vpop.xlane.xlu1 %7922  ;;  %v8336_v3 = vld [vmem:[#allocation6 + $0x40] sm:$0xff] }
0x1186   :  { %v7926_v13 = vmul.f32 0.03125, %v7923_v12 }
0x1187   :  { %v7929_v14 = vsub.f32 %v11823_v63, %v7927_v5  ;;  %v8161_v63 = vld [vmem:[#allocation6 + $0x28] sm:$0xff] }
0x1188   :  { %v7928_v15 = vsub.f32 %v7903_v1, %v7926_v13 }
0x1189   :  { %v7931_v23 = vmul.f32 %v7929_v14, %v7929_v14  ;;  %v7956_v32 = vpop.permute.xlu1 %7955 }
0x118a   :  { %v7930_v52 = vmul.f32 %v7928_v15, %v7928_v15 }
0x118b   :  { %v7933_v24 = vmul.f32 %v15244_v44, %v7931_v23  ;;  %v8426_v23 = vld [vmem:[#allocation6 + $0x50] sm:$0xff] }
0x118c   :  { %v7932_v26 = vmul.f32 %v15244_v44, %v7930_v52  ;;  %v7951_v58 = vpop.permute.xlu0 %7950 }
0x118d   :  { %7936 = vadd.xlane.f32.xlu1 %v7933_v24 }
0x118e   :  { %7934 = vadd.xlane.f32.xlu0 %v7932_v26 }
0x119e   :  { %7965 = vperm.xlu1 %12802, %v11402_v25  }
0x11a4   :  { %7970 = vperm.xlu0 %12801, %v11403_v29   ;;  %v8427_v29 = vld [vmem:[#allocation6 + $0x58] sm:$0xff] }
0x121a   :  { %v7937_v2 = vpop.xlane.xlu1 %7936 }
0x121b   :  { %v7939_v59 = vmul.f32 0.03125, %v7937_v2  ;;  %v7935_v43 = vpop.xlane.xlu0 %7934 }
0x121c   :  { %v7938_v7 = vmul.f32 0.03125, %v7935_v43 }
0x121d   :  { %v7943_v49 = vadd.f32 1e-05, %v7939_v59 }
0x121e   :  { %v7942_v47 = vadd.f32 1e-05, %v7938_v7  ;;  %v7966_v34 = vpop.permute.xlu1 %7965  ;;  %v8517_v7 = vld [vmem:[#allocation6 + $0x68] sm:$0xff] }
0x121f   :  { %13031 = vrsqrt.f32 %v7943_v49  ;;  %v8606_v49 = vld [vmem:[#allocation6 + $0x70] sm:$0xff] }
0x1220   :  { %13033 = vrsqrt.f32 %v7942_v47 }
0x1223   :  { %v7971_v30 = vpop.permute.xlu0 %7970 }
0x1229   :  { %v13032_v31 = vpop.eup %13031 }
0x122a   :  { %v13034_v6 = vpop.eup %13033  ;;  %v7947_v11 = vmul.f32 %v13032_v31, %v7929_v14  ;;  %v8607_v31 = vld [vmem:[#allocation6 + $0x78] sm:$0xff] }
0x122b   :  { %v7946_v57 = vmul.f32 %v13034_v6, %v7928_v15  ;;  %v8337_v15 = vld [vmem:[#allocation6 + $0x48] sm:$0xff]  ;;  %v8696_v6 = vld [vmem:[#allocation6 + $0x80] sm:$0xff] }
0x122c   :  { %v7959_v16 = vmul.f32 %v7956_v32, %v7947_v11  ;;  %v8516_v32 = vld [vmem:[#allocation6 + $0x60] sm:$0xff]  ;;  %v8697_v11 = vld [vmem:[#allocation6 + $0x88] sm:$0xff] }
0x122d   :  { %v7958_v33 = vmul.f32 %v7951_v58, %v7946_v57 }
0x122e   :  { %v7974_v39 = vadd.f32 %v7971_v30, %v7959_v16 }
0x122f   :  { %v7973_v40 = vadd.f32 %v7966_v34, %v7958_v33  ;;  %v8802_v34 = vld [vmem:[%s15648_s14 + $0x8] sm:$0xff] }
0x1230   :  { %v7976_v36 = vmax.f32 %v7974_v39, 0.0  ;;  %v8801_v39 = vld [vmem:[%s15648_s14] sm:$0xff] }
0x1231   :  { %v7975_v8 = vmax.f32 %v7973_v40, 0.0 }
0x1232   :  { %v7978_v20 = vmul.f32 %v15244_v44, %v7976_v36 }
0x1233   :  { %v7977_v46 = vmul.f32 %v15244_v44, %v7975_v8 }
0x1235   :  { %v12853_v48 = vpack.i.bf16 %v7978_v20, %v7977_v46  ;;  %v12378_v50 = vpack.c.bf16 %v7978_v20, %v7977_v46 }
0x1237   :  { %12854 = vrot.lane.b32.xlu0 %v12853_v48, %s13221_s1  ;;  %12849 = vrot.lane.b32.xlu1 %v12853_v48, %s13222_s4 }
0x123b   :  { %12864 = vrot.lane.b32.xlu0 %v12853_v48, %s13209_s7  ;;  %12859 = vrot.lane.b32.xlu1 %v12853_v48, %s13223_s23 }
0x123f   :  { %12874 = vrot.lane.b32.xlu0 %v12853_v48, %s13224_s6  ;;  %12869 = vrot.lane.b32.xlu1 %v12853_v48, %s13210_s22 }
0x1243   :  { %12884 = vrot.lane.b32.xlu0 %v12853_v48, %s13225_s17  ;;  %12879 = vrot.lane.b32.xlu1 %v12853_v48, %s13226_s11 }
0x12a9   :  { %v12855_v51 = vpop.permute.xlu0 %12854  ;;  %v12850_v55 = vpop.permute.xlu1 %12849 }
0x12aa   :  { %v12857_v27 = vunpack.i.h.bf16 %v12855_v51  ;;  %v12856_v60 = vunpack.i.l.bf16 %v12855_v51  ;;  %v12852_v61 = vunpack.i.h.bf16 %v12850_v55  ;;  %v12851_v18 = vunpack.i.l.bf16 %v12850_v55 }
0x12ac   :  { %v12362_v19 = vpack.c.bf16 %v12852_v61, %v12851_v18  ;;  %v12366_v54 = vpack.c.bf16 %v12857_v27, %v12856_v60  ;;  %v11422_v27 = vld [vmem:[%s15648_s14 + $0x10] sm:$0xff]  ;;  %v11423_v60 = vld [vmem:[%s15648_s14 + $0x18] sm:$0xff]  ;;  %v8861_v18 = vld [vmem:[#allocation10 + $0x8] sm:$0xff] }
0x12ad   :  { %v12860_v21 = vpop.permute.xlu1 %12859  ;;  %v12865_v28 = vpop.permute.xlu0 %12864  ;;  %v8860_v61 = vld [vmem:[#allocation10] sm:$0xff] }
0x12ae   :  { %v12862_v17 = vunpack.i.h.bf16 %v12860_v21  ;;  %v12861_v22 = vunpack.i.l.bf16 %v12860_v21  ;;  %12363 = vmatprep.subr.bf16.mxu0 %v12362_v19  ;;  %v12867_v41 = vunpack.i.h.bf16 %v12865_v28  ;;  %v12866_v42 = vunpack.i.l.bf16 %v12865_v28  ;;  %v8867_v28 = vld [vmem:[#allocation10 + $0x38] sm:$0xff] }
0x12af   :  { %12365 = vmatpush3.bf16.msra.mxu0 %v12362_v19  ;;  %v8862_v19 = vld [vmem:[#allocation10 + $0x10] sm:$0xff]  ;;  %v12398_v21 = vpack.c.bf16 %v8861_v18, %v8860_v61 }
0x12b0   :  { %12367 = vmatprep.subr.bf16.mxu0 %v12366_v54  ;;  %v12370_v35 = vpack.c.bf16 %v12862_v17, %v12861_v22  ;;  %v12374_v38 = vpack.c.bf16 %v12867_v41, %v12866_v42  ;;  %v8864_v22 = vld [vmem:[#allocation10 + $0x20] sm:$0xff] }
0x12b1   :  { %v12870_v1 = vpop.permute.xlu1 %12869  ;;  %v12875_v12 = vpop.permute.xlu0 %12874  ;;  %12399 = vmatprep.subr.bf16.mxu1 %v12398_v21  ;;  %v8868_v42 = vld [vmem:[#allocation10 + $0x40] sm:$0xff] }
0x12b2   :  { %11829 = vmatmul.mubr.msk.f32.vlgmr.msra.gmra.mrb[6].mxu0 %vm7992_vm1, %v7991_v53  ;;  %v12872_v10 = vunpack.i.h.bf16 %v12870_v1  ;;  %v12871_v9 = vunpack.i.l.bf16 %v12870_v1  ;;  %v12877_v13 = vunpack.i.h.bf16 %v12875_v12  ;;  %v12876_v14 = vunpack.i.l.bf16 %v12875_v12  ;;  %v8865_v53 = vld [vmem:[#allocation10 + $0x28] sm:$0xff]  ;;  %12401 = vmatpush3.bf16.msra.mxu1 %v12398_v21 }
0x12b3   :  { %12369 = vmatpush3.bf16.msra.mxu0 %v12366_v54  ;;  %11835 = vmatprep.mubr.msk.f32.mxu0 %vm7992_vm1, %v7983_v56  ;;  %v8863_v54 = vld [vmem:[#allocation10 + $0x18] sm:$0xff]  ;;  %v12406_v56 = vpack.c.bf16 %v8865_v53, %v8864_v22 }
0x12b4   :  { %12371 = vmatprep.subr.bf16.mxu0 %v12370_v35  ;;  %v12382_v5 = vpack.c.bf16 %v12872_v10, %v12871_v9  ;;  %v12386_v52 = vpack.c.bf16 %v12877_v13, %v12876_v14  ;;  %v12402_v17 = vpack.c.bf16 %v8863_v54, %v8862_v19 }
0x12b5   :  { %v12880_v24 = vpop.permute.xlu1 %12879  ;;  %v12885_v2 = vpop.permute.xlu0 %12884 }
0x12b6   :  { %v12882_v26 = vunpack.i.h.bf16 %v12880_v24  ;;  %v12881_v25 = vunpack.i.l.bf16 %v12880_v24  ;;  %v12887_v59 = vunpack.i.h.bf16 %v12885_v2  ;;  %v12886_v43 = vunpack.i.l.bf16 %v12885_v2  ;;  %12403 = vmatprep.subr.bf16.mxu1 %v12402_v17 }
0x12b7   :  { %12405 = vmatpush3.bf16.msra.mxu1 %v12402_v17 }
0x12b8   :  { %v12390_v58 = vpack.c.bf16 %v12882_v26, %v12881_v25  ;;  %v12394_v47 = vpack.c.bf16 %v12887_v59, %v12886_v43  ;;  %12407 = vmatprep.subr.bf16.mxu1 %v12406_v56  ;;  %v8872_v26 = vld [vmem:[#allocation10 + $0x60] sm:$0xff]  ;;  %v8873_v25 = vld [vmem:[#allocation10 + $0x68] sm:$0xff] }
0x12ba   :  { %11836 = vmatmul.mubr.msk.f32.vlgmr.msra.gmra.mrb[6].mxu0 %vm7992_vm1, %v7984_v37  ;;  %v8869_v37 = vld [vmem:[#allocation10 + $0x48] sm:$0xff] }
0x12bb   :  { %12373 = vmatpush3.bf16.msra.mxu0 %v12370_v35  ;;  %11842 = vmatprep.mubr.msk.f32.mxu0 %vm7992_vm1, %v8160_v62  ;;  %v8866_v35 = vld [vmem:[#allocation10 + $0x30] sm:$0xff]  ;;  %v12414_v62 = vpack.c.bf16 %v8869_v37, %v8868_v42 }
0x12bc   :  { %12375 = vmatprep.subr.bf16.mxu0 %v12374_v38  ;;  %v12410_v41 = vpack.c.bf16 %v8867_v28, %v8866_v35  ;;  %12409 = vmatpush3.bf16.msra.mxu1 %v12406_v56 }
0x12be   :  { %12411 = vmatprep.subr.bf16.mxu1 %v12410_v41 }
0x12c0   :  { %12413 = vmatpush3.bf16.msra.mxu1 %v12410_v41 }
0x12c1   :  { %12415 = vmatprep.subr.bf16.mxu1 %v12414_v62 }
0x12c2   :  { %11843 = vmatmul.mubr.msk.f32.vlgmr.msra.gmra.mrb[6].mxu0 %vm7992_vm1, %v8161_v63  ;;  %v8871_v63 = vld [vmem:[#allocation10 + $0x58] sm:$0xff] }
0x12c3   :  { %12377 = vmatpush3.bf16.msra.mxu0 %v12374_v38  ;;  %11849 = vmatprep.mubr.msk.f32.mxu0 %vm7992_vm1, %v8250_v4  ;;  %v8870_v38 = vld [vmem:[#allocation10 + $0x50] sm:$0xff] }
0x12c4   :  { %12379 = vmatprep.subr.bf16.mxu0 %v12378_v50  ;;  %v12418_v4 = vpack.c.bf16 %v8871_v63, %v8870_v38  ;;  %12417 = vmatpush3.bf16.msra.mxu1 %v12414_v62 }
0x12c6   :  { %12419 = vmatprep.subr.bf16.mxu1 %v12418_v4 }
0x12c8   :  { %12421 = vmatpush3.bf16.msra.mxu1 %v12418_v4 }
0x12ca   :  { %11850 = vmatmul.mubr.msk.f32.vlgmr.msra.gmra.mrb[6].mxu0 %vm7992_vm1, %v8251_v0 }
0x12cb   :  { %12381 = vmatpush3.bf16.msra.mxu0 %v12378_v50  ;;  %11856 = vmatprep.mubr.msk.f32.mxu0 %vm7992_vm1, %v8336_v3 }
0x12cc   :  { %12383 = vmatprep.subr.bf16.mxu0 %v12382_v5 }
0x12d2   :  { %11857 = vmatmul.mubr.msk.f32.vlgmr.msra.gmra.mrb[6].mxu0 %vm7992_vm1, %v8337_v15 }
0x12d3   :  { %12385 = vmatpush3.bf16.msra.mxu0 %v12382_v5  ;;  %11863 = vmatprep.mubr.msk.f32.mxu0 %vm7992_vm1, %v8426_v23 }
0x12d4   :  { %12387 = vmatprep.subr.bf16.mxu0 %v12386_v52 }
0x12da   :  { %11864 = vmatmul.mubr.msk.f32.vlgmr.msra.gmra.mrb[6].mxu0 %vm7992_vm1, %v8427_v29 }
0x12db   :  { %12389 = vmatpush3.bf16.msra.mxu0 %v12386_v52  ;;  %11870 = vmatprep.mubr.msk.f32.mxu0 %vm7992_vm1, %v8516_v32 }
0x12dc   :  { %12391 = vmatprep.subr.bf16.mxu0 %v12390_v58 }
0x12e2   :  { %11871 = vmatmul.mubr.msk.f32.vlgmr.msra.gmra.mrb[6].mxu0 %vm7992_vm1, %v8517_v7 }
0x12e3   :  { %12393 = vmatpush3.bf16.msra.mxu0 %v12390_v58  ;;  %11877 = vmatprep.mubr.msk.f32.mxu0 %vm7992_vm1, %v8606_v49  ;;  %v12422_v58 = vpack.c.bf16 %v8873_v25, %v8872_v26  ;;  %v8874_v49 = vld [vmem:[#allocation10 + $0x70] sm:$0xff] }
0x12e4   :  { %12395 = vmatprep.subr.bf16.mxu0 %v12394_v47 }
0x12e5   :  { %12423 = vmatprep.subr.bf16.mxu1 %v12422_v58 }
0x12e6   :  { %12425 = vmatpush3.bf16.msra.mxu1 %v12422_v58 }
0x12ea   :  { %11878 = vmatmul.mubr.msk.f32.vlgmr.msra.gmra.mrb[6].mxu0 %vm7992_vm1, %v8607_v31 }
0x12eb   :  { %12397 = vmatpush3.bf16.msra.mxu0 %v12394_v47  ;;  %11884 = vmatprep.mubr.msk.f32.mxu0 %vm7992_vm1, %v8696_v6  ;;  %v8875_v47 = vld [vmem:[#allocation10 + $0x78] sm:$0xff] }
0x12ec   :  { %v12426_v6 = vpack.c.bf16 %v8875_v47, %v8874_v49 }
0x12ee   :  { %12427 = vmatprep.subr.bf16.mxu1 %v12426_v6 }
0x12ef   :  { %12429 = vmatpush3.bf16.msra.mxu1 %v12426_v6 }
0x12f2   :  { %11885 = vmatmul.mubr.msk.f32.vlgmr.msra.gmra.mrb[6].mxu0 %vm7992_vm1, %v8697_v11 }
0x13c5   :  { %v11886_v57 = vpop.f32.mrb[6].mxu0 }
0x13c6   :  { %v8782_v16 = vmul.f32 %v11886_v57, %v15244_v44  ;;  %v8770_v33 = vpop.f32.mrb[7].mxu0 }
0x13c7   :  { %v8781_v30 = vmul.f32 %v15244_v44, %v8770_v33 }
0x13c8   :  { %8785 = vadd.xlane.f32.xlu0 %v8782_v16 }
0x13c9   :  { %8783 = vadd.xlane.f32.xlu1 %v8781_v30 }
0x13da   :  { %8816 = vperm.xlu1 %12802, %v8802_v34  }
0x13de   :  { %8811 = vperm.xlu0 %12801, %v8801_v39  }
0x1455   :  { %v8786_v40 = vpop.xlane.xlu0 %8785 }
0x1456   :  { %v8788_v36 = vmul.f32 0.03125, %v8786_v40  ;;  %v8784_v45 = vpop.xlane.xlu1 %8783 }
0x1457   :  { %v8787_v8 = vmul.f32 0.03125, %v8784_v45 }
0x1458   :  { %v8790_v20 = vsub.f32 %v11886_v57, %v8788_v36 }
0x1459   :  { %v8789_v46 = vsub.f32 %v8770_v33, %v8787_v8 }
0x145a   :  { %v8792_v48 = vmul.f32 %v8790_v20, %v8790_v20  ;;  %v8817_v1 = vpop.permute.xlu1 %8816 }
0x145b   :  { %v8791_v50 = vmul.f32 %v8789_v46, %v8789_v46 }
0x145c   :  { %v8794_v51 = vmul.f32 %v15244_v44, %v8792_v48 }
0x145d   :  { %v8793_v55 = vmul.f32 %v15244_v44, %v8791_v50  ;;  %v8812_v10 = vpop.permute.xlu0 %8811 }
0x145e   :  { %8797 = vadd.xlane.f32.xlu1 %v8794_v51 }
0x145f   :  { %8795 = vadd.xlane.f32.xlu0 %v8793_v55 }
0x146f   :  { %8826 = vperm.xlu1 %12802, %v11422_v27  }
0x1475   :  { %8831 = vperm.xlu0 %12801, %v11423_v60  }
0x14eb   :  { %v8798_v9 = vpop.xlane.xlu1 %8797 }
0x14ec   :  { %v8800_v0 = vmul.f32 0.03125, %v8798_v9  ;;  %v8796_v3 = vpop.xlane.xlu0 %8795 }
0x14ed   :  { %v8799_v5 = vmul.f32 0.03125, %v8796_v3 }
0x14ee   :  { %v8804_v12 = vadd.f32 1e-05, %v8800_v0 }
0x14ef   :  { %v8803_v13 = vadd.f32 1e-05, %v8799_v5  ;;  %v8827_v2 = vpop.permute.xlu1 %8826 }
0x14f0   :  { %13035 = vrsqrt.f32 %v8804_v12 }
0x14f1   :  { %13037 = vrsqrt.f32 %v8803_v13 }
0x14f4   :  { %v8832_v32 = vpop.permute.xlu0 %8831 }
0x14fa   :  { %v13036_v14 = vpop.eup %13035 }
0x14fb   :  { %v13038_v15 = vpop.eup %13037  ;;  %v8808_v23 = vmul.f32 %v13036_v14, %v8790_v20 }
0x14fc   :  { %v8807_v52 = vmul.f32 %v13038_v15, %v8789_v46 }
0x14fd   :  { %v8820_v24 = vmul.f32 %v8817_v1, %v8808_v23 }
0x14fe   :  { %v8819_v29 = vmul.f32 %v8812_v10, %v8807_v52 }
0x14ff   :  { %v8835_v59 = vadd.f32 %v8832_v32, %v8820_v24 }
0x1500   :  { %v8834_v43 = vadd.f32 %v8827_v2, %v8819_v29 }
0x1501   :  { %v8837_v7 = vmax.f32 %v8835_v59, 0.0 }
0x1502   :  { %v8836_v31 = vmax.f32 %v8834_v43, 0.0 }
0x1503   :  { %v8839_v11 = vmul.f32 %v15244_v44, %v8837_v7 }
0x1504   :  { %v8838_v57 = vmul.f32 %v15244_v44, %v8836_v31 }
0x1505   :  { %8841 = vst [vmem:[%s15660_s26 + $0x8] sm:$0xff] %v8839_v11 }
0x1506   :  { %8840 = vst [vmem:[%s15660_s26] sm:$0xff] %v8838_v57  ;;  %v12893_v16 = vpack.i.bf16 %v8839_v11, %v8838_v57 }
0x1508   :  { %12894 = vrot.lane.b32.xlu0 %v12893_v16, %s13226_s11  ;;  %12889 = vrot.lane.b32.xlu1 %v12893_v16, %s13210_s22 }
0x150c   :  { %12899 = vrot.lane.b32.xlu1 %v12893_v16, %s13225_s17  ;;  %s15709_s17 = sld [smem:[#allocation23_spill]] }
0x1512   :  { %v11424_v27 = vld [vmem:[%s15709_s17 + $0x20] sm:$0xff]  ;;  %v11425_v62 = vld [vmem:[%s15709_s17 + $0x28] sm:$0xff]  ;;  %v11426_v38 = vld [vmem:[%s15709_s17 + $0x30] sm:$0xff] }
0x1513   :  { %11926 = vmatprep.mubr.msk.f32.mxu0 %vm7992_vm1, %v11424_v27  ;;  %v11427_v1 = vld [vmem:[%s15709_s17 + $0x38] sm:$0xff]  ;;  %v8956_v10 = vld [vmem:[%s15709_s17] sm:$0xff]  ;;  %v8957_v3 = vld [vmem:[%s15709_s17 + $0x8] sm:$0xff] }
0x1514   :  { %v8958_v5 = vld [vmem:[%s15709_s17 + $0x10] sm:$0xff]  ;;  %v8959_v13 = vld [vmem:[%s15709_s17 + $0x18] sm:$0xff]  ;;  %v11436_v14 = vld [vmem:[%s15709_s17 + $0x40] sm:$0xff] }
0x1515   :  { %v11437_v15 = vld [vmem:[%s15709_s17 + $0x48] sm:$0xff]  ;;  %v11438_v23 = vld [vmem:[%s15709_s17 + $0x50] sm:$0xff]  ;;  %v11439_v24 = vld [vmem:[%s15709_s17 + $0x58] sm:$0xff] }
0x1516   :  { %v11444_v26 = vld [vmem:[%s15709_s17 + $0x60] sm:$0xff]  ;;  %v11445_v32 = vld [vmem:[%s15709_s17 + $0x68] sm:$0xff]  ;;  %v11446_v58 = vld [vmem:[%s15709_s17 + $0x70] sm:$0xff] }
0x1517   :  { %v11447_v43 = vld [vmem:[%s15709_s17 + $0x78] sm:$0xff]  ;;  %v11452_v7 = vld [vmem:[%s15709_s17 + $0x80] sm:$0xff]  ;;  %v11453_v31 = vld [vmem:[%s15709_s17 + $0x88] sm:$0xff] }
0x1518   :  { %v11454_v6 = vld [vmem:[%s15709_s17 + $0x90] sm:$0xff]  ;;  %v11455_v16 = vld [vmem:[%s15709_s17 + $0x98] sm:$0xff]  ;;  %v11476_v27 = vld [vmem:[%s15709_s17 + $0xe0] sm:$0xff] }
0x157a   :  { %v12890_v33 = vpop.permute.xlu1 %12889  ;;  %v12895_v30 = vpop.permute.xlu0 %12894 }
0x157b   :  { %v12892_v44 = vunpack.i.h.bf16 %v12890_v33  ;;  %v12891_v34 = vunpack.i.l.bf16 %v12890_v33  ;;  %v12897_v40 = vunpack.i.h.bf16 %v12895_v30  ;;  %v12896_v36 = vunpack.i.l.bf16 %v12895_v30  ;;  %v11460_v33 = vld [vmem:[%s15709_s17 + $0xa0] sm:$0xff] }
0x157d   :  { %v8847_v20 = vmax.f32 %v8839_v11, %v12892_v44  ;;  %v8846_v46 = vmax.f32 %v8838_v57, %v12891_v34  ;;  %v11461_v34 = vld [vmem:[%s15709_s17 + $0xa8] sm:$0xff] }
0x157e   :  { %v12900_v39 = vpop.permute.xlu1 %12899 }
0x157f   :  { %v12902_v45 = vunpack.i.h.bf16 %v12900_v39  ;;  %v12901_v8 = vunpack.i.l.bf16 %v12900_v39  ;;  %v11462_v39 = vld [vmem:[%s15709_s17 + $0xb0] sm:$0xff] }
0x1581   :  { %v8857_v48 = vmax.f32 %v12897_v40, %v12902_v45  ;;  %v8856_v50 = vmax.f32 %v12896_v36, %v12901_v8  ;;  %v11463_v45 = vld [vmem:[%s15709_s17 + $0xb8] sm:$0xff]  ;;  %v11468_v8 = vld [vmem:[%s15709_s17 + $0xc0] sm:$0xff] }
0x1583   :  { %v8859_v51 = vmax.f32 %v8847_v20, %v8857_v48  ;;  %v8858_v55 = vmax.f32 %v8846_v46, %v8856_v50  ;;  %v11469_v48 = vld [vmem:[%s15709_s17 + $0xc8] sm:$0xff]  ;;  %v11470_v50 = vld [vmem:[%s15709_s17 + $0xd0] sm:$0xff] }
0x1585   :  { %11919 = vmatprep.mubr.f32.mxu1 %v8858_v55  ;;  %v11471_v55 = vld [vmem:[%s15709_s17 + $0xd8] sm:$0xff] }
0x1586   :  { %11920 = vmatmul.mubr.f32.vlgmr.msra.gmra.mrb[16].mxu1 %v8859_v51 }
0x1659   :  { %v11921_v60 = vpop.f32.mrb[16].mxu1 }
0x165a   :  { %v8942_v61 = vpop.f32.mrb[17].mxu1 }
0x165b   :  { %v12908_v18 = vpack.i.bf16 %v11921_v60, %v8942_v61  ;;  %v15323_v19 = vpack.c.bf16 %v11921_v60, %v8942_v61  ;;  %v11477_v60 = vld [vmem:[%s15709_s17 + $0xe8] sm:$0xff]  ;;  %v11478_v61 = vld [vmem:[%s15709_s17 + $0xf0] sm:$0xff] }
0x165d   :  { %12909 = vrot.lane.b32.xlu1 %v12908_v18, %s13223_s23  ;;  %12904 = vrot.lane.b32.xlu0 %v12908_v18, %s13201_s10 }
0x1661   :  { %12919 = vrot.lane.b32.xlu1 %v12908_v18, %s13209_s7  ;;  %12914 = vrot.lane.b32.xlu0 %v12908_v18, %s13227_s30 }
0x1665   :  { %12929 = vrot.lane.b32.xlu1 %v12908_v18, %s13228_s24  ;;  %12924 = vrot.lane.b32.xlu0 %v12908_v18, %s13210_s22 }
0x1669   :  { %12939 = vrot.lane.b32.xlu1 %v12908_v18, %s13224_s6  ;;  %12934 = vrot.lane.b32.xlu0 %v12908_v18, %s13229_s18  ;;  %v11479_v18 = vld [vmem:[%s15709_s17 + $0xf8] sm:$0xff] }
0x16cf   :  { %v12910_v21 = vpop.permute.xlu1 %12909  ;;  %v12905_v54 = vpop.permute.xlu0 %12904 }
0x16d0   :  { %v12912_v17 = vunpack.i.h.bf16 %v12910_v21  ;;  %v12911_v22 = vunpack.i.l.bf16 %v12910_v21  ;;  %v12907_v53 = vunpack.i.h.bf16 %v12905_v54  ;;  %v12906_v56 = vunpack.i.l.bf16 %v12905_v54  ;;  %v11485_v21 = vld [vmem:[%s15709_s17 + $0x108] sm:$0xff]  ;;  %v11486_v54 = vld [vmem:[%s15709_s17 + $0x110] sm:$0xff] }
0x16d2   :  { %v12430_v35 = vpack.c.bf16 %v12907_v53, %v12906_v56  ;;  %v12434_v41 = vpack.c.bf16 %v12912_v17, %v12911_v22  ;;  %v11487_v17 = vld [vmem:[%s15709_s17 + $0x118] sm:$0xff]  ;;  %v15476_v22 = vld [vmem:[%s15654_s20] ss:$0 sm:$0xff]  ;;  %s15710_s20 = sld [smem:[#allocation28_spill]] }
0x16d3   :  { %v12915_v28 = vpop.permute.xlu0 %12914  ;;  %v12920_v4 = vpop.permute.xlu1 %12919 }
0x16d4   :  { %v12917_v42 = vunpack.i.h.bf16 %v12915_v28  ;;  %v12916_v37 = vunpack.i.l.bf16 %v12915_v28  ;;  %12431 = vmatprep.subr.bf16.mxu0 %v12430_v35  ;;  %v12922_v9 = vunpack.i.h.bf16 %v12920_v4  ;;  %v12921_v0 = vunpack.i.l.bf16 %v12920_v4 }
0x16d5   :  { %12433 = vmatpush3.bf16.msra.mxu0 %v12430_v35 }
0x16d6   :  { %12435 = vmatprep.subr.bf16.mxu0 %v12434_v41  ;;  %v12438_v63 = vpack.c.bf16 %v12917_v42, %v12916_v37  ;;  %v12442_v12 = vpack.c.bf16 %v12922_v9, %v12921_v0 }
0x16d7   :  { %v12925_v52 = vpop.permute.xlu0 %12924  ;;  %v12930_v59 = vpop.permute.xlu1 %12929 }
0x16d8   :  { %11927 = vmatmul.mubr.msk.f32.vlgmr.msra.gmra.mrb[8].mxu0 %vm7992_vm1, %v11425_v62  ;;  %v12927_v25 = vunpack.i.h.bf16 %v12925_v52  ;;  %v12926_v29 = vunpack.i.l.bf16 %v12925_v52  ;;  %v12932_v49 = vunpack.i.h.bf16 %v12930_v59  ;;  %v12931_v47 = vunpack.i.l.bf16 %v12930_v59  ;;  %v11494_v4 = vld [vmem:[%s15710_s20 + $0x28] sm:$0xff]  ;;  %v9977_v9 = vld [vmem:[%s15710_s20 + $0x10] sm:$0xff] }
0x16d9   :  { %12437 = vmatpush3.bf16.msra.mxu0 %v12434_v41  ;;  %11929 = vmatprep.mubr.msk.f32.mxu0 %vm7992_vm1, %v11426_v38  ;;  %v9975_v38 = vld [vmem:[%s15710_s20] sm:$0xff] }
0x16da   :  { %12439 = vmatprep.subr.bf16.mxu0 %v12438_v63  ;;  %v12450_v2 = vpack.c.bf16 %v12927_v25, %v12926_v29  ;;  %v12454_v11 = vpack.c.bf16 %v12932_v49, %v12931_v47  ;;  %v11496_v47 = vld [vmem:[%s15710_s20 + $0x38] sm:$0xff] }
0x16db   :  { %v12935_v57 = vpop.permute.xlu0 %12934  ;;  %v12940_v36 = vpop.permute.xlu1 %12939 }
0x16dc   :  { %11930 = vmatmul.mubr.msk.f32.gmra.mrb[10].mxu0 %vm7992_vm1, %v11427_v1  ;;  %v12937_v30 = vunpack.i.h.bf16 %v12935_v57  ;;  %v12936_v44 = vunpack.i.l.bf16 %v12935_v57  ;;  %v12942_v20 = vunpack.i.h.bf16 %v12940_v36  ;;  %v12941_v46 = vunpack.i.l.bf16 %v12940_v36  ;;  %v9978_v1 = vld [vmem:[%s15710_s20 + $0x18] sm:$0xff] }
0x16dd   :  { %11936 = vmatprep.mubr.msk.f32.mxu0 %vm7992_vm1, %v8956_v10  ;;  %v9976_v10 = vld [vmem:[%s15710_s20 + $0x8] sm:$0xff] }
0x16de   :  { %v12458_v40 = vpack.c.bf16 %v12937_v30, %v12936_v44  ;;  %v12462_v51 = vpack.c.bf16 %v12942_v20, %v12941_v46 }
0x16e0   :  { %11937 = vmatmul.mubr.msk.f32.vlgmr.msra.gmra.mrb[8].mxu0 %vm7992_vm1, %v8957_v3 }
0x16e1   :  { %12441 = vmatpush3.bf16.msra.mxu0 %v12438_v63  ;;  %11939 = vmatprep.mubr.msk.f32.mxu0 %vm7992_vm1, %v8958_v5  ;;  %v11493_v63 = vld [vmem:[%s15710_s20 + $0x20] sm:$0xff] }
0x16e2   :  { %12443 = vmatprep.subr.bf16.mxu0 %v12442_v12 }
0x16e4   :  { %11940 = vmatmul.mubr.msk.f32.gmra.mrb[10].mxu0 %vm7992_vm1, %v8959_v13 }
0x16e5   :  { %11946 = vmatprep.mubr.msk.f32.mxu0 %vm7992_vm1, %v11436_v14 }
0x16e8   :  { %11947 = vmatmul.mubr.msk.f32.vlgmr.msra.gmra.mrb[8].mxu0 %vm7992_vm1, %v11437_v15 }
0x16e9   :  { %12445 = vmatpush3.bf16.msra.mxu0 %v12442_v12  ;;  %11949 = vmatprep.mubr.msk.f32.mxu0 %vm7992_vm1, %v11438_v23 }
0x16ea   :  { %12447 = vmatprep.subr.bf16.mxu0 %v15323_v19 }
0x16ec   :  { %11950 = vmatmul.mubr.msk.f32.gmra.mrb[10].mxu0 %vm7992_vm1, %v11439_v24 }
0x16ed   :  { %11956 = vmatprep.mubr.msk.f32.mxu0 %vm7992_vm1, %v11444_v26 }
0x16f0   :  { %11957 = vmatmul.mubr.msk.f32.vlgmr.msra.gmra.mrb[8].mxu0 %vm7992_vm1, %v11445_v32 }
0x16f1   :  { %12449 = vmatpush3.bf16.msra.mxu0 %v15323_v19  ;;  %11959 = vmatprep.mubr.msk.f32.mxu0 %vm7992_vm1, %v11446_v58  ;;  %v11484_v19 = vld [vmem:[%s15709_s17 + $0x100] sm:$0xff] }
0x16f2   :  { %12451 = vmatprep.subr.bf16.mxu0 %v12450_v2 }
0x16f4   :  { %11960 = vmatmul.mubr.msk.f32.gmra.mrb[10].mxu0 %vm7992_vm1, %v11447_v43 }
0x16f5   :  { %11966 = vmatprep.mubr.msk.f32.mxu0 %vm7992_vm1, %v11452_v7 }
0x16f8   :  { %11967 = vmatmul.mubr.msk.f32.vlgmr.msra.gmra.mrb[8].mxu0 %vm7992_vm1, %v11453_v31  ;;  %v11495_v31 = vld [vmem:[%s15710_s20 + $0x30] sm:$0xff] }
0x16f9   :  { %12453 = vmatpush3.bf16.msra.mxu0 %v12450_v2  ;;  %11969 = vmatprep.mubr.msk.f32.mxu0 %vm7992_vm1, %v11454_v6 }
0x16fa   :  { %12455 = vmatprep.subr.bf16.mxu0 %v12454_v11 }
0x16fc   :  { %11970 = vmatmul.mubr.msk.f32.gmra.mrb[10].mxu0 %vm7992_vm1, %v11455_v16 }
0x16fd   :  { %11976 = vmatprep.mubr.msk.f32.mxu0 %vm7992_vm1, %v11460_v33 }
0x1700   :  { %11977 = vmatmul.mubr.msk.f32.vlgmr.msra.gmra.mrb[8].mxu0 %vm7992_vm1, %v11461_v34 }
0x1701   :  { %12457 = vmatpush3.bf16.msra.mxu0 %v12454_v11  ;;  %11979 = vmatprep.mubr.msk.f32.mxu0 %vm7992_vm1, %v11462_v39 }
0x1702   :  { %12459 = vmatprep.subr.bf16.mxu0 %v12458_v40 }
0x1704   :  { %11980 = vmatmul.mubr.msk.f32.gmra.mrb[10].mxu0 %vm7992_vm1, %v11463_v45 }
0x1705   :  { %11986 = vmatprep.mubr.msk.f32.mxu0 %vm7992_vm1, %v11468_v8 }
0x1708   :  { %11987 = vmatmul.mubr.msk.f32.vlgmr.msra.gmra.mrb[8].mxu0 %vm7992_vm1, %v11469_v48 }
0x1709   :  { %12461 = vmatpush3.bf16.msra.mxu0 %v12458_v40  ;;  %11989 = vmatprep.mubr.msk.f32.mxu0 %vm7992_vm1, %v11470_v50 }
0x170a   :  { %12463 = vmatprep.subr.bf16.mxu0 %v12462_v51 }
0x170c   :  { %11990 = vmatmul.mubr.msk.f32.gmra.mrb[10].mxu0 %vm7992_vm1, %v11471_v55 }
0x170d   :  { %11996 = vmatprep.mubr.msk.f32.mxu0 %vm7992_vm1, %v11476_v27 }
0x1710   :  { %11997 = vmatmul.mubr.msk.f32.vlgmr.msra.gmra.mrb[8].mxu0 %vm7992_vm1, %v11477_v60 }
0x1711   :  { %12465 = vmatpush3.bf16.msra.mxu0 %v12462_v51  ;;  %11999 = vmatprep.mubr.msk.f32.mxu0 %vm7992_vm1, %v11478_v61 }
0x1714   :  { %12000 = vmatmul.mubr.msk.f32.gmra.mrb[10].mxu0 %vm7992_vm1, %v11479_v18 }
0x1715   :  { %12006 = vmatprep.mubr.msk.f32.mxu0 %vm7992_vm1, %v11484_v19 }
0x1718   :  { %12007 = vmatmul.mubr.msk.f32.vlgmr.msra.gmra.mrb[8].mxu0 %vm7992_vm1, %v11485_v21 }
0x1719   :  { %12009 = vmatprep.mubr.msk.f32.mxu0 %vm7992_vm1, %v11486_v54 }
0x171c   :  { %12010 = vmatmul.mubr.msk.f32.gmra.mrb[10].mxu0 %vm7992_vm1, %v11487_v17 }
0x17eb   :  { %v12008_v53 = vpop.f32.mrb[8].mxu0 }
0x17ec   :  { %v9936_v56 = vmul.f32 %v12008_v53, %v15476_v22  ;;  %v9906_v35 = vpop.f32.mrb[9].mxu0 }
0x17ed   :  { %v9935_v28 = vmul.f32 %v15476_v22, %v9906_v35 }
0x17ee   :  { %9941 = vadd.xlane.f32.xlu1 %v9936_v56 }
0x17ef   :  { %9939 = vadd.xlane.f32.xlu0 %v9935_v28  ;;  %v12011_v41 = vpop.f32.mrb[10].mxu0 }
0x17f0   :  { %v9916_v42 = vpop.f32.mrb[11].mxu0  ;;  %v9938_v62 = vmul.f32 %v12011_v41, %v15476_v22 }
0x17f1   :  { %v9937_v37 = vmul.f32 %v15476_v22, %v9916_v42 }
0x17f3   :  { %9943 = vadd.xlane.f32.xlu0 %v9937_v37 }
0x17f7   :  { %9945 = vadd.xlane.f32.xlu0 %v9938_v62 }
0x17ff   :  { %9993 = vperm.xlu1 %12802, %v9975_v38  }
0x1803   :  { %10022 = vperm.xlu1 %12802, %v11493_v63  }
0x1807   :  { %10027 = vperm.xlu1 %12802, %v11494_v4  }
0x180b   :  { %10008 = vperm.xlu1 %12802, %v9978_v1  }
0x180d   :  { %9998 = vperm.xlu0 %12801, %v9976_v10  }
0x1811   :  { %10003 = vperm.xlu0 %12801, %v9977_v9  }
0x187b   :  { %v9942_v0 = vpop.xlane.xlu1 %9941 }
0x187c   :  { %v9948_v3 = vmul.f32 0.125, %v9942_v0  ;;  %v9940_v5 = vpop.xlane.xlu0 %9939 }
0x187d   :  { %v9947_v12 = vmul.f32 0.125, %v9940_v5 }
0x187e   :  { %v9952_v13 = vsub.f32 %v12008_v53, %v9948_v3  ;;  %v10060_v3 = vld [vmem:[#allocation7] sm:$0xff] }
0x187f   :  { %v9951_v14 = vsub.f32 %v9906_v35, %v9947_v12  ;;  %v9994_v6 = vpop.permute.xlu1 %9993  ;;  %12034 = vmatprep.mubr.msk.f32.mxu1 %vm10077_vm2, %v10060_v3  ;;  %v10502_v3 = vld [vmem:[#allocation7 + $0x88] sm:$0xff] }
0x1880   :  { %v9956_v15 = vmul.f32 %v9952_v13, %v9952_v13  ;;  %v9944_v23 = vpop.xlane.xlu0 %9943 }
0x1881   :  { %v9955_v52 = vmul.f32 %v9951_v14, %v9951_v14  ;;  %v9949_v24 = vmul.f32 0.125, %v9944_v23 }
0x1882   :  { %v9960_v26 = vmul.f32 %v15476_v22, %v9956_v15 }
0x1883   :  { %v9953_v25 = vsub.f32 %v9916_v42, %v9949_v24  ;;  %v9959_v29 = vmul.f32 %v15476_v22, %v9955_v52  ;;  %v10023_v11 = vpop.permute.xlu1 %10022  ;;  %v10073_v52 = vld [vmem:[#allocation7 + $0x20] sm:$0xff] }
0x1884   :  { %9965 = vadd.xlane.f32.xlu0 %v9960_v26  ;;  %v9946_v32 = vpop.xlane.xlu0 %9945  ;;  %12020 = vmatprep.mubr.msk.f32.mxu0 %vm10077_vm2, %v10073_v52 }
0x1885   :  { %v9957_v58 = vmul.f32 %v9953_v25, %v9953_v25  ;;  %v9950_v2 = vmul.f32 0.125, %v9946_v32  ;;  %9963 = vadd.xlane.f32.xlu1 %v9959_v29 }
0x1887   :  { %v9954_v59 = vsub.f32 %v12011_v41, %v9950_v2  ;;  %v9961_v43 = vmul.f32 %v15476_v22, %v9957_v58  ;;  %v10028_v16 = vpop.permute.xlu1 %10027 }
0x1889   :  { %v9958_v7 = vmul.f32 %v9954_v59, %v9954_v59  ;;  %9967 = vadd.xlane.f32.xlu1 %v9961_v43 }
0x188b   :  { %v9962_v49 = vmul.f32 %v15476_v22, %v9958_v7  ;;  %v10009_v30 = vpop.permute.xlu1 %10008 }
0x188c   :  { %v9999_v57 = vpop.permute.xlu0 %9998 }
0x188d   :  { %9969 = vadd.xlane.f32.xlu0 %v9962_v49 }
0x1890   :  { %v10004_v33 = vpop.permute.xlu0 %10003 }
0x189a   :  { %10037 = vperm.xlu1 %12802, %v11496_v47  }
0x18a3   :  { %10032 = vperm.xlu0 %12801, %v11495_v31  }
0x1911   :  { %v9966_v44 = vpop.xlane.xlu0 %9965 }
0x1912   :  { %v9972_v34 = vmul.f32 0.125, %v9966_v44  ;;  %v9964_v39 = vpop.xlane.xlu1 %9963 }
0x1913   :  { %v9971_v40 = vmul.f32 0.125, %v9964_v39 }
0x1914   :  { %v9980_v36 = vadd.f32 1e-05, %v9972_v34 }
0x1915   :  { %v9979_v45 = vadd.f32 1e-05, %v9971_v40 }
0x1916   :  { %13039 = vrsqrt.f32 %v9980_v36  ;;  %v9968_v8 = vpop.xlane.xlu1 %9967 }
0x1917   :  { %13041 = vrsqrt.f32 %v9979_v45  ;;  %v9973_v20 = vmul.f32 0.125, %v9968_v8  ;;  %v10063_v45 = vld [vmem:[#allocation7 + $0x18] sm:$0xff]  ;;  %v10281_v8 = vld [vmem:[#allocation7 + $0x40] sm:$0xff] }
0x1919   :  { %v9981_v46 = vadd.f32 1e-05, %v9973_v20 }
0x191a   :  { %v9970_v48 = vpop.xlane.xlu0 %9969  ;;  %v10038_v10 = vpop.permute.xlu1 %10037 }
0x191b   :  { %13043 = vrsqrt.f32 %v9981_v46  ;;  %v9974_v50 = vmul.f32 0.125, %v9970_v48 }
0x191d   :  { %v9982_v51 = vadd.f32 1e-05, %v9974_v50 }
0x191f   :  { %13045 = vrsqrt.f32 %v9982_v51  ;;  %v10282_v51 = vld [vmem:[#allocation7 + $0x48] sm:$0xff] }
0x1920   :  { %v13040_v55 = vpop.eup %13039 }
0x1921   :  { %v13042_v27 = vpop.eup %13041  ;;  %v9988_v60 = vmul.f32 %v13040_v55, %v9952_v13  ;;  %v10283_v55 = vld [vmem:[#allocation7 + $0x50] sm:$0xff] }
0x1922   :  { %v9987_v61 = vmul.f32 %v13042_v27, %v9951_v14  ;;  %v10033_v37 = vpop.permute.xlu0 %10032 }
0x1923   :  { %v10012_v18 = vmul.f32 %v9999_v57, %v9988_v60 }
0x1924   :  { %v10011_v19 = vmul.f32 %v9994_v6, %v9987_v61 }
0x1925   :  { %v13044_v21 = vpop.eup %13043  ;;  %v10041_v54 = vadd.f32 %v10028_v16, %v10012_v18 }
0x1926   :  { %v10040_v17 = vadd.f32 %v10023_v11, %v10011_v19  ;;  %v9989_v53 = vmul.f32 %v13044_v21, %v9953_v25  ;;  %v10284_v19 = vld [vmem:[#allocation7 + $0x58] sm:$0xff] }
0x1927   :  { %v10045_v56 = vmax.f32 %v10041_v54, 0.0 }
0x1928   :  { %v10044_v35 = vmax.f32 %v10040_v17, 0.0  ;;  %v10013_v28 = vmul.f32 %v10004_v33, %v9989_v53  ;;  %v10061_v33 = vld [vmem:[#allocation7 + $0x8] sm:$0xff]  ;;  %v10395_v17 = vld [vmem:[#allocation7 + $0x60] sm:$0xff] }
0x1929   :  { %v13046_v41 = vpop.eup %13045  ;;  %v10049_v42 = vmul.f32 %v15476_v22, %v10045_v56 }
0x192a   :  { %v10048_v62 = vmul.f32 %v15476_v22, %v10044_v35  ;;  %v9990_v38 = vmul.f32 %v13046_v41, %v9954_v59  ;;  %v10042_v63 = vadd.f32 %v10033_v37, %v10013_v28  ;;  %v10396_v35 = vld [vmem:[#allocation7 + $0x68] sm:$0xff]  ;;  %v10397_v41 = vld [vmem:[#allocation7 + $0x70] sm:$0xff] }
0x192c   :  { %v10014_v4 = vmul.f32 %v10009_v30, %v9990_v38  ;;  %v12943_v1 = vpack.i.bf16 %v10049_v42, %v10048_v62  ;;  %v10046_v0 = vmax.f32 %v10042_v63, 0.0  ;;  %v15513_v5 = vpack.c.bf16 %v10049_v42, %v10048_v62  ;;  %v10062_v30 = vld [vmem:[#allocation7 + $0x10] sm:$0xff]  ;;  %v10398_v38 = vld [vmem:[#allocation7 + $0x78] sm:$0xff]  ;;  %v10074_v63 = vld [vmem:[#allocation7 + $0x28] sm:$0xff] }
0x192e   :  { %v10043_v9 = vadd.f32 %v10038_v10, %v10014_v4  ;;  %12944 = vrot.lane.b32.xlu0 %v12943_v1, %s13223_s23  ;;  %v10050_v14 = vmul.f32 %v15476_v22, %v10046_v0  ;;  %v10501_v4 = vld [vmem:[#allocation7 + $0x80] sm:$0xff] }
0x1930   :  { %v10047_v12 = vmax.f32 %v10043_v9, 0.0 }
0x1932   :  { %v10051_v13 = vmul.f32 %v15476_v22, %v10047_v12  ;;  %12954 = vrot.lane.b32.xlu0 %v12943_v1, %s13227_s30  ;;  %v10503_v12 = vld [vmem:[#allocation7 + $0x90] sm:$0xff] }
0x1934   :  { %v12948_v15 = vpack.i.bf16 %v10051_v13, %v10050_v14  ;;  %v15521_v23 = vpack.c.bf16 %v10051_v13, %v10050_v14 }
0x1936   :  { %12964 = vrot.lane.b32.xlu0 %v12943_v1, %s13209_s7  ;;  %12949 = vrot.lane.b32.xlu1 %v12948_v15, %s13223_s23 }
0x193a   :  { %12974 = vrot.lane.b32.xlu0 %v12943_v1, %s13210_s22  ;;  %12959 = vrot.lane.b32.xlu1 %v12948_v15, %s13227_s30 }
0x193e   :  { %12984 = vrot.lane.b32.xlu0 %v12943_v1, %s13228_s24  ;;  %12969 = vrot.lane.b32.xlu1 %v12948_v15, %s13209_s7 }
0x1942   :  { %12994 = vrot.lane.b32.xlu0 %v12943_v1, %s13229_s18  ;;  %12979 = vrot.lane.b32.xlu1 %v12948_v15, %s13210_s22  ;;  %s15711_s22 = sld [smem:[#allocation29_spill]] }
0x1946   :  { %12999 = vrot.lane.b32.xlu0 %v12943_v1, %s13201_s10  ;;  %12989 = vrot.lane.b32.xlu1 %v12948_v15, %s13228_s24 }
0x194a   :  { %13014 = vrot.lane.b32.xlu0 %v12948_v15, %s13201_s10  ;;  %13004 = vrot.lane.b32.xlu1 %v12948_v15, %s13229_s18 }
0x194e   :  { %13009 = vrot.lane.b32.xlu1 %v12943_v1, %s13224_s6  ;;  %v10075_v1 = vld [vmem:[#allocation7 + $0x30] sm:$0xff] }
0x1952   :  { %13019 = vrot.lane.b32.xlu1 %v12948_v15, %s13224_s6 }
0x19a0   :  { %v12945_v24 = vpop.permute.xlu0 %12944 }
0x19a1   :  { %v12947_v26 = vunpack.i.h.bf16 %v12945_v24  ;;  %v12946_v25 = vunpack.i.l.bf16 %v12945_v24  ;;  %v10615_v24 = vld [vmem:[#allocation7 + $0xa0] sm:$0xff] }
0x19a3   :  { %v12474_v29 = vpack.c.bf16 %v12947_v26, %v12946_v25 }
0x19a4   :  { %v12955_v32 = vpop.permute.xlu0 %12954 }
0x19a5   :  { %12475 = vmatprep.subr.bf16.mxu1 %v12474_v29  ;;  %v12957_v59 = vunpack.i.h.bf16 %v12955_v32  ;;  %v12956_v43 = vunpack.i.l.bf16 %v12955_v32 }
0x19a6   :  { %12477 = vmatpush3.bf16.msra.mxu1 %v12474_v29 }
0x19a7   :  { %v12482_v11 = vpack.c.bf16 %v12957_v59, %v12956_v43 }
0x19a8   :  { %v12950_v58 = vpop.permute.xlu1 %12949  ;;  %v12965_v2 = vpop.permute.xlu0 %12964 }
0x19a9   :  { %v12952_v7 = vunpack.i.h.bf16 %v12950_v58  ;;  %v12951_v49 = vunpack.i.l.bf16 %v12950_v58  ;;  %v12967_v34 = vunpack.i.h.bf16 %v12965_v2  ;;  %v12966_v39 = vunpack.i.l.bf16 %v12965_v2  ;;  %v10616_v58 = vld [vmem:[#allocation7 + $0xa8] sm:$0xff]  ;;  %v10617_v2 = vld [vmem:[#allocation7 + $0xb0] sm:$0xff] }
0x19ab   :  { %v12478_v47 = vpack.c.bf16 %v12952_v7, %v12951_v49  ;;  %v12490_v46 = vpack.c.bf16 %v12967_v34, %v12966_v39  ;;  %v10618_v49 = vld [vmem:[#allocation7 + $0xb8] sm:$0xff] }
0x19ac   :  { %v12960_v31 = vpop.permute.xlu1 %12959  ;;  %v15536_v6 = vpop.permute.xlu0 %12974 }
0x19ad   :  { %v12962_v57 = vunpack.i.h.bf16 %v12960_v31  ;;  %v12961_v16 = vunpack.i.l.bf16 %v12960_v31  ;;  %12479 = vmatprep.subr.bf16.mxu1 %v12478_v47  ;;  %v12977_v42 = vunpack.i.h.bf16 %v15536_v6  ;;  %v12976_v37 = vunpack.i.l.bf16 %v15536_v6 }
0x19ae   :  { %12481 = vmatpush3.bf16.msra.mxu1 %v12478_v47  ;;  %v10729_v47 = vld [vmem:[#allocation7 + $0xc0] sm:$0xff] }
0x19af   :  { %12483 = vmatprep.subr.bf16.mxu1 %v12482_v11  ;;  %v12486_v40 = vpack.c.bf16 %v12962_v57, %v12961_v16  ;;  %v12506_v10 = vpack.c.bf16 %v12977_v42, %v12976_v37  ;;  %v10730_v16 = vld [vmem:[#allocation7 + $0xc8] sm:$0xff] }
0x19b0   :  { %v15538_v44 = vpop.permute.xlu0 %12984  ;;  %v12970_v36 = vpop.permute.xlu1 %12969 }
0x19b1   :  { %12035 = vmatmul.mubr.msk.f32.vlgmr.msra.gmra.mrb[18].mxu1 %vm10077_vm2, %v10061_v33  ;;  %v12972_v48 = vunpack.i.h.bf16 %v12970_v36  ;;  %v12971_v50 = vunpack.i.l.bf16 %v12970_v36  ;;  %v12987_v14 = vunpack.i.h.bf16 %v15538_v44  ;;  %v12986_v15 = vunpack.i.l.bf16 %v15538_v44  ;;  %v10731_v33 = vld [vmem:[#allocation7 + $0xd0] sm:$0xff]  ;;  %v10843_v36 = vld [vmem:[#allocation7 + $0xe0] sm:$0xff] }
0x19b2   :  { %12485 = vmatpush3.bf16.msra.mxu1 %v12482_v11  ;;  %12037 = vmatprep.mubr.msk.f32.mxu1 %vm10077_vm2, %v10062_v30 }
0x19b3   :  { %12487 = vmatprep.subr.bf16.mxu1 %v12486_v40  ;;  %v12494_v60 = vpack.c.bf16 %v12972_v48, %v12971_v50  ;;  %v12514_v26 = vpack.c.bf16 %v12987_v14, %v12986_v15  ;;  %v10845_v48 = vld [vmem:[#allocation7 + $0xf0] sm:$0xff] }
0x19b4   :  { %v15542_v20 = vpop.permute.xlu0 %12994  ;;  %v12980_v62 = vpop.permute.xlu1 %12979 }
0x19b5   :  { %12038 = vmatmul.mubr.msk.f32.gmra.mrb[20].mxu1 %vm10077_vm2, %v10063_v45  ;;  %v12982_v9 = vunpack.i.h.bf16 %v12980_v62  ;;  %v12981_v0 = vunpack.i.l.bf16 %v12980_v62  ;;  %v12997_v59 = vunpack.i.h.bf16 %v15542_v20  ;;  %v12996_v43 = vunpack.i.l.bf16 %v15542_v20 }
0x19b6   :  { %12489 = vmatpush3.bf16.msra.mxu1 %v12486_v40  ;;  %12048 = vmatprep.mubr.msk.f32.mxu1 %vm10077_vm2, %v10281_v8  ;;  %v10732_v40 = vld [vmem:[#allocation7 + $0xd8] sm:$0xff] }
0x19b7   :  { %12491 = vmatprep.subr.bf16.mxu1 %v12490_v46  ;;  %v12510_v52 = vpack.c.bf16 %v12982_v9, %v12981_v0  ;;  %v12522_v6 = vpack.c.bf16 %v12997_v59, %v12996_v43  ;;  %v11105_v9 = vld [vmem:[%s15711_s22 + $0x18] sm:$0xff]  ;;  %v11534_v0 = vld [vmem:[%s15711_s22 + $0x28] sm:$0xff] }
0x19b8   :  { %v13000_v27 = vpop.permute.xlu0 %12999  ;;  %v12990_v13 = vpop.permute.xlu1 %12989 }
0x19b9   :  { %v13002_v61 = vunpack.i.h.bf16 %v13000_v27  ;;  %v13001_v18 = vunpack.i.l.bf16 %v13000_v27  ;;  %12049 = vmatmul.mubr.msk.f32.vlgmr.msra.gmra.mrb[18].mxu1 %vm10077_vm2, %v10282_v51  ;;  %v12992_v25 = vunpack.i.h.bf16 %v12990_v13  ;;  %v12991_v29 = vunpack.i.l.bf16 %v12990_v13  ;;  %v10846_v51 = vld [vmem:[#allocation7 + $0xf8] sm:$0xff]  ;;  %v10958_v27 = vld [vmem:[#allocation7 + $0x108] sm:$0xff] }
0x19ba   :  { %12493 = vmatpush3.bf16.msra.mxu1 %v12490_v46  ;;  %12051 = vmatprep.mubr.msk.f32.mxu1 %vm10077_vm2, %v10283_v55  ;;  %v10844_v46 = vld [vmem:[#allocation7 + $0xe8] sm:$0xff]  ;;  %v10957_v55 = vld [vmem:[#allocation7 + $0x100] sm:$0xff] }
0x19bb   :  { %v12466_v21 = vpack.c.bf16 %v13002_v61, %v13001_v18  ;;  %12495 = vmatprep.subr.bf16.mxu1 %v12494_v60  ;;  %v12518_v7 = vpack.c.bf16 %v12992_v25, %v12991_v29  ;;  %v10960_v61 = vld [vmem:[#allocation7 + $0x118] sm:$0xff] }
0x19bc   :  { %v13015_v54 = vpop.permute.xlu0 %13014  ;;  %v13005_v32 = vpop.permute.xlu1 %13004 }
0x19bd   :  { %v13017_v53 = vunpack.i.h.bf16 %v13015_v54  ;;  %v13016_v56 = vunpack.i.l.bf16 %v13015_v54  ;;  %12467 = vmatprep.subr.bf16.mxu0 %v12466_v21  ;;  %12052 = vmatmul.mubr.msk.f32.gmra.mrb[20].mxu1 %vm10077_vm2, %v10284_v19  ;;  %v13007_v11 = vunpack.i.h.bf16 %v13005_v32  ;;  %v13006_v57 = vunpack.i.l.bf16 %v13005_v32 }
0x19be   :  { %12469 = vmatpush3.bf16.msra.mxu0 %v12466_v21  ;;  %12497 = vmatpush3.bf16.msra.mxu1 %v12494_v60  ;;  %v10959_v60 = vld [vmem:[#allocation7 + $0x110] sm:$0xff] }
0x19bf   :  { %v12470_v28 = vpack.c.bf16 %v13017_v53, %v13016_v56  ;;  %12499 = vmatprep.subr.bf16.mxu1 %v15513_v5  ;;  %12062 = vmatprep.mubr.msk.f32.mxu1 %vm10077_vm2, %v10395_v17  ;;  %v12526_v30 = vpack.c.bf16 %v13007_v11, %v13006_v57  ;;  %v11536_v11 = vld [vmem:[%s15711_s22 + $0x38] sm:$0xff]  ;;  %v11535_v57 = vld [vmem:[%s15711_s22 + $0x30] sm:$0xff] }
0x19c0   :  { %v13010_v31 = vpop.permute.xlu1 %13009 }
0x19c1   :  { %12471 = vmatprep.subr.bf16.mxu0 %v12470_v28  ;;  %12063 = vmatmul.mubr.msk.f32.vlgmr.msra.gmra.mrb[18].mxu1 %vm10077_vm2, %v10396_v35  ;;  %v13012_v44 = vunpack.i.h.bf16 %v13010_v31  ;;  %v13011_v34 = vunpack.i.l.bf16 %v13010_v31 }
0x19c2   :  { %12473 = vmatpush3.bf16.msra.mxu0 %v12470_v28  ;;  %12501 = vmatpush3.bf16.msra.mxu1 %v15513_v5  ;;  %v10076_v5 = vld [vmem:[#allocation7 + $0x38] sm:$0xff] }
0x19c3   :  { %12503 = vmatprep.subr.bf16.mxu1 %v15521_v23  ;;  %12065 = vmatprep.mubr.msk.f32.mxu1 %vm10077_vm2, %v10397_v41  ;;  %v12530_v45 = vpack.c.bf16 %v13012_v44, %v13011_v34 }
0x19c4   :  { %v13020_v39 = vpop.permute.xlu1 %13019 }
0x19c5   :  { %12066 = vmatmul.mubr.msk.f32.gmra.mrb[20].mxu1 %vm10077_vm2, %v10398_v38  ;;  %12021 = vmatmul.mubr.msk.f32.vlgmr.msra.gmra.mrb[12].mxu0 %vm10077_vm2, %v10074_v63  ;;  %v13022_v8 = vunpack.i.h.bf16 %v13020_v39  ;;  %v13021_v20 = vunpack.i.l.bf16 %v13020_v39 }
0x19c6   :  { %12505 = vmatpush3.bf16.msra.mxu1 %v15521_v23  ;;  %12076 = vmatprep.mubr.msk.f32.mxu1 %vm10077_vm2, %v10501_v4  ;;  %v10504_v23 = vld [vmem:[#allocation7 + $0x98] sm:$0xff] }
0x19c7   :  { %12507 = vmatprep.subr.bf16.mxu1 %v12506_v10  ;;  %12023 = vmatprep.mubr.msk.f32.mxu0 %vm10077_vm2, %v10075_v1  ;;  %v12534_v50 = vpack.c.bf16 %v13022_v8, %v13021_v20  ;;  %v11102_v1 = vld [vmem:[%s15711_s22] sm:$0xff] }
0x19c9   :  { %12077 = vmatmul.mubr.msk.f32.vlgmr.msra.gmra.mrb[18].mxu1 %vm10077_vm2, %v10502_v3  ;;  %12024 = vmatmul.mubr.msk.f32.gmra.mrb[14].mxu0 %vm10077_vm2, %v10076_v5  ;;  %v11103_v3 = vld [vmem:[%s15711_s22 + $0x8] sm:$0xff]  ;;  %v11533_v5 = vld [vmem:[%s15711_s22 + $0x20] sm:$0xff] }
0x19ca   :  { %12509 = vmatpush3.bf16.msra.mxu1 %v12506_v10  ;;  %12079 = vmatprep.mubr.msk.f32.mxu1 %vm10077_vm2, %v10503_v12  ;;  %v11104_v10 = vld [vmem:[%s15711_s22 + $0x10] sm:$0xff] }
0x19cb   :  { %12511 = vmatprep.subr.bf16.mxu1 %v12510_v52 }
0x19cd   :  { %12080 = vmatmul.mubr.msk.f32.gmra.mrb[20].mxu1 %vm10077_vm2, %v10504_v23 }
0x19ce   :  { %12513 = vmatpush3.bf16.msra.mxu1 %v12510_v52  ;;  %12090 = vmatprep.mubr.msk.f32.mxu1 %vm10077_vm2, %v10615_v24 }
0x19cf   :  { %12515 = vmatprep.subr.bf16.mxu1 %v12514_v26 }
0x19d1   :  { %12091 = vmatmul.mubr.msk.f32.vlgmr.msra.gmra.mrb[18].mxu1 %vm10077_vm2, %v10616_v58 }
0x19d2   :  { %12517 = vmatpush3.bf16.msra.mxu1 %v12514_v26  ;;  %12093 = vmatprep.mubr.msk.f32.mxu1 %vm10077_vm2, %v10617_v2 }
0x19d3   :  { %12519 = vmatprep.subr.bf16.mxu1 %v12518_v7 }
0x19d5   :  { %12094 = vmatmul.mubr.msk.f32.gmra.mrb[20].mxu1 %vm10077_vm2, %v10618_v49 }
0x19d6   :  { %12521 = vmatpush3.bf16.msra.mxu1 %v12518_v7  ;;  %12104 = vmatprep.mubr.msk.f32.mxu1 %vm10077_vm2, %v10729_v47 }
0x19d7   :  { %12523 = vmatprep.subr.bf16.mxu1 %v12522_v6 }
0x19d9   :  { %12105 = vmatmul.mubr.msk.f32.vlgmr.msra.gmra.mrb[18].mxu1 %vm10077_vm2, %v10730_v16 }
0x19da   :  { %12525 = vmatpush3.bf16.msra.mxu1 %v12522_v6  ;;  %12107 = vmatprep.mubr.msk.f32.mxu1 %vm10077_vm2, %v10731_v33 }
0x19db   :  { %12527 = vmatprep.subr.bf16.mxu1 %v12526_v30 }
0x19dd   :  { %12108 = vmatmul.mubr.msk.f32.gmra.mrb[20].mxu1 %vm10077_vm2, %v10732_v40 }
0x19de   :  { %12529 = vmatpush3.bf16.msra.mxu1 %v12526_v30  ;;  %12118 = vmatprep.mubr.msk.f32.mxu1 %vm10077_vm2, %v10843_v36 }
0x19df   :  { %12531 = vmatprep.subr.bf16.mxu1 %v12530_v45 }
0x19e1   :  { %12119 = vmatmul.mubr.msk.f32.vlgmr.msra.gmra.mrb[18].mxu1 %vm10077_vm2, %v10844_v46 }
0x19e2   :  { %12533 = vmatpush3.bf16.msra.mxu1 %v12530_v45  ;;  %12121 = vmatprep.mubr.msk.f32.mxu1 %vm10077_vm2, %v10845_v48 }
0x19e3   :  { %12535 = vmatprep.subr.bf16.mxu1 %v12534_v50 }
0x19e5   :  { %12122 = vmatmul.mubr.msk.f32.gmra.mrb[20].mxu1 %vm10077_vm2, %v10846_v51 }
0x19e6   :  { %12537 = vmatpush3.bf16.msra.mxu1 %v12534_v50  ;;  %12132 = vmatprep.mubr.msk.f32.mxu1 %vm10077_vm2, %v10957_v55 }
0x19e9   :  { %12133 = vmatmul.mubr.msk.f32.vlgmr.msra.gmra.mrb[18].mxu1 %vm10077_vm2, %v10958_v27 }
0x19ea   :  { %12135 = vmatprep.mubr.msk.f32.mxu1 %vm10077_vm2, %v10959_v60 }
0x19ed   :  { %12136 = vmatmul.mubr.msk.f32.gmra.mrb[20].mxu1 %vm10077_vm2, %v10960_v61 }
0x1a98   :  { %v12022_v18 = vpop.f32.mrb[12].mxu0 }
0x1a99   :  { %v10156_v19 = vpop.f32.mrb[13].mxu0 }
0x1a9c   :  { %v12025_v21 = vpop.f32.mrb[14].mxu0 }
0x1a9d   :  { %v10166_v54 = vpop.f32.mrb[15].mxu0 }
0x1abc   :  { %v12134_v17 = vpop.f32.mrb[18].mxu1 }
0x1abd   :  { %v12538_v53 = vadd.f32 %v12134_v17, %v12022_v18  ;;  %v11039_v56 = vpop.f32.mrb[19].mxu1 }
0x1abe   :  { %v12539_v35 = vadd.f32 %v11039_v56, %v10156_v19 }
0x1abf   :  { %v11063_v28 = vmul.f32 %v12538_v53, %v15476_v22 }
0x1ac0   :  { %v11062_v41 = vmul.f32 %v12539_v35, %v15476_v22  ;;  %v12137_v42 = vpop.f32.mrb[20].mxu1 }
0x1ac1   :  { %v12540_v37 = vadd.f32 %v12137_v42, %v12025_v21  ;;  %11068 = vadd.xlane.f32.xlu1 %v11063_v28  ;;  %v11049_v62 = vpop.f32.mrb[21].mxu1 }
0x1ac2   :  { %v12541_v38 = vadd.f32 %v11049_v62, %v10166_v54  ;;  %11066 = vadd.xlane.f32.xlu0 %v11062_v41 }
0x1ac3   :  { %v11065_v4 = vmul.f32 %v12540_v37, %v15476_v22 }
0x1ac4   :  { %v11064_v63 = vmul.f32 %v12541_v38, %v15476_v22 }
0x1ac6   :  { %11070 = vadd.xlane.f32.xlu0 %v11064_v63 }
0x1aca   :  { %11072 = vadd.xlane.f32.xlu0 %v11065_v4 }
0x1ad2   :  { %11120 = vperm.xlu1 %12802, %v11102_v1  }
0x1ad6   :  { %11130 = vperm.xlu1 %12802, %v11104_v10  }
0x1ada   :  { %11135 = vperm.xlu1 %12802, %v11105_v9  }
0x1ade   :  { %11154 = vperm.xlu1 %12802, %v11534_v0  }
0x1ae0   :  { %11125 = vperm.xlu0 %12801, %v11103_v3  }
0x1ae4   :  { %11149 = vperm.xlu0 %12801, %v11533_v5  }
0x1b4e   :  { %v11069_v12 = vpop.xlane.xlu1 %11068 }
0x1b4f   :  { %v11075_v13 = vmul.f32 0.125, %v11069_v12  ;;  %v11067_v14 = vpop.xlane.xlu0 %11066 }
0x1b50   :  { %v11074_v15 = vmul.f32 0.125, %v11067_v14 }
0x1b51   :  { %v11079_v52 = vsub.f32 %v12538_v53, %v11075_v13 }
0x1b52   :  { %v11078_v23 = vsub.f32 %v12539_v35, %v11074_v15  ;;  %v11121_v16 = vpop.permute.xlu1 %11120 }
0x1b53   :  { %v11083_v24 = vmul.f32 %v11079_v52, %v11079_v52  ;;  %v11071_v26 = vpop.xlane.xlu0 %11070 }
0x1b54   :  { %v11082_v25 = vmul.f32 %v11078_v23, %v11078_v23  ;;  %v11076_v29 = vmul.f32 0.125, %v11071_v26 }
0x1b55   :  { %v11087_v32 = vmul.f32 %v15476_v22, %v11083_v24 }
0x1b56   :  { %v11080_v58 = vsub.f32 %v12541_v38, %v11076_v29  ;;  %v11086_v2 = vmul.f32 %v15476_v22, %v11082_v25  ;;  %v11131_v33 = vpop.permute.xlu1 %11130 }
0x1b57   :  { %11092 = vadd.xlane.f32.xlu0 %v11087_v32  ;;  %v11073_v59 = vpop.xlane.xlu0 %11072 }
0x1b58   :  { %v11084_v43 = vmul.f32 %v11080_v58, %v11080_v58  ;;  %v11077_v7 = vmul.f32 0.125, %v11073_v59  ;;  %11090 = vadd.xlane.f32.xlu1 %v11086_v2 }
0x1b5a   :  { %v11081_v49 = vsub.f32 %v12540_v37, %v11077_v7  ;;  %v11088_v47 = vmul.f32 %v15476_v22, %v11084_v43  ;;  %v11136_v44 = vpop.permute.xlu1 %11135 }
0x1b5c   :  { %v11085_v31 = vmul.f32 %v11081_v49, %v11081_v49  ;;  %11094 = vadd.xlane.f32.xlu1 %v11088_v47 }
0x1b5e   :  { %v11089_v6 = vmul.f32 %v15476_v22, %v11085_v31  ;;  %v11155_v39 = vpop.permute.xlu1 %11154 }
0x1b5f   :  { %v11126_v30 = vpop.permute.xlu0 %11125 }
0x1b60   :  { %11096 = vadd.xlane.f32.xlu0 %v11089_v6 }
0x1b63   :  { %v11150_v34 = vpop.permute.xlu0 %11149 }
0x1b6d   :  { %11164 = vperm.xlu1 %12802, %v11536_v11  }
0x1b76   :  { %11159 = vperm.xlu0 %12801, %v11535_v57  }
0x1be4   :  { %v11093_v40 = vpop.xlane.xlu0 %11092 }
0x1be5   :  { %v11099_v36 = vmul.f32 0.125, %v11093_v40  ;;  %v11091_v45 = vpop.xlane.xlu1 %11090 }
0x1be6   :  { %v11098_v8 = vmul.f32 0.125, %v11091_v45 }
0x1be7   :  { %v11107_v20 = vadd.f32 1e-05, %v11099_v36 }
0x1be8   :  { %v11106_v46 = vadd.f32 1e-05, %v11098_v8 }
0x1be9   :  { %13047 = vrsqrt.f32 %v11107_v20  ;;  %v11095_v48 = vpop.xlane.xlu1 %11094 }
0x1bea   :  { %13049 = vrsqrt.f32 %v11106_v46  ;;  %v11100_v50 = vmul.f32 0.125, %v11095_v48 }
0x1bec   :  { %v11108_v51 = vadd.f32 1e-05, %v11100_v50 }
0x1bed   :  { %v11097_v55 = vpop.xlane.xlu0 %11096  ;;  %v11165_v3 = vpop.permute.xlu1 %11164 }
0x1bee   :  { %13051 = vrsqrt.f32 %v11108_v51  ;;  %v11101_v27 = vmul.f32 0.125, %v11097_v55 }
0x1bf0   :  { %v11109_v60 = vadd.f32 1e-05, %v11101_v27 }
0x1bf2   :  { %13053 = vrsqrt.f32 %v11109_v60 }
0x1bf3   :  { %v13048_v61 = vpop.eup %13047 }
0x1bf4   :  { %v13050_v18 = vpop.eup %13049  ;;  %v11115_v19 = vmul.f32 %v13048_v61, %v11079_v52 }
0x1bf5   :  { %v11114_v21 = vmul.f32 %v13050_v18, %v11078_v23  ;;  %v11160_v63 = vpop.permute.xlu0 %11159 }
0x1bf6   :  { %v11139_v54 = vmul.f32 %v11126_v30, %v11115_v19 }
0x1bf7   :  { %v11138_v17 = vmul.f32 %v11121_v16, %v11114_v21 }
0x1bf8   :  { %v13052_v53 = vpop.eup %13051  ;;  %v11168_v56 = vadd.f32 %v11155_v39, %v11139_v54 }
0x1bf9   :  { %v11167_v35 = vadd.f32 %v11150_v34, %v11138_v17  ;;  %v11116_v28 = vmul.f32 %v13052_v53, %v11080_v58 }
0x1bfa   :  { %v11172_v41 = vmax.f32 %v11168_v56, 0.0 }
0x1bfb   :  { %v11171_v42 = vmax.f32 %v11167_v35, 0.0  ;;  %v11140_v37 = vmul.f32 %v11131_v33, %v11116_v28 }
0x1bfc   :  { %v13054_v62 = vpop.eup %13053  ;;  %v11176_v38 = vmul.f32 %v15476_v22, %v11172_v41 }
0x1bfd   :  { %v11175_v4 = vmul.f32 %v15476_v22, %v11171_v42  ;;  %v11117_v1 = vmul.f32 %v13054_v62, %v11081_v49  ;;  %v11169_v10 = vadd.f32 %v11160_v63, %v11140_v37 }
0x1bfe   :  { %11180 = vst [vmem:[%s15712_s8 + $0x8] sm:$0xff] %v11176_v38 }
0x1bff   :  { %11179 = vst [vmem:[%s15712_s8] sm:$0xff] %v11175_v4  ;;  %v11141_v9 = vmul.f32 %v11136_v44, %v11117_v1  ;;  %v11173_v0 = vmax.f32 %v11169_v10, 0.0 }
0x1c01   :  { %v11170_v5 = vadd.f32 %v11165_v3, %v11141_v9  ;;  %v11177_v12 = vmul.f32 %v15476_v22, %v11173_v0 }
0x1c03   :  { %v11174_v13 = vmax.f32 %v11170_v5, 0.0  ;;  %11181 = vst [vmem:[%s15712_s8 + $0x10] sm:$0xff] %v11177_v12 }
0x1c05   :  { %v11178_v14 = vmul.f32 %v15476_v22, %v11174_v13 }
0x1c07   :  { %11182 = vst [vmem:[%s15712_s8 + $0x18] sm:$0xff] %v11178_v14 }
0x1c08   :  { %11199 = vsyncpa [#allocation3], 1 }
0x1c09   :  { %11200 = vsyncpa [#allocation5], 1 }
0x1c0a   :  { %11201 = vsyncpa [#allocation8], 1 }
0x1c0b   :  { %11202 = vsyncpa [#allocation11], 1 }

</bundles_post_ra>
